<compile_context>
chip_gen: v6e
topology: v6e:2x2x1
jax: 0.10.0
libtpu: 0.0.40
codegen_flags: <defaults>
</compile_context>

<pallas_src>
import functools
import numpy as np
import jax
import jax.numpy as jnp
from jax.experimental import pallas as pl
from jax.experimental.pallas import tpu as pltpu


def _round_up(v, m):
    return (v + m - 1) // m * m


def _pad_gate_cols(w_t, h, hp):
    """(K, 4H) -> (K, 4Hp): pad each of the 4 gate blocks to Hp lanes."""
    k = w_t.shape[0]
    w4 = w_t.reshape(k, 4, h)
    w4 = jnp.pad(w4, ((0, 0), (0, 0), (0, hp - h)))
    return w4.reshape(k, 4 * hp)


# ----------------------------------------------------------------------------
# Fused kernel: one grid step = `chunk` timesteps.
#   gates_x = x_chunk @ W_ih^T + (b_ih + b_hh)          (one MXU matmul, VMEM)
#   for t in chunk:  LSTM cell with h_{t-1} @ W_hh^T    (serial)
#   enc_chunk = relu(y_chunk @ W_out^T + b_out)         (one MXU matmul)
# ----------------------------------------------------------------------------
def _lstm_fused_kernel(x_ref, lens_ref, wih_ref, bih_ref, whh_ref,
                       wout_ref, bout_ref,
                       enc_ref, hout_ref, cout_ref,
                       h_scr, c_scr, gx_scr, y_scr, *, chunk, hp):
    @pl.when(pl.program_id(0) == 0)
    def _():
        h_scr[...] = jnp.zeros_like(h_scr)
        c_scr[...] = jnp.zeros_like(c_scr)

    # Fused input projection for the whole chunk (no serial dependence):
    # (chunk, Bp, I) . (I, 4Hp) + (1, 4Hp) -> (chunk, Bp, 4Hp) in VMEM scratch.
    gx_scr[...] = jax.lax.dot_general(
        x_ref[...], wih_ref[...],
        dimension_numbers=(((2,), (0,)), ((), ())),
        preferred_element_type=jnp.float32) + bih_ref[...]

    whh = whh_ref[...]                     # (Hp, 4Hp), resident across grid
    lens = lens_ref[...]                   # (Bp, 1) float32 lengths
    t_base = pl.program_id(0) * chunk

    def step(tt, carry):
        h_prev, c_prev = carry
        g = gx_scr[tt] + jnp.dot(h_prev, whh,
                                 preferred_element_type=jnp.float32)
        # Hp == 128*k so every gate slice is whole lane tiles.
        i_g = jax.nn.sigmoid(g[:, 0 * hp:1 * hp])
        f_g = jax.nn.sigmoid(g[:, 1 * hp:2 * hp])
        g_g = jnp.tanh(g[:, 2 * hp:3 * hp])
        o_g = jax.nn.sigmoid(g[:, 3 * hp:4 * hp])
        c_t = f_g * c_prev + i_g * g_g
        h_t = o_g * jnp.tanh(c_t)

        # In-kernel length mask (replaces the old (Tp,Bp,1) HBM mask stream).
        t_now = (t_base + tt).astype(jnp.float32)
        m = (lens > t_now).astype(jnp.float32)        # (Bp, 1)
        y_scr[tt] = m * h_t                  # pad_packed_sequence zeros
        h_new = h_prev + m * (h_t - h_prev)  # freeze state past seq length
        c_new = c_prev + m * (c_t - c_prev)
        return h_new, c_new

    h_fin, c_fin = jax.lax.fori_loop(
        0, chunk, step, (h_scr[...], c_scr[...]), unroll=True)
    h_scr[...] = h_fin
    c_scr[...] = c_fin

    # Fused output projection + ReLU for the whole chunk:
    # (chunk, Bp, Hp) . (Hp, Hp) + (1, Hp) -> enc chunk, written lane-dense.
    enc = jax.lax.dot_general(
        y_scr[...], wout_ref[...],
        dimension_numbers=(((2,), (0,)), ((), ())),
        preferred_element_type=jnp.float32) + bout_ref[...]
    enc_ref[...] = jnp.maximum(enc, 0.0)

    @pl.when(pl.program_id(0) == pl.num_programs(0) - 1)
    def _():
        hout_ref[...] = h_fin
        cout_ref[...] = c_fin


def _run_recurrence(x_tm, lens2d, wih_t, b_gate, whh_t, wout_t, bout, *,
                    chunk, Bp, Hp, I, Tp, single_buffer_weights):
    """Build and invoke the fused recurrence pallas_call."""
    def const_spec(shape):
        idx = lambda i: (0,) * len(shape)
        if single_buffer_weights:
            # Constant-index blocks: no point double-buffering them.
            return pl.BlockSpec(shape, idx, pipeline_mode=pl.Buffered(1))
        return pl.BlockSpec(shape, idx)

    kernel = functools.partial(_lstm_fused_kernel, chunk=chunk, hp=Hp)
    return pl.pallas_call(
        kernel,
        out_shape=(
            jax.ShapeDtypeStruct((Tp, Bp, Hp), jnp.float32),   # enc (relu'd)
            jax.ShapeDtypeStruct((Bp, Hp), jnp.float32),       # final h
            jax.ShapeDtypeStruct((Bp, Hp), jnp.float32),       # final c
        ),
        grid_spec=pltpu.PrefetchScalarGridSpec(
            num_scalar_prefetch=0,
            grid=(Tp // chunk,),
            in_specs=[
                pl.BlockSpec((chunk, Bp, I), lambda i: (i, 0, 0)),  # x chunk
                const_spec((Bp, 1)),             # sequence lengths
                const_spec((I, 4 * Hp)),         # W_ih^T (gate-padded)
                const_spec((1, 4 * Hp)),         # b_ih + b_hh
                const_spec((Hp, 4 * Hp)),        # W_hh^T
                const_spec((Hp, Hp)),            # W_out^T
                const_spec((1, Hp)),             # b_out
            ],
            out_specs=[
                pl.BlockSpec((chunk, Bp, Hp), lambda i: (i, 0, 0)),  # enc
                pl.BlockSpec((Bp, Hp), lambda i: (0, 0)),            # h_n
                pl.BlockSpec((Bp, Hp), lambda i: (0, 0)),            # c_n
            ],
            scratch_shapes=[
                pltpu.VMEM((Bp, Hp), jnp.float32),                   # h state
                pltpu.VMEM((Bp, Hp), jnp.float32),                   # c state
                pltpu.VMEM((chunk, Bp, 4 * Hp), jnp.float32),        # x-gates
                pltpu.VMEM((chunk, Bp, Hp), jnp.float32),            # y chunk
            ],
        ),
        compiler_params=pltpu.CompilerParams(
            dimension_semantics=("arbitrary",)),     # recurrence is sequential
    )(x_tm, lens2d, wih_t, b_gate, whh_t, wout_t, bout)


# ----------------------------------------------------------------------------
# Wrapper (batch-first API, like the torch module with batch_first=True).
# ----------------------------------------------------------------------------
def lstm_forward(x, sequence_length, params, *, chunk=32):
    """x: (B, T, I) batch-first float input. sequence_length: list[int]."""
    B, T_in, I = x.shape
    T = int(max(sequence_length))             # pad_packed_sequence total_length
    x = x[:, :T, :].astype(jnp.float32)

    H = params["whh"].shape[1]
    Hp = _round_up(H, 128)                    # lane-dense hidden dim
    Bp = _round_up(B, 8)                      # full sublanes
    chunk = max(8, min(chunk, _round_up(T, 8)))
    Tp = _round_up(T, chunk)

    # --- padded, gate-aligned weights --------------------------------------
    wih_t = _pad_gate_cols(params["wih"].T, H, Hp)                   # (I, 4Hp)
    whh_t = jnp.pad(_pad_gate_cols(params["whh"].T, H, Hp),
                    ((0, Hp - H), (0, 0)))                           # (Hp, 4Hp)
    b_gate = _pad_gate_cols(
        (params["b_ih"] + params["b_hh"]).reshape(1, 4 * H), H, Hp)  # (1, 4Hp)
    wout_t = jnp.pad(params["w_out"].T, ((0, Hp - H), (0, Hp - H)))  # (Hp, Hp)
    bout = jnp.pad(params["b_out"], (0, Hp - H)).reshape(1, Hp)      # (1, Hp)

    # --- time-major, padded input and length vector ------------------------
    x_tm = jnp.transpose(x, (1, 0, 2))                               # (T, B, I)
    x_tm = jnp.pad(x_tm, ((0, Tp - T), (0, Bp - B), (0, 0)))         # (Tp, Bp, I)
    lens2d = jnp.pad(jnp.asarray(sequence_length, jnp.float32),
                     (0, Bp - B)).reshape(Bp, 1)                     # (Bp, 1)

    args = (x_tm, lens2d, wih_t, b_gate, whh_t, wout_t, bout)
    kw = dict(chunk=chunk, Bp=Bp, Hp=Hp, I=I, Tp=Tp)
    try:
        enc_p, h_fin, c_fin = _run_recurrence(
            *args, single_buffer_weights=True, **kw)
    except Exception:
        # pipeline_mode=pl.Buffered(1) unsupported on this jax build: fall back
        # to default double-buffering (extra VMEM for constant weights only).
        enc_p, h_fin, c_fin = _run_recurrence(
            *args, single_buffer_weights=False, **kw)

    enc = jnp.transpose(enc_p[:T, :B, :H], (1, 0, 2))   # (B, T, H) batch-first

    # h_proj / c_proj: negligible (B,H)x(H,H) GEMMs -> plain XLA (keeps their
    # weights out of the recurrence kernel's VMEM for the whole grid).
    h_n = h_fin[:B, :H] @ params["w_hp"].T + params["b_hp"]
    c_n = c_fin[:B, :H] @ params["w_cp"].T + params["b_cp"]

    # dropout(p=0) is identity in eval mode.
    return enc, (h_n, c_n)


# ----------------------------------------------------------------------------
# Init + pure-JAX reference (packed-sequence semantics) for verification.
# ----------------------------------------------------------------------------
def init_params(key, input_size, hidden_size):
    """Deterministic init mirroring nn.LSTM / nn.Linear U(-sqrt(k), sqrt(k))."""
    ks = jax.random.split(key, 10)
    u = lambda k, shape, bound: jax.random.uniform(
        k, shape, jnp.float32, minval=-bound, maxval=bound)
    kb = 1.0 / np.sqrt(hidden_size)
    return {
        "wih": u(ks[0], (4 * hidden_size, input_size), kb),
        "whh": u(ks[1], (4 * hidden_size, hidden_size), kb),
        "b_ih": u(ks[2], (4 * hidden_size,), kb),
        "b_hh": u(ks[3], (4 * hidden_size,), kb),
        "w_out": u(ks[4], (hidden_size, hidden_size), kb),
        "b_out": u(ks[5], (hidden_size,), kb),
        "w_hp": u(ks[6], (hidden_size, hidden_size), kb),
        "b_hp": u(ks[7], (hidden_size,), kb),
        "w_cp": u(ks[8], (hidden_size, hidden_size), kb),
        "b_cp": u(ks[9], (hidden_size,), kb),
    }


def ref_forward(x, sequence_length, p):
    B, T, _ = x.shape
    H = p["whh"].shape[1]
    lens = jnp.asarray(sequence_length, jnp.int32)
    h = jnp.zeros((B, H), jnp.float32)
    c = jnp.zeros((B, H), jnp.float32)
    outs = []
    for t in range(T):
        xt = x[:, t, :].astype(jnp.float32)
        gates = xt @ p["wih"].T + p["b_ih"] + h @ p["whh"].T + p["b_hh"]
        i_g = jax.nn.sigmoid(gates[:, 0 * H:1 * H])
        f_g = jax.nn.sigmoid(gates[:, 1 * H:2 * H])
        g_g = jnp.tanh(gates[:, 2 * H:3 * H])
        o_g = jax.nn.sigmoid(gates[:, 3 * H:4 * H])
        c_t = f_g * c + i_g * g_g
        h_t = o_g * jnp.tanh(c_t)
        m = (lens > t)[:, None]
        h = jnp.where(m, h_t, h)
        c = jnp.where(m, c_t, c)
        outs.append(jnp.where(m, h_t, 0.0))
    out = jnp.stack(outs, axis=1)
    enc = jax.nn.relu(out @ p["w_out"].T + p["b_out"])
    return enc, (h @ p["w_hp"].T + p["b_hp"], c @ p["w_cp"].T + p["b_cp"])


def _check(x, sequence_length, params, **kw):
    enc, (h_n, c_n) = lstm_forward(x, sequence_length, params, **kw)
    jax.block_until_ready((enc, h_n, c_n))
    T = int(max(sequence_length))
    enc_r, (h_r, c_r) = ref_forward(x[:, :T], sequence_length, params)
    np.testing.assert_allclose(np.asarray(enc), np.asarray(enc_r),
                               atol=2e-3, rtol=2e-3)
    np.testing.assert_allclose(np.asarray(h_n), np.asarray(h_r),
                               atol=2e-3, rtol=2e-3)
    np.testing.assert_allclose(np.asarray(c_n), np.asarray(c_r),
                               atol=2e-3, rtol=2e-3)


if __name__ == "__main__":
    I, H = 16, 32
    key = jax.random.PRNGKey(0)
    k_x1, k_x2, k_p = jax.random.split(key, 3)
    params = init_params(k_p, I, H)

    # Small config matching the module's typical use (single chunk).
    x1 = jax.random.normal(k_x1, (2, 8, I), jnp.float32)
    _check(x1, [8, 5], params)

    # Longer sequence: exercises multi-chunk grid, cross-chunk state carry,
    # mid-chunk masking and padded time steps.
    x2 = jax.random.normal(k_x2, (2, 40, I), jnp.float32)
    _check(x2, [40, 23], params)

    print("KERNEL_OK")
</pallas_src>

<mosaic_0001>
module attributes {stable_mosaic.version = 11 : i64} {
  func.func @_lstm_fused_kernel(%arg0: i32, %arg1: memref<8x8x16xf32, #tpu.memory_space<vmem>>, %arg2: memref<8x1xf32, #tpu.memory_space<vmem>>, %arg3: memref<16x512xf32, #tpu.memory_space<vmem>>, %arg4: memref<1x512xf32, #tpu.memory_space<vmem>>, %arg5: memref<128x512xf32, #tpu.memory_space<vmem>>, %arg6: memref<128x128xf32, #tpu.memory_space<vmem>>, %arg7: memref<1x128xf32, #tpu.memory_space<vmem>>, %arg8: memref<8x8x128xf32, #tpu.memory_space<vmem>>, %arg9: memref<8x128xf32, #tpu.memory_space<vmem>>, %arg10: memref<8x128xf32, #tpu.memory_space<vmem>>, %arg11: memref<8x128xf32, #tpu.memory_space<vmem>>, %arg12: memref<8x128xf32, #tpu.memory_space<vmem>>, %arg13: memref<8x8x512xf32, #tpu.memory_space<vmem>>, %arg14: memref<8x8x128xf32, #tpu.memory_space<vmem>>) attributes {dimension_semantics = [#tpu.dimension_semantics<arbitrary>], iteration_bounds = array<i64: 1>, scalar_prefetch = 0 : i64, scratch_operands = 4 : i64, tpu.core_type = #tpu.core_type<tc>, window_params = [{transform_indices = @transform_0, window_bounds = array<i64: 8, 8, 16>}, {pipeline_mode = #tpu.pipeline_mode<synchronous>, transform_indices = @transform_1, window_bounds = array<i64: 8, 1>}, {pipeline_mode = #tpu.pipeline_mode<synchronous>, transform_indices = @transform_2, window_bounds = array<i64: 16, 512>}, {pipeline_mode = #tpu.pipeline_mode<synchronous>, transform_indices = @transform_3, window_bounds = array<i64: 1, 512>}, {pipeline_mode = #tpu.pipeline_mode<synchronous>, transform_indices = @transform_4, window_bounds = array<i64: 128, 512>}, {pipeline_mode = #tpu.pipeline_mode<synchronous>, transform_indices = @transform_5, window_bounds = array<i64: 128, 128>}, {pipeline_mode = #tpu.pipeline_mode<synchronous>, transform_indices = @transform_6, window_bounds = array<i64: 1, 128>}, {transform_indices = @transform_7, window_bounds = array<i64: 8, 8, 128>}, {pipeline_mode = #tpu.pipeline_mode<synchronous>, transform_indices = @transform_8, window_bounds = array<i64: 8, 128>}, {pipeline_mode = #tpu.pipeline_mode<synchronous>, transform_indices = @transform_9, window_bounds = array<i64: 8, 128>}]} {
    %c0_i32 = arith.constant 0 : i32
    %0 = arith.cmpi eq, %arg0, %c0_i32 : i32
    %1 = arith.extui %0 : i1 to i32
    %c0_i32_0 = arith.constant 0 : i32
    %2 = arith.cmpi ne, %1, %c0_i32_0 : i32
    scf.if %2 {
      %cst_102 = arith.constant 0.000000e+00 : f32
      %431 = vector.broadcast %cst_102 : f32 to vector<8x128xf32>
      %c0_103 = arith.constant 0 : index
      %c0_104 = arith.constant 0 : index
      %432 = vector.load %arg11[%c0_103, %c0_104] : memref<8x128xf32, #tpu.memory_space<vmem>>, vector<8x128xf32>
      tpu.vector_store %arg11[%c0_103, %c0_104], %431 {strides = array<i32>} : memref<8x128xf32, #tpu.memory_space<vmem>>, vector<8x128xf32>,
      %cst_105 = arith.constant 0.000000e+00 : f32
      %433 = vector.broadcast %cst_105 : f32 to vector<8x128xf32>
      %c0_106 = arith.constant 0 : index
      %c0_107 = arith.constant 0 : index
      %434 = vector.load %arg12[%c0_106, %c0_107] : memref<8x128xf32, #tpu.memory_space<vmem>>, vector<8x128xf32>
      tpu.vector_store %arg12[%c0_106, %c0_107], %433 {strides = array<i32>} : memref<8x128xf32, #tpu.memory_space<vmem>>, vector<8x128xf32>,
    } else {
    }
    %c0 = arith.constant 0 : index
    %c0_1 = arith.constant 0 : index
    %c0_2 = arith.constant 0 : index
    %3 = vector.load %arg1[%c0, %c0_1, %c0_2] : memref<8x8x16xf32, #tpu.memory_space<vmem>>, vector<8x8x16xf32>
    %c0_3 = arith.constant 0 : index
    %c0_4 = arith.constant 0 : index
    %4 = vector.load %arg3[%c0_3, %c0_4] : memref<16x512xf32, #tpu.memory_space<vmem>>, vector<16x512xf32>
    %cst = arith.constant dense<0.000000e+00> : vector<8x8x512xf32>
    %5 = tpu.matmul %3, %4, %cst {dimension_numbers = #tpu.dot_dimension_numbers<[2], [0], [0, 1], [1], [0, 0, 0, 1, 1, 1], [], []>} : vector<8x8x16xf32>, vector<16x512xf32>, vector<8x8x512xf32> -> vector<8x8x512xf32>
    %c0_5 = arith.constant 0 : index
    %c0_6 = arith.constant 0 : index
    %6 = vector.load %arg4[%c0_5, %c0_6] : memref<1x512xf32, #tpu.memory_space<vmem>>, vector<1x512xf32>
    %7 = vector.shape_cast %6 : vector<1x512xf32> to vector<1x1x512xf32>
    %8 = vector.broadcast %7 : vector<1x1x512xf32> to vector<8x8x512xf32>
    %9 = arith.addf %5, %8 : vector<8x8x512xf32>
    %c0_7 = arith.constant 0 : index
    %c0_8 = arith.constant 0 : index
    %c0_9 = arith.constant 0 : index
    %10 = vector.load %arg13[%c0_7, %c0_8, %c0_9] : memref<8x8x512xf32, #tpu.memory_space<vmem>>, vector<8x8x512xf32>
    tpu.vector_store %arg13[%c0_7, %c0_8, %c0_9], %9 {strides = array<i32>} : memref<8x8x512xf32, #tpu.memory_space<vmem>>, vector<8x8x512xf32>,
    %c0_10 = arith.constant 0 : index
    %c0_11 = arith.constant 0 : index
    %11 = vector.load %arg5[%c0_10, %c0_11] : memref<128x512xf32, #tpu.memory_space<vmem>>, vector<128x512xf32>
    %c0_12 = arith.constant 0 : index
    %c0_13 = arith.constant 0 : index
    %12 = vector.load %arg2[%c0_12, %c0_13] : memref<8x1xf32, #tpu.memory_space<vmem>>, vector<8x1xf32>
    %c8_i32 = arith.constant 8 : i32
    %13 = arith.muli %arg0, %c8_i32 : i32
    %c0_14 = arith.constant 0 : index
    %c0_15 = arith.constant 0 : index
    %14 = vector.load %arg11[%c0_14, %c0_15] : memref<8x128xf32, #tpu.memory_space<vmem>>, vector<8x128xf32>
    %c0_16 = arith.constant 0 : index
    %c0_17 = arith.constant 0 : index
    %15 = vector.load %arg12[%c0_16, %c0_17] : memref<8x128xf32, #tpu.memory_space<vmem>>, vector<8x128xf32>
    %c0_i32_18 = arith.constant 0 : i32
    %16 = arith.index_cast %c0_i32_18 : i32 to index
    %c0_19 = arith.constant 0 : index
    %c0_20 = arith.constant 0 : index
    %17 = vector.load %arg13[%16, %c0_19, %c0_20] : memref<8x8x512xf32, #tpu.memory_space<vmem>>, vector<1x8x512xf32>
    %18 = vector.shape_cast %17 : vector<1x8x512xf32> to vector<8x512xf32>
    %cst_21 = arith.constant dense<0.000000e+00> : vector<8x512xf32>
    %19 = tpu.matmul %14, %11, %cst_21 {dimension_numbers = #tpu.dot_dimension_numbers<[1], [0], [0], [1], [0, 0, 1, 1], [], []>} : vector<8x128xf32>, vector<128x512xf32>, vector<8x512xf32> -> vector<8x512xf32>
    %20 = arith.addf %18, %19 : vector<8x512xf32>
    %21 = vector.extract_strided_slice %20 {offsets = [0, 0], sizes = [8, 128], strides = [1, 1]} : vector<8x512xf32> to vector<8x128xf32>
    %22 = arith.negf %21 : vector<8x128xf32>
    %23 = math.exp %22 : vector<8x128xf32>
    %cst_22 = arith.constant 1.000000e+00 : f32
    %24 = vector.broadcast %cst_22 : f32 to vector<8x128xf32>
    %25 = arith.addf %24, %23 : vector<8x128xf32>
    %26 = arith.divf %24, %25 : vector<8x128xf32>
    %27 = vector.extract_strided_slice %20 {offsets = [0, 128], sizes = [8, 128], strides = [1, 1]} : vector<8x512xf32> to vector<8x128xf32>
    %28 = arith.negf %27 : vector<8x128xf32>
    %29 = math.exp %28 : vector<8x128xf32>
    %cst_23 = arith.constant 1.000000e+00 : f32
    %30 = vector.broadcast %cst_23 : f32 to vector<8x128xf32>
    %31 = arith.addf %30, %29 : vector<8x128xf32>
    %32 = arith.divf %30, %31 : vector<8x128xf32>
    %33 = vector.extract_strided_slice %20 {offsets = [0, 256], sizes = [8, 128], strides = [1, 1]} : vector<8x512xf32> to vector<8x128xf32>
    %34 = math.tanh %33 : vector<8x128xf32>
    %35 = vector.extract_strided_slice %20 {offsets = [0, 384], sizes = [8, 128], strides = [1, 1]} : vector<8x512xf32> to vector<8x128xf32>
    %36 = arith.negf %35 : vector<8x128xf32>
    %37 = math.exp %36 : vector<8x128xf32>
    %cst_24 = arith.constant 1.000000e+00 : f32
    %38 = vector.broadcast %cst_24 : f32 to vector<8x128xf32>
    %39 = arith.addf %38, %37 : vector<8x128xf32>
    %40 = arith.divf %38, %39 : vector<8x128xf32>
    %41 = arith.mulf %32, %15 : vector<8x128xf32>
    %42 = arith.mulf %26, %34 : vector<8x128xf32>
    %43 = arith.addf %41, %42 : vector<8x128xf32>
    %44 = math.tanh %43 : vector<8x128xf32>
    %45 = arith.mulf %40, %44 : vector<8x128xf32>
    %46 = arith.addi %13, %c0_i32_18 : i32
    %47 = arith.sitofp %46 : i32 to f32
    %48 = vector.broadcast %47 : f32 to vector<8x1xf32>
    %49 = arith.cmpf ogt, %12, %48 : vector<8x1xf32>
    %50 = arith.extui %49 : vector<8x1xi1> to vector<8x1xi32>
    %51 = arith.sitofp %50 : vector<8x1xi32> to vector<8x1xf32>
    %52 = vector.broadcast %51 : vector<8x1xf32> to vector<8x128xf32>
    %53 = arith.mulf %52, %45 : vector<8x128xf32>
    %54 = arith.index_cast %c0_i32_18 : i32 to index
    %c0_25 = arith.constant 0 : index
    %c0_26 = arith.constant 0 : index
    %55 = vector.load %arg14[%54, %c0_25, %c0_26] : memref<8x8x128xf32, #tpu.memory_space<vmem>>, vector<1x8x128xf32>
    %56 = vector.shape_cast %55 : vector<1x8x128xf32> to vector<8x128xf32>
    %57 = vector.shape_cast %53 : vector<8x128xf32> to vector<1x8x128xf32>
    tpu.vector_store %arg14[%54, %c0_25, %c0_26], %57 {strides = array<i32>} : memref<8x8x128xf32, #tpu.memory_space<vmem>>, vector<1x8x128xf32>,
    %58 = arith.subf %45, %14 : vector<8x128xf32>
    %59 = vector.broadcast %51 : vector<8x1xf32> to vector<8x128xf32>
    %60 = arith.mulf %59, %58 : vector<8x128xf32>
    %61 = arith.addf %14, %60 : vector<8x128xf32>
    %62 = arith.subf %43, %15 : vector<8x128xf32>
    %63 = vector.broadcast %51 : vector<8x1xf32> to vector<8x128xf32>
    %64 = arith.mulf %63, %62 : vector<8x128xf32>
    %65 = arith.addf %15, %64 : vector<8x128xf32>
    %c1_i32 = arith.constant 1 : i32
    %66 = arith.index_cast %c1_i32 : i32 to index
    %c0_27 = arith.constant 0 : index
    %c0_28 = arith.constant 0 : index
    %67 = vector.load %arg13[%66, %c0_27, %c0_28] : memref<8x8x512xf32, #tpu.memory_space<vmem>>, vector<1x8x512xf32>
    %68 = vector.shape_cast %67 : vector<1x8x512xf32> to vector<8x512xf32>
    %cst_29 = arith.constant dense<0.000000e+00> : vector<8x512xf32>
    %69 = tpu.matmul %61, %11, %cst_29 {dimension_numbers = #tpu.dot_dimension_numbers<[1], [0], [0], [1], [0, 0, 1, 1], [], []>} : vector<8x128xf32>, vector<128x512xf32>, vector<8x512xf32> -> vector<8x512xf32>
    %70 = arith.addf %68, %69 : vector<8x512xf32>
    %71 = vector.extract_strided_slice %70 {offsets = [0, 0], sizes = [8, 128], strides = [1, 1]} : vector<8x512xf32> to vector<8x128xf32>
    %72 = arith.negf %71 : vector<8x128xf32>
    %73 = math.exp %72 : vector<8x128xf32>
    %cst_30 = arith.constant 1.000000e+00 : f32
    %74 = vector.broadcast %cst_30 : f32 to vector<8x128xf32>
    %75 = arith.addf %74, %73 : vector<8x128xf32>
    %76 = arith.divf %74, %75 : vector<8x128xf32>
    %77 = vector.extract_strided_slice %70 {offsets = [0, 128], sizes = [8, 128], strides = [1, 1]} : vector<8x512xf32> to vector<8x128xf32>
    %78 = arith.negf %77 : vector<8x128xf32>
    %79 = math.exp %78 : vector<8x128xf32>
    %cst_31 = arith.constant 1.000000e+00 : f32
    %80 = vector.broadcast %cst_31 : f32 to vector<8x128xf32>
    %81 = arith.addf %80, %79 : vector<8x128xf32>
    %82 = arith.divf %80, %81 : vector<8x128xf32>
    %83 = vector.extract_strided_slice %70 {offsets = [0, 256], sizes = [8, 128], strides = [1, 1]} : vector<8x512xf32> to vector<8x128xf32>
    %84 = math.tanh %83 : vector<8x128xf32>
    %85 = vector.extract_strided_slice %70 {offsets = [0, 384], sizes = [8, 128], strides = [1, 1]} : vector<8x512xf32> to vector<8x128xf32>
    %86 = arith.negf %85 : vector<8x128xf32>
    %87 = math.exp %86 : vector<8x128xf32>
    %cst_32 = arith.constant 1.000000e+00 : f32
    %88 = vector.broadcast %cst_32 : f32 to vector<8x128xf32>
    %89 = arith.addf %88, %87 : vector<8x128xf32>
    %90 = arith.divf %88, %89 : vector<8x128xf32>
    %91 = arith.mulf %82, %65 : vector<8x128xf32>
    %92 = arith.mulf %76, %84 : vector<8x128xf32>
    %93 = arith.addf %91, %92 : vector<8x128xf32>
    %94 = math.tanh %93 : vector<8x128xf32>
    %95 = arith.mulf %90, %94 : vector<8x128xf32>
    %96 = arith.addi %13, %c1_i32 : i32
    %97 = arith.sitofp %96 : i32 to f32
    %98 = vector.broadcast %97 : f32 to vector<8x1xf32>
    %99 = arith.cmpf ogt, %12, %98 : vector<8x1xf32>
    %100 = arith.extui %99 : vector<8x1xi1> to vector<8x1xi32>
    %101 = arith.sitofp %100 : vector<8x1xi32> to vector<8x1xf32>
    %102 = vector.broadcast %101 : vector<8x1xf32> to vector<8x128xf32>
    %103 = arith.mulf %102, %95 : vector<8x128xf32>
    %104 = arith.index_cast %c1_i32 : i32 to index
    %c0_33 = arith.constant 0 : index
    %c0_34 = arith.constant 0 : index
    %105 = vector.load %arg14[%104, %c0_33, %c0_34] : memref<8x8x128xf32, #tpu.memory_space<vmem>>, vector<1x8x128xf32>
    %106 = vector.shape_cast %105 : vector<1x8x128xf32> to vector<8x128xf32>
    %107 = vector.shape_cast %103 : vector<8x128xf32> to vector<1x8x128xf32>
    tpu.vector_store %arg14[%104, %c0_33, %c0_34], %107 {strides = array<i32>} : memref<8x8x128xf32, #tpu.memory_space<vmem>>, vector<1x8x128xf32>,
    %108 = arith.subf %95, %61 : vector<8x128xf32>
    %109 = vector.broadcast %101 : vector<8x1xf32> to vector<8x128xf32>
    %110 = arith.mulf %109, %108 : vector<8x128xf32>
    %111 = arith.addf %61, %110 : vector<8x128xf32>
    %112 = arith.subf %93, %65 : vector<8x128xf32>
    %113 = vector.broadcast %101 : vector<8x1xf32> to vector<8x128xf32>
    %114 = arith.mulf %113, %112 : vector<8x128xf32>
    %115 = arith.addf %65, %114 : vector<8x128xf32>
    %c2_i32 = arith.constant 2 : i32
    %116 = arith.index_cast %c2_i32 : i32 to index
    %c0_35 = arith.constant 0 : index
    %c0_36 = arith.constant 0 : index
    %117 = vector.load %arg13[%116, %c0_35, %c0_36] : memref<8x8x512xf32, #tpu.memory_space<vmem>>, vector<1x8x512xf32>
    %118 = vector.shape_cast %117 : vector<1x8x512xf32> to vector<8x512xf32>
    %cst_37 = arith.constant dense<0.000000e+00> : vector<8x512xf32>
    %119 = tpu.matmul %111, %11, %cst_37 {dimension_numbers = #tpu.dot_dimension_numbers<[1], [0], [0], [1], [0, 0, 1, 1], [], []>} : vector<8x128xf32>, vector<128x512xf32>, vector<8x512xf32> -> vector<8x512xf32>
    %120 = arith.addf %118, %119 : vector<8x512xf32>
    %121 = vector.extract_strided_slice %120 {offsets = [0, 0], sizes = [8, 128], strides = [1, 1]} : vector<8x512xf32> to vector<8x128xf32>
    %122 = arith.negf %121 : vector<8x128xf32>
    %123 = math.exp %122 : vector<8x128xf32>
    %cst_38 = arith.constant 1.000000e+00 : f32
    %124 = vector.broadcast %cst_38 : f32 to vector<8x128xf32>
    %125 = arith.addf %124, %123 : vector<8x128xf32>
    %126 = arith.divf %124, %125 : vector<8x128xf32>
    %127 = vector.extract_strided_slice %120 {offsets = [0, 128], sizes = [8, 128], strides = [1, 1]} : vector<8x512xf32> to vector<8x128xf32>
    %128 = arith.negf %127 : vector<8x128xf32>
    %129 = math.exp %128 : vector<8x128xf32>
    %cst_39 = arith.constant 1.000000e+00 : f32
    %130 = vector.broadcast %cst_39 : f32 to vector<8x128xf32>
    %131 = arith.addf %130, %129 : vector<8x128xf32>
    %132 = arith.divf %130, %131 : vector<8x128xf32>
    %133 = vector.extract_strided_slice %120 {offsets = [0, 256], sizes = [8, 128], strides = [1, 1]} : vector<8x512xf32> to vector<8x128xf32>
    %134 = math.tanh %133 : vector<8x128xf32>
    %135 = vector.extract_strided_slice %120 {offsets = [0, 384], sizes = [8, 128], strides = [1, 1]} : vector<8x512xf32> to vector<8x128xf32>
    %136 = arith.negf %135 : vector<8x128xf32>
    %137 = math.exp %136 : vector<8x128xf32>
    %cst_40 = arith.constant 1.000000e+00 : f32
    %138 = vector.broadcast %cst_40 : f32 to vector<8x128xf32>
    %139 = arith.addf %138, %137 : vector<8x128xf32>
    %140 = arith.divf %138, %139 : vector<8x128xf32>
    %141 = arith.mulf %132, %115 : vector<8x128xf32>
    %142 = arith.mulf %126, %134 : vector<8x128xf32>
    %143 = arith.addf %141, %142 : vector<8x128xf32>
    %144 = math.tanh %143 : vector<8x128xf32>
    %145 = arith.mulf %140, %144 : vector<8x128xf32>
    %146 = arith.addi %13, %c2_i32 : i32
    %147 = arith.sitofp %146 : i32 to f32
    %148 = vector.broadcast %147 : f32 to vector<8x1xf32>
    %149 = arith.cmpf ogt, %12, %148 : vector<8x1xf32>
    %150 = arith.extui %149 : vector<8x1xi1> to vector<8x1xi32>
    %151 = arith.sitofp %150 : vector<8x1xi32> to vector<8x1xf32>
    %152 = vector.broadcast %151 : vector<8x1xf32> to vector<8x128xf32>
    %153 = arith.mulf %152, %145 : vector<8x128xf32>
    %154 = arith.index_cast %c2_i32 : i32 to index
    %c0_41 = arith.constant 0 : index
    %c0_42 = arith.constant 0 : index
    %155 = vector.load %arg14[%154, %c0_41, %c0_42] : memref<8x8x128xf32, #tpu.memory_space<vmem>>, vector<1x8x128xf32>
    %156 = vector.shape_cast %155 : vector<1x8x128xf32> to vector<8x128xf32>
    %157 = vector.shape_cast %153 : vector<8x128xf32> to vector<1x8x128xf32>
    tpu.vector_store %arg14[%154, %c0_41, %c0_42], %157 {strides = array<i32>} : memref<8x8x128xf32, #tpu.memory_space<vmem>>, vector<1x8x128xf32>,
    %158 = arith.subf %145, %111 : vector<8x128xf32>
    %159 = vector.broadcast %151 : vector<8x1xf32> to vector<8x128xf32>
    %160 = arith.mulf %159, %158 : vector<8x128xf32>
    %161 = arith.addf %111, %160 : vector<8x128xf32>
    %162 = arith.subf %143, %115 : vector<8x128xf32>
    %163 = vector.broadcast %151 : vector<8x1xf32> to vector<8x128xf32>
    %164 = arith.mulf %163, %162 : vector<8x128xf32>
    %165 = arith.addf %115, %164 : vector<8x128xf32>
    %c3_i32 = arith.constant 3 : i32
    %166 = arith.index_cast %c3_i32 : i32 to index
    %c0_43 = arith.constant 0 : index
    %c0_44 = arith.constant 0 : index
    %167 = vector.load %arg13[%166, %c0_43, %c0_44] : memref<8x8x512xf32, #tpu.memory_space<vmem>>, vector<1x8x512xf32>
    %168 = vector.shape_cast %167 : vector<1x8x512xf32> to vector<8x512xf32>
    %cst_45 = arith.constant dense<0.000000e+00> : vector<8x512xf32>
    %169 = tpu.matmul %161, %11, %cst_45 {dimension_numbers = #tpu.dot_dimension_numbers<[1], [0], [0], [1], [0, 0, 1, 1], [], []>} : vector<8x128xf32>, vector<128x512xf32>, vector<8x512xf32> -> vector<8x512xf32>
    %170 = arith.addf %168, %169 : vector<8x512xf32>
    %171 = vector.extract_strided_slice %170 {offsets = [0, 0], sizes = [8, 128], strides = [1, 1]} : vector<8x512xf32> to vector<8x128xf32>
    %172 = arith.negf %171 : vector<8x128xf32>
    %173 = math.exp %172 : vector<8x128xf32>
    %cst_46 = arith.constant 1.000000e+00 : f32
    %174 = vector.broadcast %cst_46 : f32 to vector<8x128xf32>
    %175 = arith.addf %174, %173 : vector<8x128xf32>
    %176 = arith.divf %174, %175 : vector<8x128xf32>
    %177 = vector.extract_strided_slice %170 {offsets = [0, 128], sizes = [8, 128], strides = [1, 1]} : vector<8x512xf32> to vector<8x128xf32>
    %178 = arith.negf %177 : vector<8x128xf32>
    %179 = math.exp %178 : vector<8x128xf32>
    %cst_47 = arith.constant 1.000000e+00 : f32
    %180 = vector.broadcast %cst_47 : f32 to vector<8x128xf32>
    %181 = arith.addf %180, %179 : vector<8x128xf32>
    %182 = arith.divf %180, %181 : vector<8x128xf32>
    %183 = vector.extract_strided_slice %170 {offsets = [0, 256], sizes = [8, 128], strides = [1, 1]} : vector<8x512xf32> to vector<8x128xf32>
    %184 = math.tanh %183 : vector<8x128xf32>
    %185 = vector.extract_strided_slice %170 {offsets = [0, 384], sizes = [8, 128], strides = [1, 1]} : vector<8x512xf32> to vector<8x128xf32>
    %186 = arith.negf %185 : vector<8x128xf32>
    %187 = math.exp %186 : vector<8x128xf32>
    %cst_48 = arith.constant 1.000000e+00 : f32
    %188 = vector.broadcast %cst_48 : f32 to vector<8x128xf32>
    %189 = arith.addf %188, %187 : vector<8x128xf32>
    %190 = arith.divf %188, %189 : vector<8x128xf32>
    %191 = arith.mulf %182, %165 : vector<8x128xf32>
    %192 = arith.mulf %176, %184 : vector<8x128xf32>
    %193 = arith.addf %191, %192 : vector<8x128xf32>
    %194 = math.tanh %193 : vector<8x128xf32>
    %195 = arith.mulf %190, %194 : vector<8x128xf32>
    %196 = arith.addi %13, %c3_i32 : i32
    %197 = arith.sitofp %196 : i32 to f32
    %198 = vector.broadcast %197 : f32 to vector<8x1xf32>
    %199 = arith.cmpf ogt, %12, %198 : vector<8x1xf32>
    %200 = arith.extui %199 : vector<8x1xi1> to vector<8x1xi32>
    %201 = arith.sitofp %200 : vector<8x1xi32> to vector<8x1xf32>
    %202 = vector.broadcast %201 : vector<8x1xf32> to vector<8x128xf32>
    %203 = arith.mulf %202, %195 : vector<8x128xf32>
    %204 = arith.index_cast %c3_i32 : i32 to index
    %c0_49 = arith.constant 0 : index
    %c0_50 = arith.constant 0 : index
    %205 = vector.load %arg14[%204, %c0_49, %c0_50] : memref<8x8x128xf32, #tpu.memory_space<vmem>>, vector<1x8x128xf32>
    %206 = vector.shape_cast %205 : vector<1x8x128xf32> to vector<8x128xf32>
    %207 = vector.shape_cast %203 : vector<8x128xf32> to vector<1x8x128xf32>
    tpu.vector_store %arg14[%204, %c0_49, %c0_50], %207 {strides = array<i32>} : memref<8x8x128xf32, #tpu.memory_space<vmem>>, vector<1x8x128xf32>,
    %208 = arith.subf %195, %161 : vector<8x128xf32>
    %209 = vector.broadcast %201 : vector<8x1xf32> to vector<8x128xf32>
    %210 = arith.mulf %209, %208 : vector<8x128xf32>
    %211 = arith.addf %161, %210 : vector<8x128xf32>
    %212 = arith.subf %193, %165 : vector<8x128xf32>
    %213 = vector.broadcast %201 : vector<8x1xf32> to vector<8x128xf32>
    %214 = arith.mulf %213, %212 : vector<8x128xf32>
    %215 = arith.addf %165, %214 : vector<8x128xf32>
    %c4_i32 = arith.constant 4 : i32
    %216 = arith.index_cast %c4_i32 : i32 to index
    %c0_51 = arith.constant 0 : index
    %c0_52 = arith.constant 0 : index
    %217 = vector.load %arg13[%216, %c0_51, %c0_52] : memref<8x8x512xf32, #tpu.memory_space<vmem>>, vector<1x8x512xf32>
    %218 = vector.shape_cast %217 : vector<1x8x512xf32> to vector<8x512xf32>
    %cst_53 = arith.constant dense<0.000000e+00> : vector<8x512xf32>
    %219 = tpu.matmul %211, %11, %cst_53 {dimension_numbers = #tpu.dot_dimension_numbers<[1], [0], [0], [1], [0, 0, 1, 1], [], []>} : vector<8x128xf32>, vector<128x512xf32>, vector<8x512xf32> -> vector<8x512xf32>
    %220 = arith.addf %218, %219 : vector<8x512xf32>
    %221 = vector.extract_strided_slice %220 {offsets = [0, 0], sizes = [8, 128], strides = [1, 1]} : vector<8x512xf32> to vector<8x128xf32>
    %222 = arith.negf %221 : vector<8x128xf32>
    %223 = math.exp %222 : vector<8x128xf32>
    %cst_54 = arith.constant 1.000000e+00 : f32
    %224 = vector.broadcast %cst_54 : f32 to vector<8x128xf32>
    %225 = arith.addf %224, %223 : vector<8x128xf32>
    %226 = arith.divf %224, %225 : vector<8x128xf32>
    %227 = vector.extract_strided_slice %220 {offsets = [0, 128], sizes = [8, 128], strides = [1, 1]} : vector<8x512xf32> to vector<8x128xf32>
    %228 = arith.negf %227 : vector<8x128xf32>
    %229 = math.exp %228 : vector<8x128xf32>
    %cst_55 = arith.constant 1.000000e+00 : f32
    %230 = vector.broadcast %cst_55 : f32 to vector<8x128xf32>
    %231 = arith.addf %230, %229 : vector<8x128xf32>
    %232 = arith.divf %230, %231 : vector<8x128xf32>
    %233 = vector.extract_strided_slice %220 {offsets = [0, 256], sizes = [8, 128], strides = [1, 1]} : vector<8x512xf32> to vector<8x128xf32>
    %234 = math.tanh %233 : vector<8x128xf32>
    %235 = vector.extract_strided_slice %220 {offsets = [0, 384], sizes = [8, 128], strides = [1, 1]} : vector<8x512xf32> to vector<8x128xf32>
    %236 = arith.negf %235 : vector<8x128xf32>
    %237 = math.exp %236 : vector<8x128xf32>
    %cst_56 = arith.constant 1.000000e+00 : f32
    %238 = vector.broadcast %cst_56 : f32 to vector<8x128xf32>
    %239 = arith.addf %238, %237 : vector<8x128xf32>
    %240 = arith.divf %238, %239 : vector<8x128xf32>
    %241 = arith.mulf %232, %215 : vector<8x128xf32>
    %242 = arith.mulf %226, %234 : vector<8x128xf32>
    %243 = arith.addf %241, %242 : vector<8x128xf32>
    %244 = math.tanh %243 : vector<8x128xf32>
    %245 = arith.mulf %240, %244 : vector<8x128xf32>
    %246 = arith.addi %13, %c4_i32 : i32
    %247 = arith.sitofp %246 : i32 to f32
    %248 = vector.broadcast %247 : f32 to vector<8x1xf32>
    %249 = arith.cmpf ogt, %12, %248 : vector<8x1xf32>
    %250 = arith.extui %249 : vector<8x1xi1> to vector<8x1xi32>
    %251 = arith.sitofp %250 : vector<8x1xi32> to vector<8x1xf32>
    %252 = vector.broadcast %251 : vector<8x1xf32> to vector<8x128xf32>
    %253 = arith.mulf %252, %245 : vector<8x128xf32>
    %254 = arith.index_cast %c4_i32 : i32 to index
    %c0_57 = arith.constant 0 : index
    %c0_58 = arith.constant 0 : index
    %255 = vector.load %arg14[%254, %c0_57, %c0_58] : memref<8x8x128xf32, #tpu.memory_space<vmem>>, vector<1x8x128xf32>
    %256 = vector.shape_cast %255 : vector<1x8x128xf32> to vector<8x128xf32>
    %257 = vector.shape_cast %253 : vector<8x128xf32> to vector<1x8x128xf32>
    tpu.vector_store %arg14[%254, %c0_57, %c0_58], %257 {strides = array<i32>} : memref<8x8x128xf32, #tpu.memory_space<vmem>>, vector<1x8x128xf32>,
    %258 = arith.subf %245, %211 : vector<8x128xf32>
    %259 = vector.broadcast %251 : vector<8x1xf32> to vector<8x128xf32>
    %260 = arith.mulf %259, %258 : vector<8x128xf32>
    %261 = arith.addf %211, %260 : vector<8x128xf32>
    %262 = arith.subf %243, %215 : vector<8x128xf32>
    %263 = vector.broadcast %251 : vector<8x1xf32> to vector<8x128xf32>
    %264 = arith.mulf %263, %262 : vector<8x128xf32>
    %265 = arith.addf %215, %264 : vector<8x128xf32>
    %c5_i32 = arith.constant 5 : i32
    %266 = arith.index_cast %c5_i32 : i32 to index
    %c0_59 = arith.constant 0 : index
    %c0_60 = arith.constant 0 : index
    %267 = vector.load %arg13[%266, %c0_59, %c0_60] : memref<8x8x512xf32, #tpu.memory_space<vmem>>, vector<1x8x512xf32>
    %268 = vector.shape_cast %267 : vector<1x8x512xf32> to vector<8x512xf32>
    %cst_61 = arith.constant dense<0.000000e+00> : vector<8x512xf32>
    %269 = tpu.matmul %261, %11, %cst_61 {dimension_numbers = #tpu.dot_dimension_numbers<[1], [0], [0], [1], [0, 0, 1, 1], [], []>} : vector<8x128xf32>, vector<128x512xf32>, vector<8x512xf32> -> vector<8x512xf32>
    %270 = arith.addf %268, %269 : vector<8x512xf32>
    %271 = vector.extract_strided_slice %270 {offsets = [0, 0], sizes = [8, 128], strides = [1, 1]} : vector<8x512xf32> to vector<8x128xf32>
    %272 = arith.negf %271 : vector<8x128xf32>
    %273 = math.exp %272 : vector<8x128xf32>
    %cst_62 = arith.constant 1.000000e+00 : f32
    %274 = vector.broadcast %cst_62 : f32 to vector<8x128xf32>
    %275 = arith.addf %274, %273 : vector<8x128xf32>
    %276 = arith.divf %274, %275 : vector<8x128xf32>
    %277 = vector.extract_strided_slice %270 {offsets = [0, 128], sizes = [8, 128], strides = [1, 1]} : vector<8x512xf32> to vector<8x128xf32>
    %278 = arith.negf %277 : vector<8x128xf32>
    %279 = math.exp %278 : vector<8x128xf32>
    %cst_63 = arith.constant 1.000000e+00 : f32
    %280 = vector.broadcast %cst_63 : f32 to vector<8x128xf32>
    %281 = arith.addf %280, %279 : vector<8x128xf32>
    %282 = arith.divf %280, %281 : vector<8x128xf32>
    %283 = vector.extract_strided_slice %270 {offsets = [0, 256], sizes = [8, 128], strides = [1, 1]} : vector<8x512xf32> to vector<8x128xf32>
    %284 = math.tanh %283 : vector<8x128xf32>
    %285 = vector.extract_strided_slice %270 {offsets = [0, 384], sizes = [8, 128], strides = [1, 1]} : vector<8x512xf32> to vector<8x128xf32>
    %286 = arith.negf %285 : vector<8x128xf32>
    %287 = math.exp %286 : vector<8x128xf32>
    %cst_64 = arith.constant 1.000000e+00 : f32
    %288 = vector.broadcast %cst_64 : f32 to vector<8x128xf32>
    %289 = arith.addf %288, %287 : vector<8x128xf32>
    %290 = arith.divf %288, %289 : vector<8x128xf32>
    %291 = arith.mulf %282, %265 : vector<8x128xf32>
    %292 = arith.mulf %276, %284 : vector<8x128xf32>
    %293 = arith.addf %291, %292 : vector<8x128xf32>
    %294 = math.tanh %293 : vector<8x128xf32>
    %295 = arith.mulf %290, %294 : vector<8x128xf32>
    %296 = arith.addi %13, %c5_i32 : i32
    %297 = arith.sitofp %296 : i32 to f32
    %298 = vector.broadcast %297 : f32 to vector<8x1xf32>
    %299 = arith.cmpf ogt, %12, %298 : vector<8x1xf32>
    %300 = arith.extui %299 : vector<8x1xi1> to vector<8x1xi32>
    %301 = arith.sitofp %300 : vector<8x1xi32> to vector<8x1xf32>
    %302 = vector.broadcast %301 : vector<8x1xf32> to vector<8x128xf32>
    %303 = arith.mulf %302, %295 : vector<8x128xf32>
    %304 = arith.index_cast %c5_i32 : i32 to index
    %c0_65 = arith.constant 0 : index
    %c0_66 = arith.constant 0 : index
    %305 = vector.load %arg14[%304, %c0_65, %c0_66] : memref<8x8x128xf32, #tpu.memory_space<vmem>>, vector<1x8x128xf32>
    %306 = vector.shape_cast %305 : vector<1x8x128xf32> to vector<8x128xf32>
    %307 = vector.shape_cast %303 : vector<8x128xf32> to vector<1x8x128xf32>
    tpu.vector_store %arg14[%304, %c0_65, %c0_66], %307 {strides = array<i32>} : memref<8x8x128xf32, #tpu.memory_space<vmem>>, vector<1x8x128xf32>,
    %308 = arith.subf %295, %261 : vector<8x128xf32>
    %309 = vector.broadcast %301 : vector<8x1xf32> to vector<8x128xf32>
    %310 = arith.mulf %309, %308 : vector<8x128xf32>
    %311 = arith.addf %261, %310 : vector<8x128xf32>
    %312 = arith.subf %293, %265 : vector<8x128xf32>
    %313 = vector.broadcast %301 : vector<8x1xf32> to vector<8x128xf32>
    %314 = arith.mulf %313, %312 : vector<8x128xf32>
    %315 = arith.addf %265, %314 : vector<8x128xf32>
    %c6_i32 = arith.constant 6 : i32
    %316 = arith.index_cast %c6_i32 : i32 to index
    %c0_67 = arith.constant 0 : index
    %c0_68 = arith.constant 0 : index
    %317 = vector.load %arg13[%316, %c0_67, %c0_68] : memref<8x8x512xf32, #tpu.memory_space<vmem>>, vector<1x8x512xf32>
    %318 = vector.shape_cast %317 : vector<1x8x512xf32> to vector<8x512xf32>
    %cst_69 = arith.constant dense<0.000000e+00> : vector<8x512xf32>
    %319 = tpu.matmul %311, %11, %cst_69 {dimension_numbers = #tpu.dot_dimension_numbers<[1], [0], [0], [1], [0, 0, 1, 1], [], []>} : vector<8x128xf32>, vector<128x512xf32>, vector<8x512xf32> -> vector<8x512xf32>
    %320 = arith.addf %318, %319 : vector<8x512xf32>
    %321 = vector.extract_strided_slice %320 {offsets = [0, 0], sizes = [8, 128], strides = [1, 1]} : vector<8x512xf32> to vector<8x128xf32>
    %322 = arith.negf %321 : vector<8x128xf32>
    %323 = math.exp %322 : vector<8x128xf32>
    %cst_70 = arith.constant 1.000000e+00 : f32
    %324 = vector.broadcast %cst_70 : f32 to vector<8x128xf32>
    %325 = arith.addf %324, %323 : vector<8x128xf32>
    %326 = arith.divf %324, %325 : vector<8x128xf32>
    %327 = vector.extract_strided_slice %320 {offsets = [0, 128], sizes = [8, 128], strides = [1, 1]} : vector<8x512xf32> to vector<8x128xf32>
    %328 = arith.negf %327 : vector<8x128xf32>
    %329 = math.exp %328 : vector<8x128xf32>
    %cst_71 = arith.constant 1.000000e+00 : f32
    %330 = vector.broadcast %cst_71 : f32 to vector<8x128xf32>
    %331 = arith.addf %330, %329 : vector<8x128xf32>
    %332 = arith.divf %330, %331 : vector<8x128xf32>
    %333 = vector.extract_strided_slice %320 {offsets = [0, 256], sizes = [8, 128], strides = [1, 1]} : vector<8x512xf32> to vector<8x128xf32>
    %334 = math.tanh %333 : vector<8x128xf32>
    %335 = vector.extract_strided_slice %320 {offsets = [0, 384], sizes = [8, 128], strides = [1, 1]} : vector<8x512xf32> to vector<8x128xf32>
    %336 = arith.negf %335 : vector<8x128xf32>
    %337 = math.exp %336 : vector<8x128xf32>
    %cst_72 = arith.constant 1.000000e+00 : f32
    %338 = vector.broadcast %cst_72 : f32 to vector<8x128xf32>
    %339 = arith.addf %338, %337 : vector<8x128xf32>
    %340 = arith.divf %338, %339 : vector<8x128xf32>
    %341 = arith.mulf %332, %315 : vector<8x128xf32>
    %342 = arith.mulf %326, %334 : vector<8x128xf32>
    %343 = arith.addf %341, %342 : vector<8x128xf32>
    %344 = math.tanh %343 : vector<8x128xf32>
    %345 = arith.mulf %340, %344 : vector<8x128xf32>
    %346 = arith.addi %13, %c6_i32 : i32
    %347 = arith.sitofp %346 : i32 to f32
    %348 = vector.broadcast %347 : f32 to vector<8x1xf32>
    %349 = arith.cmpf ogt, %12, %348 : vector<8x1xf32>
    %350 = arith.extui %349 : vector<8x1xi1> to vector<8x1xi32>
    %351 = arith.sitofp %350 : vector<8x1xi32> to vector<8x1xf32>
    %352 = vector.broadcast %351 : vector<8x1xf32> to vector<8x128xf32>
    %353 = arith.mulf %352, %345 : vector<8x128xf32>
    %354 = arith.index_cast %c6_i32 : i32 to index
    %c0_73 = arith.constant 0 : index
    %c0_74 = arith.constant 0 : index
    %355 = vector.load %arg14[%354, %c0_73, %c0_74] : memref<8x8x128xf32, #tpu.memory_space<vmem>>, vector<1x8x128xf32>
    %356 = vector.shape_cast %355 : vector<1x8x128xf32> to vector<8x128xf32>
    %357 = vector.shape_cast %353 : vector<8x128xf32> to vector<1x8x128xf32>
    tpu.vector_store %arg14[%354, %c0_73, %c0_74], %357 {strides = array<i32>} : memref<8x8x128xf32, #tpu.memory_space<vmem>>, vector<1x8x128xf32>,
    %358 = arith.subf %345, %311 : vector<8x128xf32>
    %359 = vector.broadcast %351 : vector<8x1xf32> to vector<8x128xf32>
    %360 = arith.mulf %359, %358 : vector<8x128xf32>
    %361 = arith.addf %311, %360 : vector<8x128xf32>
    %362 = arith.subf %343, %315 : vector<8x128xf32>
    %363 = vector.broadcast %351 : vector<8x1xf32> to vector<8x128xf32>
    %364 = arith.mulf %363, %362 : vector<8x128xf32>
    %365 = arith.addf %315, %364 : vector<8x128xf32>
    %c7_i32 = arith.constant 7 : i32
    %366 = arith.index_cast %c7_i32 : i32 to index
    %c0_75 = arith.constant 0 : index
    %c0_76 = arith.constant 0 : index
    %367 = vector.load %arg13[%366, %c0_75, %c0_76] : memref<8x8x512xf32, #tpu.memory_space<vmem>>, vector<1x8x512xf32>
    %368 = vector.shape_cast %367 : vector<1x8x512xf32> to vector<8x512xf32>
    %cst_77 = arith.constant dense<0.000000e+00> : vector<8x512xf32>
    %369 = tpu.matmul %361, %11, %cst_77 {dimension_numbers = #tpu.dot_dimension_numbers<[1], [0], [0], [1], [0, 0, 1, 1], [], []>} : vector<8x128xf32>, vector<128x512xf32>, vector<8x512xf32> -> vector<8x512xf32>
    %370 = arith.addf %368, %369 : vector<8x512xf32>
    %371 = vector.extract_strided_slice %370 {offsets = [0, 0], sizes = [8, 128], strides = [1, 1]} : vector<8x512xf32> to vector<8x128xf32>
    %372 = arith.negf %371 : vector<8x128xf32>
    %373 = math.exp %372 : vector<8x128xf32>
    %cst_78 = arith.constant 1.000000e+00 : f32
    %374 = vector.broadcast %cst_78 : f32 to vector<8x128xf32>
    %375 = arith.addf %374, %373 : vector<8x128xf32>
    %376 = arith.divf %374, %375 : vector<8x128xf32>
    %377 = vector.extract_strided_slice %370 {offsets = [0, 128], sizes = [8, 128], strides = [1, 1]} : vector<8x512xf32> to vector<8x128xf32>
    %378 = arith.negf %377 : vector<8x128xf32>
    %379 = math.exp %378 : vector<8x128xf32>
    %cst_79 = arith.constant 1.000000e+00 : f32
    %380 = vector.broadcast %cst_79 : f32 to vector<8x128xf32>
    %381 = arith.addf %380, %379 : vector<8x128xf32>
    %382 = arith.divf %380, %381 : vector<8x128xf32>
    %383 = vector.extract_strided_slice %370 {offsets = [0, 256], sizes = [8, 128], strides = [1, 1]} : vector<8x512xf32> to vector<8x128xf32>
    %384 = math.tanh %383 : vector<8x128xf32>
    %385 = vector.extract_strided_slice %370 {offsets = [0, 384], sizes = [8, 128], strides = [1, 1]} : vector<8x512xf32> to vector<8x128xf32>
    %386 = arith.negf %385 : vector<8x128xf32>
    %387 = math.exp %386 : vector<8x128xf32>
    %cst_80 = arith.constant 1.000000e+00 : f32
    %388 = vector.broadcast %cst_80 : f32 to vector<8x128xf32>
    %389 = arith.addf %388, %387 : vector<8x128xf32>
    %390 = arith.divf %388, %389 : vector<8x128xf32>
    %391 = arith.mulf %382, %365 : vector<8x128xf32>
    %392 = arith.mulf %376, %384 : vector<8x128xf32>
    %393 = arith.addf %391, %392 : vector<8x128xf32>
    %394 = math.tanh %393 : vector<8x128xf32>
    %395 = arith.mulf %390, %394 : vector<8x128xf32>
    %396 = arith.addi %13, %c7_i32 : i32
    %397 = arith.sitofp %396 : i32 to f32
    %398 = vector.broadcast %397 : f32 to vector<8x1xf32>
    %399 = arith.cmpf ogt, %12, %398 : vector<8x1xf32>
    %400 = arith.extui %399 : vector<8x1xi1> to vector<8x1xi32>
    %401 = arith.sitofp %400 : vector<8x1xi32> to vector<8x1xf32>
    %402 = vector.broadcast %401 : vector<8x1xf32> to vector<8x128xf32>
    %403 = arith.mulf %402, %395 : vector<8x128xf32>
    %404 = arith.index_cast %c7_i32 : i32 to index
    %c0_81 = arith.constant 0 : index
    %c0_82 = arith.constant 0 : index
    %405 = vector.load %arg14[%404, %c0_81, %c0_82] : memref<8x8x128xf32, #tpu.memory_space<vmem>>, vector<1x8x128xf32>
    %406 = vector.shape_cast %405 : vector<1x8x128xf32> to vector<8x128xf32>
    %407 = vector.shape_cast %403 : vector<8x128xf32> to vector<1x8x128xf32>
    tpu.vector_store %arg14[%404, %c0_81, %c0_82], %407 {strides = array<i32>} : memref<8x8x128xf32, #tpu.memory_space<vmem>>, vector<1x8x128xf32>,
    %408 = arith.subf %395, %361 : vector<8x128xf32>
    %409 = vector.broadcast %401 : vector<8x1xf32> to vector<8x128xf32>
    %410 = arith.mulf %409, %408 : vector<8x128xf32>
    %411 = arith.addf %361, %410 : vector<8x128xf32>
    %412 = arith.subf %393, %365 : vector<8x128xf32>
    %413 = vector.broadcast %401 : vector<8x1xf32> to vector<8x128xf32>
    %414 = arith.mulf %413, %412 : vector<8x128xf32>
    %415 = arith.addf %365, %414 : vector<8x128xf32>
    %c8_i32_83 = arith.constant 8 : i32
    %c0_84 = arith.constant 0 : index
    %c0_85 = arith.constant 0 : index
    %416 = vector.load %arg11[%c0_84, %c0_85] : memref<8x128xf32, #tpu.memory_space<vmem>>, vector<8x128xf32>
    tpu.vector_store %arg11[%c0_84, %c0_85], %411 {strides = array<i32>} : memref<8x128xf32, #tpu.memory_space<vmem>>, vector<8x128xf32>,
    %c0_86 = arith.constant 0 : index
    %c0_87 = arith.constant 0 : index
    %417 = vector.load %arg12[%c0_86, %c0_87] : memref<8x128xf32, #tpu.memory_space<vmem>>, vector<8x128xf32>
    tpu.vector_store %arg12[%c0_86, %c0_87], %415 {strides = array<i32>} : memref<8x128xf32, #tpu.memory_space<vmem>>, vector<8x128xf32>,
    %c0_88 = arith.constant 0 : index
    %c0_89 = arith.constant 0 : index
    %c0_90 = arith.constant 0 : index
    %418 = vector.load %arg14[%c0_88, %c0_89, %c0_90] : memref<8x8x128xf32, #tpu.memory_space<vmem>>, vector<8x8x128xf32>
    %c0_91 = arith.constant 0 : index
    %c0_92 = arith.constant 0 : index
    %419 = vector.load %arg6[%c0_91, %c0_92] : memref<128x128xf32, #tpu.memory_space<vmem>>, vector<128x128xf32>
    %cst_93 = arith.constant dense<0.000000e+00> : vector<8x8x128xf32>
    %420 = tpu.matmul %418, %419, %cst_93 {dimension_numbers = #tpu.dot_dimension_numbers<[2], [0], [0, 1], [1], [0, 0, 0, 1, 1, 1], [], []>} : vector<8x8x128xf32>, vector<128x128xf32>, vector<8x8x128xf32> -> vector<8x8x128xf32>
    %c0_94 = arith.constant 0 : index
    %c0_95 = arith.constant 0 : index
    %421 = vector.load %arg7[%c0_94, %c0_95] : memref<1x128xf32, #tpu.memory_space<vmem>>, vector<1x128xf32>
    %422 = vector.shape_cast %421 : vector<1x128xf32> to vector<1x1x128xf32>
    %423 = vector.broadcast %422 : vector<1x1x128xf32> to vector<8x8x128xf32>
    %424 = arith.addf %420, %423 : vector<8x8x128xf32>
    %cst_96 = arith.constant 0.000000e+00 : f32
    %425 = vector.broadcast %cst_96 : f32 to vector<8x8x128xf32>
    %426 = arith.maximumf %424, %425 : vector<8x8x128xf32>
    %c0_97 = arith.constant 0 : index
    %c0_98 = arith.constant 0 : index
    %c0_99 = arith.constant 0 : index
    %427 = vector.load %arg8[%c0_97, %c0_98, %c0_99] : memref<8x8x128xf32, #tpu.memory_space<vmem>>, vector<8x8x128xf32>
    tpu.vector_store %arg8[%c0_97, %c0_98, %c0_99], %426 {strides = array<i32>} : memref<8x8x128xf32, #tpu.memory_space<vmem>>, vector<8x8x128xf32>,
    %c0_i32_100 = arith.constant 0 : i32
    %428 = arith.cmpi eq, %arg0, %c0_i32_100 : i32
    %429 = arith.extui %428 : i1 to i32
    %c0_i32_101 = arith.constant 0 : i32
    %430 = arith.cmpi ne, %429, %c0_i32_101 : i32
    scf.if %430 {
      %c0_102 = arith.constant 0 : index
      %c0_103 = arith.constant 0 : index
      %431 = vector.load %arg9[%c0_102, %c0_103] : memref<8x128xf32, #tpu.memory_space<vmem>>, vector<8x128xf32>
      tpu.vector_store %arg9[%c0_102, %c0_103], %411 {strides = array<i32>} : memref<8x128xf32, #tpu.memory_space<vmem>>, vector<8x128xf32>,
      %c0_104 = arith.constant 0 : index
      %c0_105 = arith.constant 0 : index
      %432 = vector.load %arg10[%c0_104, %c0_105] : memref<8x128xf32, #tpu.memory_space<vmem>>, vector<8x128xf32>
      tpu.vector_store %arg10[%c0_104, %c0_105], %415 {strides = array<i32>} : memref<8x128xf32, #tpu.memory_space<vmem>>, vector<8x128xf32>,
    } else {
    }
    return
  }
  func.func @transform_0(%arg0: i32) -> (i32, i32, i32) {
    %c0_i32 = arith.constant 0 : i32
    %c0_i32_0 = arith.constant 0 : i32
    %c0_i32_1 = arith.constant 0 : i32
    return %arg0, %c0_i32, %c0_i32_0 : i32, i32, i32
  }
  func.func @transform_1(%arg0: i32) -> (i32, i32) {
    %c0_i32 = arith.constant 0 : i32
    %c0_i32_0 = arith.constant 0 : i32
    %c0_i32_1 = arith.constant 0 : i32
    return %c0_i32, %c0_i32_0 : i32, i32
  }
  func.func @transform_2(%arg0: i32) -> (i32, i32) {
    %c0_i32 = arith.constant 0 : i32
    %c0_i32_0 = arith.constant 0 : i32
    %c0_i32_1 = arith.constant 0 : i32
    return %c0_i32, %c0_i32_0 : i32, i32
  }
  func.func @transform_3(%arg0: i32) -> (i32, i32) {
    %c0_i32 = arith.constant 0 : i32
    %c0_i32_0 = arith.constant 0 : i32
    %c0_i32_1 = arith.constant 0 : i32
    return %c0_i32, %c0_i32_0 : i32, i32
  }
  func.func @transform_4(%arg0: i32) -> (i32, i32) {
    %c0_i32 = arith.constant 0 : i32
    %c0_i32_0 = arith.constant 0 : i32
    %c0_i32_1 = arith.constant 0 : i32
    return %c0_i32, %c0_i32_0 : i32, i32
  }
  func.func @transform_5(%arg0: i32) -> (i32, i32) {
    %c0_i32 = arith.constant 0 : i32
    %c0_i32_0 = arith.constant 0 : i32
    %c0_i32_1 = arith.constant 0 : i32
    return %c0_i32, %c0_i32_0 : i32, i32
  }
  func.func @transform_6(%arg0: i32) -> (i32, i32) {
    %c0_i32 = arith.constant 0 : i32
    %c0_i32_0 = arith.constant 0 : i32
    %c0_i32_1 = arith.constant 0 : i32
    return %c0_i32, %c0_i32_0 : i32, i32
  }
  func.func @transform_7(%arg0: i32) -> (i32, i32, i32) {
    %c0_i32 = arith.constant 0 : i32
    %c0_i32_0 = arith.constant 0 : i32
    %c0_i32_1 = arith.constant 0 : i32
    return %arg0, %c0_i32, %c0_i32_0 : i32, i32, i32
  }
  func.func @transform_8(%arg0: i32) -> (i32, i32) {
    %c0_i32 = arith.constant 0 : i32
    %c0_i32_0 = arith.constant 0 : i32
    %c0_i32_1 = arith.constant 0 : i32
    return %c0_i32, %c0_i32_0 : i32, i32
  }
  func.func @transform_9(%arg0: i32) -> (i32, i32) {
    %c0_i32 = arith.constant 0 : i32
    %c0_i32_0 = arith.constant 0 : i32
    %c0_i32_1 = arith.constant 0 : i32
    return %c0_i32, %c0_i32_0 : i32, i32
  }
}

module attributes {stable_mosaic.version = 11 : i64} {
  func.func @_lstm_fused_kernel(%arg0: i32, %arg1: memref<8x8x16xf32, #tpu.memory_space<vmem>>, %arg2: memref<8x1xf32, #tpu.memory_space<vmem>>, %arg3: memref<16x512xf32, #tpu.memory_space<vmem>>, %arg4: memref<1x512xf32, #tpu.memory_space<vmem>>, %arg5: memref<128x512xf32, #tpu.memory_space<vmem>>, %arg6: memref<128x128xf32, #tpu.memory_space<vmem>>, %arg7: memref<1x128xf32, #tpu.memory_space<vmem>>, %arg8: memref<8x8x128xf32, #tpu.memory_space<vmem>>, %arg9: memref<8x128xf32, #tpu.memory_space<vmem>>, %arg10: memref<8x128xf32, #tpu.memory_space<vmem>>, %arg11: memref<8x128xf32, #tpu.memory_space<vmem>>, %arg12: memref<8x128xf32, #tpu.memory_space<vmem>>, %arg13: memref<8x8x512xf32, #tpu.memory_space<vmem>>, %arg14: memref<8x8x128xf32, #tpu.memory_space<vmem>>) attributes {dimension_semantics = [#tpu.dimension_semantics<arbitrary>], iteration_bounds = array<i64: 1>, scalar_prefetch = 0 : i64, scratch_operands = 4 : i64, tpu.core_type = #tpu.core_type<tc>, window_params = [{transform_indices = @transform_0, window_bounds = array<i64: 8, 8, 16>}, {pipeline_mode = #tpu.pipeline_mode<synchronous>, transform_indices = @transform_1, window_bounds = array<i64: 8, 1>}, {pipeline_mode = #tpu.pipeline_mode<synchronous>, transform_indices = @transform_2, window_bounds = array<i64: 16, 512>}, {pipeline_mode = #tpu.pipeline_mode<synchronous>, transform_indices = @transform_3, window_bounds = array<i64: 1, 512>}, {pipeline_mode = #tpu.pipeline_mode<synchronous>, transform_indices = @transform_4, window_bounds = array<i64: 128, 512>}, {pipeline_mode = #tpu.pipeline_mode<synchronous>, transform_indices = @transform_5, window_bounds = array<i64: 128, 128>}, {pipeline_mode = #tpu.pipeline_mode<synchronous>, transform_indices = @transform_6, window_bounds = array<i64: 1, 128>}, {transform_indices = @transform_7, window_bounds = array<i64: 8, 8, 128>}, {pipeline_mode = #tpu.pipeline_mode<synchronous>, transform_indices = @transform_8, window_bounds = array<i64: 8, 128>}, {pipeline_mode = #tpu.pipeline_mode<synchronous>, transform_indices = @transform_9, window_bounds = array<i64: 8, 128>}]} {
    %c0_i32 = arith.constant 0 : i32
    %0 = arith.cmpi eq, %arg0, %c0_i32 : i32
    %1 = arith.extui %0 : i1 to i32
    %c0_i32_0 = arith.constant 0 : i32
    %2 = arith.cmpi ne, %1, %c0_i32_0 : i32
    scf.if %2 {
      %cst_102 = arith.constant 0.000000e+00 : f32
      %431 = vector.broadcast %cst_102 : f32 to vector<8x128xf32>
      %c0_103 = arith.constant 0 : index
      %c0_104 = arith.constant 0 : index
      %432 = vector.load %arg11[%c0_103, %c0_104] : memref<8x128xf32, #tpu.memory_space<vmem>>, vector<8x128xf32>
      tpu.vector_store %arg11[%c0_103, %c0_104], %431 {strides = array<i32>} : memref<8x128xf32, #tpu.memory_space<vmem>>, vector<8x128xf32>,
      %cst_105 = arith.constant 0.000000e+00 : f32
      %433 = vector.broadcast %cst_105 : f32 to vector<8x128xf32>
      %c0_106 = arith.constant 0 : index
      %c0_107 = arith.constant 0 : index
      %434 = vector.load %arg12[%c0_106, %c0_107] : memref<8x128xf32, #tpu.memory_space<vmem>>, vector<8x128xf32>
      tpu.vector_store %arg12[%c0_106, %c0_107], %433 {strides = array<i32>} : memref<8x128xf32, #tpu.memory_space<vmem>>, vector<8x128xf32>,
    } else {
    }
    %c0 = arith.constant 0 : index
    %c0_1 = arith.constant 0 : index
    %c0_2 = arith.constant 0 : index
    %3 = vector.load %arg1[%c0, %c0_1, %c0_2] : memref<8x8x16xf32, #tpu.memory_space<vmem>>, vector<8x8x16xf32>
    %c0_3 = arith.constant 0 : index
    %c0_4 = arith.constant 0 : index
    %4 = vector.load %arg3[%c0_3, %c0_4] : memref<16x512xf32, #tpu.memory_space<vmem>>, vector<16x512xf32>
    %cst = arith.constant dense<0.000000e+00> : vector<8x8x512xf32>
    %5 = tpu.matmul %3, %4, %cst {dimension_numbers = #tpu.dot_dimension_numbers<[2], [0], [0, 1], [1], [0, 0, 0, 1, 1, 1], [], []>} : vector<8x8x16xf32>, vector<16x512xf32>, vector<8x8x512xf32> -> vector<8x8x512xf32>
    %c0_5 = arith.constant 0 : index
    %c0_6 = arith.constant 0 : index
    %6 = vector.load %arg4[%c0_5, %c0_6] : memref<1x512xf32, #tpu.memory_space<vmem>>, vector<1x512xf32>
    %7 = vector.shape_cast %6 : vector<1x512xf32> to vector<1x1x512xf32>
    %8 = vector.broadcast %7 : vector<1x1x512xf32> to vector<8x8x512xf32>
    %9 = arith.addf %5, %8 : vector<8x8x512xf32>
    %c0_7 = arith.constant 0 : index
    %c0_8 = arith.constant 0 : index
    %c0_9 = arith.constant 0 : index
    %10 = vector.load %arg13[%c0_7, %c0_8, %c0_9] : memref<8x8x512xf32, #tpu.memory_space<vmem>>, vector<8x8x512xf32>
    tpu.vector_store %arg13[%c0_7, %c0_8, %c0_9], %9 {strides = array<i32>} : memref<8x8x512xf32, #tpu.memory_space<vmem>>, vector<8x8x512xf32>,
    %c0_10 = arith.constant 0 : index
    %c0_11 = arith.constant 0 : index
    %11 = vector.load %arg5[%c0_10, %c0_11] : memref<128x512xf32, #tpu.memory_space<vmem>>, vector<128x512xf32>
    %c0_12 = arith.constant 0 : index
    %c0_13 = arith.constant 0 : index
    %12 = vector.load %arg2[%c0_12, %c0_13] : memref<8x1xf32, #tpu.memory_space<vmem>>, vector<8x1xf32>
    %c8_i32 = arith.constant 8 : i32
    %13 = arith.muli %arg0, %c8_i32 : i32
    %c0_14 = arith.constant 0 : index
    %c0_15 = arith.constant 0 : index
    %14 = vector.load %arg11[%c0_14, %c0_15] : memref<8x128xf32, #tpu.memory_space<vmem>>, vector<8x128xf32>
    %c0_16 = arith.constant 0 : index
    %c0_17 = arith.constant 0 : index
    %15 = vector.load %arg12[%c0_16, %c0_17] : memref<8x128xf32, #tpu.memory_space<vmem>>, vector<8x128xf32>
    %c0_i32_18 = arith.constant 0 : i32
    %16 = arith.index_cast %c0_i32_18 : i32 to index
    %c0_19 = arith.constant 0 : index
    %c0_20 = arith.constant 0 : index
    %17 = vector.load %arg13[%16, %c0_19, %c0_20] : memref<8x8x512xf32, #tpu.memory_space<vmem>>, vector<1x8x512xf32>
    %18 = vector.shape_cast %17 : vector<1x8x512xf32> to vector<8x512xf32>
    %cst_21 = arith.constant dense<0.000000e+00> : vector<8x512xf32>
    %19 = tpu.matmul %14, %11, %cst_21 {dimension_numbers = #tpu.dot_dimension_numbers<[1], [0], [0], [1], [0, 0, 1, 1], [], []>} : vector<8x128xf32>, vector<128x512xf32>, vector<8x512xf32> -> vector<8x512xf32>
    %20 = arith.addf %18, %19 : vector<8x512xf32>
    %21 = vector.extract_strided_slice %20 {offsets = [0, 0], sizes = [8, 128], strides = [1, 1]} : vector<8x512xf32> to vector<8x128xf32>
    %22 = arith.negf %21 : vector<8x128xf32>
    %23 = math.exp %22 : vector<8x128xf32>
    %cst_22 = arith.constant 1.000000e+00 : f32
    %24 = vector.broadcast %cst_22 : f32 to vector<8x128xf32>
    %25 = arith.addf %24, %23 : vector<8x128xf32>
    %26 = arith.divf %24, %25 : vector<8x128xf32>
    %27 = vector.extract_strided_slice %20 {offsets = [0, 128], sizes = [8, 128], strides = [1, 1]} : vector<8x512xf32> to vector<8x128xf32>
    %28 = arith.negf %27 : vector<8x128xf32>
    %29 = math.exp %28 : vector<8x128xf32>
    %cst_23 = arith.constant 1.000000e+00 : f32
    %30 = vector.broadcast %cst_23 : f32 to vector<8x128xf32>
    %31 = arith.addf %30, %29 : vector<8x128xf32>
    %32 = arith.divf %30, %31 : vector<8x128xf32>
    %33 = vector.extract_strided_slice %20 {offsets = [0, 256], sizes = [8, 128], strides = [1, 1]} : vector<8x512xf32> to vector<8x128xf32>
    %34 = math.tanh %33 : vector<8x128xf32>
    %35 = vector.extract_strided_slice %20 {offsets = [0, 384], sizes = [8, 128], strides = [1, 1]} : vector<8x512xf32> to vector<8x128xf32>
    %36 = arith.negf %35 : vector<8x128xf32>
    %37 = math.exp %36 : vector<8x128xf32>
    %cst_24 = arith.constant 1.000000e+00 : f32
    %38 = vector.broadcast %cst_24 : f32 to vector<8x128xf32>
    %39 = arith.addf %38, %37 : vector<8x128xf32>
    %40 = arith.divf %38, %39 : vector<8x128xf32>
    %41 = arith.mulf %32, %15 : vector<8x128xf32>
    %42 = arith.mulf %26, %34 : vector<8x128xf32>
    %43 = arith.addf %41, %42 : vector<8x128xf32>
    %44 = math.tanh %43 : vector<8x128xf32>
    %45 = arith.mulf %40, %44 : vector<8x128xf32>
    %46 = arith.addi %13, %c0_i32_18 : i32
    %47 = arith.sitofp %46 : i32 to f32
    %48 = vector.broadcast %47 : f32 to vector<8x1xf32>
    %49 = arith.cmpf ogt, %12, %48 : vector<8x1xf32>
    %50 = arith.extui %49 : vector<8x1xi1> to vector<8x1xi32>
    %51 = arith.sitofp %50 : vector<8x1xi32> to vector<8x1xf32>
    %52 = vector.broadcast %51 : vector<8x1xf32> to vector<8x128xf32>
    %53 = arith.mulf %52, %45 : vector<8x128xf32>
    %54 = arith.index_cast %c0_i32_18 : i32 to index
    %c0_25 = arith.constant 0 : index
    %c0_26 = arith.constant 0 : index
    %55 = vector.load %arg14[%54, %c0_25, %c0_26] : memref<8x8x128xf32, #tpu.memory_space<vmem>>, vector<1x8x128xf32>
    %56 = vector.shape_cast %55 : vector<1x8x128xf32> to vector<8x128xf32>
    %57 = vector.shape_cast %53 : vector<8x128xf32> to vector<1x8x128xf32>
    tpu.vector_store %arg14[%54, %c0_25, %c0_26], %57 {strides = array<i32>} : memref<8x8x128xf32, #tpu.memory_space<vmem>>, vector<1x8x128xf32>,
    %58 = arith.subf %45, %14 : vector<8x128xf32>
    %59 = vector.broadcast %51 : vector<8x1xf32> to vector<8x128xf32>
    %60 = arith.mulf %59, %58 : vector<8x128xf32>
    %61 = arith.addf %14, %60 : vector<8x128xf32>
    %62 = arith.subf %43, %15 : vector<8x128xf32>
    %63 = vector.broadcast %51 : vector<8x1xf32> to vector<8x128xf32>
    %64 = arith.mulf %63, %62 : vector<8x128xf32>
    %65 = arith.addf %15, %64 : vector<8x128xf32>
    %c1_i32 = arith.constant 1 : i32
    %66 = arith.index_cast %c1_i32 : i32 to index
    %c0_27 = arith.constant 0 : index
    %c0_28 = arith.constant 0 : index
    %67 = vector.load %arg13[%66, %c0_27, %c0_28] : memref<8x8x512xf32, #tpu.memory_space<vmem>>, vector<1x8x512xf32>
    %68 = vector.shape_cast %67 : vector<1x8x512xf32> to vector<8x512xf32>
    %cst_29 = arith.constant dense<0.000000e+00> : vector<8x512xf32>
    %69 = tpu.matmul %61, %11, %cst_29 {dimension_numbers = #tpu.dot_dimension_numbers<[1], [0], [0], [1], [0, 0, 1, 1], [], []>} : vector<8x128xf32>, vector<128x512xf32>, vector<8x512xf32> -> vector<8x512xf32>
    %70 = arith.addf %68, %69 : vector<8x512xf32>
    %71 = vector.extract_strided_slice %70 {offsets = [0, 0], sizes = [8, 128], strides = [1, 1]} : vector<8x512xf32> to vector<8x128xf32>
    %72 = arith.negf %71 : vector<8x128xf32>
    %73 = math.exp %72 : vector<8x128xf32>
    %cst_30 = arith.constant 1.000000e+00 : f32
    %74 = vector.broadcast %cst_30 : f32 to vector<8x128xf32>
    %75 = arith.addf %74, %73 : vector<8x128xf32>
    %76 = arith.divf %74, %75 : vector<8x128xf32>
    %77 = vector.extract_strided_slice %70 {offsets = [0, 128], sizes = [8, 128], strides = [1, 1]} : vector<8x512xf32> to vector<8x128xf32>
    %78 = arith.negf %77 : vector<8x128xf32>
    %79 = math.exp %78 : vector<8x128xf32>
    %cst_31 = arith.constant 1.000000e+00 : f32
    %80 = vector.broadcast %cst_31 : f32 to vector<8x128xf32>
    %81 = arith.addf %80, %79 : vector<8x128xf32>
    %82 = arith.divf %80, %81 : vector<8x128xf32>
    %83 = vector.extract_strided_slice %70 {offsets = [0, 256], sizes = [8, 128], strides = [1, 1]} : vector<8x512xf32> to vector<8x128xf32>
    %84 = math.tanh %83 : vector<8x128xf32>
    %85 = vector.extract_strided_slice %70 {offsets = [0, 384], sizes = [8, 128], strides = [1, 1]} : vector<8x512xf32> to vector<8x128xf32>
    %86 = arith.negf %85 : vector<8x128xf32>
    %87 = math.exp %86 : vector<8x128xf32>
    %cst_32 = arith.constant 1.000000e+00 : f32
    %88 = vector.broadcast %cst_32 : f32 to vector<8x128xf32>
    %89 = arith.addf %88, %87 : vector<8x128xf32>
    %90 = arith.divf %88, %89 : vector<8x128xf32>
    %91 = arith.mulf %82, %65 : vector<8x128xf32>
    %92 = arith.mulf %76, %84 : vector<8x128xf32>
    %93 = arith.addf %91, %92 : vector<8x128xf32>
    %94 = math.tanh %93 : vector<8x128xf32>
    %95 = arith.mulf %90, %94 : vector<8x128xf32>
    %96 = arith.addi %13, %c1_i32 : i32
    %97 = arith.sitofp %96 : i32 to f32
    %98 = vector.broadcast %97 : f32 to vector<8x1xf32>
    %99 = arith.cmpf ogt, %12, %98 : vector<8x1xf32>
    %100 = arith.extui %99 : vector<8x1xi1> to vector<8x1xi32>
    %101 = arith.sitofp %100 : vector<8x1xi32> to vector<8x1xf32>
    %102 = vector.broadcast %101 : vector<8x1xf32> to vector<8x128xf32>
    %103 = arith.mulf %102, %95 : vector<8x128xf32>
    %104 = arith.index_cast %c1_i32 : i32 to index
    %c0_33 = arith.constant 0 : index
    %c0_34 = arith.constant 0 : index
    %105 = vector.load %arg14[%104, %c0_33, %c0_34] : memref<8x8x128xf32, #tpu.memory_space<vmem>>, vector<1x8x128xf32>
    %106 = vector.shape_cast %105 : vector<1x8x128xf32> to vector<8x128xf32>
    %107 = vector.shape_cast %103 : vector<8x128xf32> to vector<1x8x128xf32>
    tpu.vector_store %arg14[%104, %c0_33, %c0_34], %107 {strides = array<i32>} : memref<8x8x128xf32, #tpu.memory_space<vmem>>, vector<1x8x128xf32>,
    %108 = arith.subf %95, %61 : vector<8x128xf32>
    %109 = vector.broadcast %101 : vector<8x1xf32> to vector<8x128xf32>
    %110 = arith.mulf %109, %108 : vector<8x128xf32>
    %111 = arith.addf %61, %110 : vector<8x128xf32>
    %112 = arith.subf %93, %65 : vector<8x128xf32>
    %113 = vector.broadcast %101 : vector<8x1xf32> to vector<8x128xf32>
    %114 = arith.mulf %113, %112 : vector<8x128xf32>
    %115 = arith.addf %65, %114 : vector<8x128xf32>
    %c2_i32 = arith.constant 2 : i32
    %116 = arith.index_cast %c2_i32 : i32 to index
    %c0_35 = arith.constant 0 : index
    %c0_36 = arith.constant 0 : index
    %117 = vector.load %arg13[%116, %c0_35, %c0_36] : memref<8x8x512xf32, #tpu.memory_space<vmem>>, vector<1x8x512xf32>
    %118 = vector.shape_cast %117 : vector<1x8x512xf32> to vector<8x512xf32>
    %cst_37 = arith.constant dense<0.000000e+00> : vector<8x512xf32>
    %119 = tpu.matmul %111, %11, %cst_37 {dimension_numbers = #tpu.dot_dimension_numbers<[1], [0], [0], [1], [0, 0, 1, 1], [], []>} : vector<8x128xf32>, vector<128x512xf32>, vector<8x512xf32> -> vector<8x512xf32>
    %120 = arith.addf %118, %119 : vector<8x512xf32>
    %121 = vector.extract_strided_slice %120 {offsets = [0, 0], sizes = [8, 128], strides = [1, 1]} : vector<8x512xf32> to vector<8x128xf32>
    %122 = arith.negf %121 : vector<8x128xf32>
    %123 = math.exp %122 : vector<8x128xf32>
    %cst_38 = arith.constant 1.000000e+00 : f32
    %124 = vector.broadcast %cst_38 : f32 to vector<8x128xf32>
    %125 = arith.addf %124, %123 : vector<8x128xf32>
    %126 = arith.divf %124, %125 : vector<8x128xf32>
    %127 = vector.extract_strided_slice %120 {offsets = [0, 128], sizes = [8, 128], strides = [1, 1]} : vector<8x512xf32> to vector<8x128xf32>
    %128 = arith.negf %127 : vector<8x128xf32>
    %129 = math.exp %128 : vector<8x128xf32>
    %cst_39 = arith.constant 1.000000e+00 : f32
    %130 = vector.broadcast %cst_39 : f32 to vector<8x128xf32>
    %131 = arith.addf %130, %129 : vector<8x128xf32>
    %132 = arith.divf %130, %131 : vector<8x128xf32>
    %133 = vector.extract_strided_slice %120 {offsets = [0, 256], sizes = [8, 128], strides = [1, 1]} : vector<8x512xf32> to vector<8x128xf32>
    %134 = math.tanh %133 : vector<8x128xf32>
    %135 = vector.extract_strided_slice %120 {offsets = [0, 384], sizes = [8, 128], strides = [1, 1]} : vector<8x512xf32> to vector<8x128xf32>
    %136 = arith.negf %135 : vector<8x128xf32>
    %137 = math.exp %136 : vector<8x128xf32>
    %cst_40 = arith.constant 1.000000e+00 : f32
    %138 = vector.broadcast %cst_40 : f32 to vector<8x128xf32>
    %139 = arith.addf %138, %137 : vector<8x128xf32>
    %140 = arith.divf %138, %139 : vector<8x128xf32>
    %141 = arith.mulf %132, %115 : vector<8x128xf32>
    %142 = arith.mulf %126, %134 : vector<8x128xf32>
    %143 = arith.addf %141, %142 : vector<8x128xf32>
    %144 = math.tanh %143 : vector<8x128xf32>
    %145 = arith.mulf %140, %144 : vector<8x128xf32>
    %146 = arith.addi %13, %c2_i32 : i32
    %147 = arith.sitofp %146 : i32 to f32
    %148 = vector.broadcast %147 : f32 to vector<8x1xf32>
    %149 = arith.cmpf ogt, %12, %148 : vector<8x1xf32>
    %150 = arith.extui %149 : vector<8x1xi1> to vector<8x1xi32>
    %151 = arith.sitofp %150 : vector<8x1xi32> to vector<8x1xf32>
    %152 = vector.broadcast %151 : vector<8x1xf32> to vector<8x128xf32>
    %153 = arith.mulf %152, %145 : vector<8x128xf32>
    %154 = arith.index_cast %c2_i32 : i32 to index
    %c0_41 = arith.constant 0 : index
    %c0_42 = arith.constant 0 : index
    %155 = vector.load %arg14[%154, %c0_41, %c0_42] : memref<8x8x128xf32, #tpu.memory_space<vmem>>, vector<1x8x128xf32>
    %156 = vector.shape_cast %155 : vector<1x8x128xf32> to vector<8x128xf32>
    %157 = vector.shape_cast %153 : vector<8x128xf32> to vector<1x8x128xf32>
    tpu.vector_store %arg14[%154, %c0_41, %c0_42], %157 {strides = array<i32>} : memref<8x8x128xf32, #tpu.memory_space<vmem>>, vector<1x8x128xf32>,
    %158 = arith.subf %145, %111 : vector<8x128xf32>
    %159 = vector.broadcast %151 : vector<8x1xf32> to vector<8x128xf32>
    %160 = arith.mulf %159, %158 : vector<8x128xf32>
    %161 = arith.addf %111, %160 : vector<8x128xf32>
    %162 = arith.subf %143, %115 : vector<8x128xf32>
    %163 = vector.broadcast %151 : vector<8x1xf32> to vector<8x128xf32>
    %164 = arith.mulf %163, %162 : vector<8x128xf32>
    %165 = arith.addf %115, %164 : vector<8x128xf32>
    %c3_i32 = arith.constant 3 : i32
    %166 = arith.index_cast %c3_i32 : i32 to index
    %c0_43 = arith.constant 0 : index
    %c0_44 = arith.constant 0 : index
    %167 = vector.load %arg13[%166, %c0_43, %c0_44] : memref<8x8x512xf32, #tpu.memory_space<vmem>>, vector<1x8x512xf32>
    %168 = vector.shape_cast %167 : vector<1x8x512xf32> to vector<8x512xf32>
    %cst_45 = arith.constant dense<0.000000e+00> : vector<8x512xf32>
    %169 = tpu.matmul %161, %11, %cst_45 {dimension_numbers = #tpu.dot_dimension_numbers<[1], [0], [0], [1], [0, 0, 1, 1], [], []>} : vector<8x128xf32>, vector<128x512xf32>, vector<8x512xf32> -> vector<8x512xf32>
    %170 = arith.addf %168, %169 : vector<8x512xf32>
    %171 = vector.extract_strided_slice %170 {offsets = [0, 0], sizes = [8, 128], strides = [1, 1]} : vector<8x512xf32> to vector<8x128xf32>
    %172 = arith.negf %171 : vector<8x128xf32>
    %173 = math.exp %172 : vector<8x128xf32>
    %cst_46 = arith.constant 1.000000e+00 : f32
    %174 = vector.broadcast %cst_46 : f32 to vector<8x128xf32>
    %175 = arith.addf %174, %173 : vector<8x128xf32>
    %176 = arith.divf %174, %175 : vector<8x128xf32>
    %177 = vector.extract_strided_slice %170 {offsets = [0, 128], sizes = [8, 128], strides = [1, 1]} : vector<8x512xf32> to vector<8x128xf32>
    %178 = arith.negf %177 : vector<8x128xf32>
    %179 = math.exp %178 : vector<8x128xf32>
    %cst_47 = arith.constant 1.000000e+00 : f32
    %180 = vector.broadcast %cst_47 : f32 to vector<8x128xf32>
    %181 = arith.addf %180, %179 : vector<8x128xf32>
    %182 = arith.divf %180, %181 : vector<8x128xf32>
    %183 = vector.extract_strided_slice %170 {offsets = [0, 256], sizes = [8, 128], strides = [1, 1]} : vector<8x512xf32> to vector<8x128xf32>
    %184 = math.tanh %183 : vector<8x128xf32>
    %185 = vector.extract_strided_slice %170 {offsets = [0, 384], sizes = [8, 128], strides = [1, 1]} : vector<8x512xf32> to vector<8x128xf32>
    %186 = arith.negf %185 : vector<8x128xf32>
    %187 = math.exp %186 : vector<8x128xf32>
    %cst_48 = arith.constant 1.000000e+00 : f32
    %188 = vector.broadcast %cst_48 : f32 to vector<8x128xf32>
    %189 = arith.addf %188, %187 : vector<8x128xf32>
    %190 = arith.divf %188, %189 : vector<8x128xf32>
    %191 = arith.mulf %182, %165 : vector<8x128xf32>
    %192 = arith.mulf %176, %184 : vector<8x128xf32>
    %193 = arith.addf %191, %192 : vector<8x128xf32>
    %194 = math.tanh %193 : vector<8x128xf32>
    %195 = arith.mulf %190, %194 : vector<8x128xf32>
    %196 = arith.addi %13, %c3_i32 : i32
    %197 = arith.sitofp %196 : i32 to f32
    %198 = vector.broadcast %197 : f32 to vector<8x1xf32>
    %199 = arith.cmpf ogt, %12, %198 : vector<8x1xf32>
    %200 = arith.extui %199 : vector<8x1xi1> to vector<8x1xi32>
    %201 = arith.sitofp %200 : vector<8x1xi32> to vector<8x1xf32>
    %202 = vector.broadcast %201 : vector<8x1xf32> to vector<8x128xf32>
    %203 = arith.mulf %202, %195 : vector<8x128xf32>
    %204 = arith.index_cast %c3_i32 : i32 to index
    %c0_49 = arith.constant 0 : index
    %c0_50 = arith.constant 0 : index
    %205 = vector.load %arg14[%204, %c0_49, %c0_50] : memref<8x8x128xf32, #tpu.memory_space<vmem>>, vector<1x8x128xf32>
    %206 = vector.shape_cast %205 : vector<1x8x128xf32> to vector<8x128xf32>
    %207 = vector.shape_cast %203 : vector<8x128xf32> to vector<1x8x128xf32>
    tpu.vector_store %arg14[%204, %c0_49, %c0_50], %207 {strides = array<i32>} : memref<8x8x128xf32, #tpu.memory_space<vmem>>, vector<1x8x128xf32>,
    %208 = arith.subf %195, %161 : vector<8x128xf32>
    %209 = vector.broadcast %201 : vector<8x1xf32> to vector<8x128xf32>
    %210 = arith.mulf %209, %208 : vector<8x128xf32>
    %211 = arith.addf %161, %210 : vector<8x128xf32>
    %212 = arith.subf %193, %165 : vector<8x128xf32>
    %213 = vector.broadcast %201 : vector<8x1xf32> to vector<8x128xf32>
    %214 = arith.mulf %213, %212 : vector<8x128xf32>
    %215 = arith.addf %165, %214 : vector<8x128xf32>
    %c4_i32 = arith.constant 4 : i32
    %216 = arith.index_cast %c4_i32 : i32 to index
    %c0_51 = arith.constant 0 : index
    %c0_52 = arith.constant 0 : index
    %217 = vector.load %arg13[%216, %c0_51, %c0_52] : memref<8x8x512xf32, #tpu.memory_space<vmem>>, vector<1x8x512xf32>
    %218 = vector.shape_cast %217 : vector<1x8x512xf32> to vector<8x512xf32>
    %cst_53 = arith.constant dense<0.000000e+00> : vector<8x512xf32>
    %219 = tpu.matmul %211, %11, %cst_53 {dimension_numbers = #tpu.dot_dimension_numbers<[1], [0], [0], [1], [0, 0, 1, 1], [], []>} : vector<8x128xf32>, vector<128x512xf32>, vector<8x512xf32> -> vector<8x512xf32>
    %220 = arith.addf %218, %219 : vector<8x512xf32>
    %221 = vector.extract_strided_slice %220 {offsets = [0, 0], sizes = [8, 128], strides = [1, 1]} : vector<8x512xf32> to vector<8x128xf32>
    %222 = arith.negf %221 : vector<8x128xf32>
    %223 = math.exp %222 : vector<8x128xf32>
    %cst_54 = arith.constant 1.000000e+00 : f32
    %224 = vector.broadcast %cst_54 : f32 to vector<8x128xf32>
    %225 = arith.addf %224, %223 : vector<8x128xf32>
    %226 = arith.divf %224, %225 : vector<8x128xf32>
    %227 = vector.extract_strided_slice %220 {offsets = [0, 128], sizes = [8, 128], strides = [1, 1]} : vector<8x512xf32> to vector<8x128xf32>
    %228 = arith.negf %227 : vector<8x128xf32>
    %229 = math.exp %228 : vector<8x128xf32>
    %cst_55 = arith.constant 1.000000e+00 : f32
    %230 = vector.broadcast %cst_55 : f32 to vector<8x128xf32>
    %231 = arith.addf %230, %229 : vector<8x128xf32>
    %232 = arith.divf %230, %231 : vector<8x128xf32>
    %233 = vector.extract_strided_slice %220 {offsets = [0, 256], sizes = [8, 128], strides = [1, 1]} : vector<8x512xf32> to vector<8x128xf32>
    %234 = math.tanh %233 : vector<8x128xf32>
    %235 = vector.extract_strided_slice %220 {offsets = [0, 384], sizes = [8, 128], strides = [1, 1]} : vector<8x512xf32> to vector<8x128xf32>
    %236 = arith.negf %235 : vector<8x128xf32>
    %237 = math.exp %236 : vector<8x128xf32>
    %cst_56 = arith.constant 1.000000e+00 : f32
    %238 = vector.broadcast %cst_56 : f32 to vector<8x128xf32>
    %239 = arith.addf %238, %237 : vector<8x128xf32>
    %240 = arith.divf %238, %239 : vector<8x128xf32>
    %241 = arith.mulf %232, %215 : vector<8x128xf32>
    %242 = arith.mulf %226, %234 : vector<8x128xf32>
    %243 = arith.addf %241, %242 : vector<8x128xf32>
    %244 = math.tanh %243 : vector<8x128xf32>
    %245 = arith.mulf %240, %244 : vector<8x128xf32>
    %246 = arith.addi %13, %c4_i32 : i32
    %247 = arith.sitofp %246 : i32 to f32
    %248 = vector.broadcast %247 : f32 to vector<8x1xf32>
    %249 = arith.cmpf ogt, %12, %248 : vector<8x1xf32>
    %250 = arith.extui %249 : vector<8x1xi1> to vector<8x1xi32>
    %251 = arith.sitofp %250 : vector<8x1xi32> to vector<8x1xf32>
    %252 = vector.broadcast %251 : vector<8x1xf32> to vector<8x128xf32>
    %253 = arith.mulf %252, %245 : vector<8x128xf32>
    %254 = arith.index_cast %c4_i32 : i32 to index
    %c0_57 = arith.constant 0 : index
    %c0_58 = arith.constant 0 : index
    %255 = vector.load %arg14[%254, %c0_57, %c0_58] : memref<8x8x128xf32, #tpu.memory_space<vmem>>, vector<1x8x128xf32>
    %256 = vector.shape_cast %255 : vector<1x8x128xf32> to vector<8x128xf32>
    %257 = vector.shape_cast %253 : vector<8x128xf32> to vector<1x8x128xf32>
    tpu.vector_store %arg14[%254, %c0_57, %c0_58], %257 {strides = array<i32>} : memref<8x8x128xf32, #tpu.memory_space<vmem>>, vector<1x8x128xf32>,
    %258 = arith.subf %245, %211 : vector<8x128xf32>
    %259 = vector.broadcast %251 : vector<8x1xf32> to vector<8x128xf32>
    %260 = arith.mulf %259, %258 : vector<8x128xf32>
    %261 = arith.addf %211, %260 : vector<8x128xf32>
    %262 = arith.subf %243, %215 : vector<8x128xf32>
    %263 = vector.broadcast %251 : vector<8x1xf32> to vector<8x128xf32>
    %264 = arith.mulf %263, %262 : vector<8x128xf32>
    %265 = arith.addf %215, %264 : vector<8x128xf32>
    %c5_i32 = arith.constant 5 : i32
    %266 = arith.index_cast %c5_i32 : i32 to index
    %c0_59 = arith.constant 0 : index
    %c0_60 = arith.constant 0 : index
    %267 = vector.load %arg13[%266, %c0_59, %c0_60] : memref<8x8x512xf32, #tpu.memory_space<vmem>>, vector<1x8x512xf32>
    %268 = vector.shape_cast %267 : vector<1x8x512xf32> to vector<8x512xf32>
    %cst_61 = arith.constant dense<0.000000e+00> : vector<8x512xf32>
    %269 = tpu.matmul %261, %11, %cst_61 {dimension_numbers = #tpu.dot_dimension_numbers<[1], [0], [0], [1], [0, 0, 1, 1], [], []>} : vector<8x128xf32>, vector<128x512xf32>, vector<8x512xf32> -> vector<8x512xf32>
    %270 = arith.addf %268, %269 : vector<8x512xf32>
    %271 = vector.extract_strided_slice %270 {offsets = [0, 0], sizes = [8, 128], strides = [1, 1]} : vector<8x512xf32> to vector<8x128xf32>
    %272 = arith.negf %271 : vector<8x128xf32>
    %273 = math.exp %272 : vector<8x128xf32>
    %cst_62 = arith.constant 1.000000e+00 : f32
    %274 = vector.broadcast %cst_62 : f32 to vector<8x128xf32>
    %275 = arith.addf %274, %273 : vector<8x128xf32>
    %276 = arith.divf %274, %275 : vector<8x128xf32>
    %277 = vector.extract_strided_slice %270 {offsets = [0, 128], sizes = [8, 128], strides = [1, 1]} : vector<8x512xf32> to vector<8x128xf32>
    %278 = arith.negf %277 : vector<8x128xf32>
    %279 = math.exp %278 : vector<8x128xf32>
    %cst_63 = arith.constant 1.000000e+00 : f32
    %280 = vector.broadcast %cst_63 : f32 to vector<8x128xf32>
    %281 = arith.addf %280, %279 : vector<8x128xf32>
    %282 = arith.divf %280, %281 : vector<8x128xf32>
    %283 = vector.extract_strided_slice %270 {offsets = [0, 256], sizes = [8, 128], strides = [1, 1]} : vector<8x512xf32> to vector<8x128xf32>
    %284 = math.tanh %283 : vector<8x128xf32>
    %285 = vector.extract_strided_slice %270 {offsets = [0, 384], sizes = [8, 128], strides = [1, 1]} : vector<8x512xf32> to vector<8x128xf32>
    %286 = arith.negf %285 : vector<8x128xf32>
    %287 = math.exp %286 : vector<8x128xf32>
    %cst_64 = arith.constant 1.000000e+00 : f32
    %288 = vector.broadcast %cst_64 : f32 to vector<8x128xf32>
    %289 = arith.addf %288, %287 : vector<8x128xf32>
    %290 = arith.divf %288, %289 : vector<8x128xf32>
    %291 = arith.mulf %282, %265 : vector<8x128xf32>
    %292 = arith.mulf %276, %284 : vector<8x128xf32>
    %293 = arith.addf %291, %292 : vector<8x128xf32>
    %294 = math.tanh %293 : vector<8x128xf32>
    %295 = arith.mulf %290, %294 : vector<8x128xf32>
    %296 = arith.addi %13, %c5_i32 : i32
    %297 = arith.sitofp %296 : i32 to f32
    %298 = vector.broadcast %297 : f32 to vector<8x1xf32>
    %299 = arith.cmpf ogt, %12, %298 : vector<8x1xf32>
    %300 = arith.extui %299 : vector<8x1xi1> to vector<8x1xi32>
    %301 = arith.sitofp %300 : vector<8x1xi32> to vector<8x1xf32>
    %302 = vector.broadcast %301 : vector<8x1xf32> to vector<8x128xf32>
    %303 = arith.mulf %302, %295 : vector<8x128xf32>
    %304 = arith.index_cast %c5_i32 : i32 to index
    %c0_65 = arith.constant 0 : index
    %c0_66 = arith.constant 0 : index
    %305 = vector.load %arg14[%304, %c0_65, %c0_66] : memref<8x8x128xf32, #tpu.memory_space<vmem>>, vector<1x8x128xf32>
    %306 = vector.shape_cast %305 : vector<1x8x128xf32> to vector<8x128xf32>
    %307 = vector.shape_cast %303 : vector<8x128xf32> to vector<1x8x128xf32>
    tpu.vector_store %arg14[%304, %c0_65, %c0_66], %307 {strides = array<i32>} : memref<8x8x128xf32, #tpu.memory_space<vmem>>, vector<1x8x128xf32>,
    %308 = arith.subf %295, %261 : vector<8x128xf32>
    %309 = vector.broadcast %301 : vector<8x1xf32> to vector<8x128xf32>
    %310 = arith.mulf %309, %308 : vector<8x128xf32>
    %311 = arith.addf %261, %310 : vector<8x128xf32>
    %312 = arith.subf %293, %265 : vector<8x128xf32>
    %313 = vector.broadcast %301 : vector<8x1xf32> to vector<8x128xf32>
    %314 = arith.mulf %313, %312 : vector<8x128xf32>
    %315 = arith.addf %265, %314 : vector<8x128xf32>
    %c6_i32 = arith.constant 6 : i32
    %316 = arith.index_cast %c6_i32 : i32 to index
    %c0_67 = arith.constant 0 : index
    %c0_68 = arith.constant 0 : index
    %317 = vector.load %arg13[%316, %c0_67, %c0_68] : memref<8x8x512xf32, #tpu.memory_space<vmem>>, vector<1x8x512xf32>
    %318 = vector.shape_cast %317 : vector<1x8x512xf32> to vector<8x512xf32>
    %cst_69 = arith.constant dense<0.000000e+00> : vector<8x512xf32>
    %319 = tpu.matmul %311, %11, %cst_69 {dimension_numbers = #tpu.dot_dimension_numbers<[1], [0], [0], [1], [0, 0, 1, 1], [], []>} : vector<8x128xf32>, vector<128x512xf32>, vector<8x512xf32> -> vector<8x512xf32>
    %320 = arith.addf %318, %319 : vector<8x512xf32>
    %321 = vector.extract_strided_slice %320 {offsets = [0, 0], sizes = [8, 128], strides = [1, 1]} : vector<8x512xf32> to vector<8x128xf32>
    %322 = arith.negf %321 : vector<8x128xf32>
    %323 = math.exp %322 : vector<8x128xf32>
    %cst_70 = arith.constant 1.000000e+00 : f32
    %324 = vector.broadcast %cst_70 : f32 to vector<8x128xf32>
    %325 = arith.addf %324, %323 : vector<8x128xf32>
    %326 = arith.divf %324, %325 : vector<8x128xf32>
    %327 = vector.extract_strided_slice %320 {offsets = [0, 128], sizes = [8, 128], strides = [1, 1]} : vector<8x512xf32> to vector<8x128xf32>
    %328 = arith.negf %327 : vector<8x128xf32>
    %329 = math.exp %328 : vector<8x128xf32>
    %cst_71 = arith.constant 1.000000e+00 : f32
    %330 = vector.broadcast %cst_71 : f32 to vector<8x128xf32>
    %331 = arith.addf %330, %329 : vector<8x128xf32>
    %332 = arith.divf %330, %331 : vector<8x128xf32>
    %333 = vector.extract_strided_slice %320 {offsets = [0, 256], sizes = [8, 128], strides = [1, 1]} : vector<8x512xf32> to vector<8x128xf32>
    %334 = math.tanh %333 : vector<8x128xf32>
    %335 = vector.extract_strided_slice %320 {offsets = [0, 384], sizes = [8, 128], strides = [1, 1]} : vector<8x512xf32> to vector<8x128xf32>
    %336 = arith.negf %335 : vector<8x128xf32>
    %337 = math.exp %336 : vector<8x128xf32>
    %cst_72 = arith.constant 1.000000e+00 : f32
    %338 = vector.broadcast %cst_72 : f32 to vector<8x128xf32>
    %339 = arith.addf %338, %337 : vector<8x128xf32>
    %340 = arith.divf %338, %339 : vector<8x128xf32>
    %341 = arith.mulf %332, %315 : vector<8x128xf32>
    %342 = arith.mulf %326, %334 : vector<8x128xf32>
    %343 = arith.addf %341, %342 : vector<8x128xf32>
    %344 = math.tanh %343 : vector<8x128xf32>
    %345 = arith.mulf %340, %344 : vector<8x128xf32>
    %346 = arith.addi %13, %c6_i32 : i32
    %347 = arith.sitofp %346 : i32 to f32
    %348 = vector.broadcast %347 : f32 to vector<8x1xf32>
    %349 = arith.cmpf ogt, %12, %348 : vector<8x1xf32>
    %350 = arith.extui %349 : vector<8x1xi1> to vector<8x1xi32>
    %351 = arith.sitofp %350 : vector<8x1xi32> to vector<8x1xf32>
    %352 = vector.broadcast %351 : vector<8x1xf32> to vector<8x128xf32>
    %353 = arith.mulf %352, %345 : vector<8x128xf32>
    %354 = arith.index_cast %c6_i32 : i32 to index
    %c0_73 = arith.constant 0 : index
    %c0_74 = arith.constant 0 : index
    %355 = vector.load %arg14[%354, %c0_73, %c0_74] : memref<8x8x128xf32, #tpu.memory_space<vmem>>, vector<1x8x128xf32>
    %356 = vector.shape_cast %355 : vector<1x8x128xf32> to vector<8x128xf32>
    %357 = vector.shape_cast %353 : vector<8x128xf32> to vector<1x8x128xf32>
    tpu.vector_store %arg14[%354, %c0_73, %c0_74], %357 {strides = array<i32>} : memref<8x8x128xf32, #tpu.memory_space<vmem>>, vector<1x8x128xf32>,
    %358 = arith.subf %345, %311 : vector<8x128xf32>
    %359 = vector.broadcast %351 : vector<8x1xf32> to vector<8x128xf32>
    %360 = arith.mulf %359, %358 : vector<8x128xf32>
    %361 = arith.addf %311, %360 : vector<8x128xf32>
    %362 = arith.subf %343, %315 : vector<8x128xf32>
    %363 = vector.broadcast %351 : vector<8x1xf32> to vector<8x128xf32>
    %364 = arith.mulf %363, %362 : vector<8x128xf32>
    %365 = arith.addf %315, %364 : vector<8x128xf32>
    %c7_i32 = arith.constant 7 : i32
    %366 = arith.index_cast %c7_i32 : i32 to index
    %c0_75 = arith.constant 0 : index
    %c0_76 = arith.constant 0 : index
    %367 = vector.load %arg13[%366, %c0_75, %c0_76] : memref<8x8x512xf32, #tpu.memory_space<vmem>>, vector<1x8x512xf32>
    %368 = vector.shape_cast %367 : vector<1x8x512xf32> to vector<8x512xf32>
    %cst_77 = arith.constant dense<0.000000e+00> : vector<8x512xf32>
    %369 = tpu.matmul %361, %11, %cst_77 {dimension_numbers = #tpu.dot_dimension_numbers<[1], [0], [0], [1], [0, 0, 1, 1], [], []>} : vector<8x128xf32>, vector<128x512xf32>, vector<8x512xf32> -> vector<8x512xf32>
    %370 = arith.addf %368, %369 : vector<8x512xf32>
    %371 = vector.extract_strided_slice %370 {offsets = [0, 0], sizes = [8, 128], strides = [1, 1]} : vector<8x512xf32> to vector<8x128xf32>
    %372 = arith.negf %371 : vector<8x128xf32>
    %373 = math.exp %372 : vector<8x128xf32>
    %cst_78 = arith.constant 1.000000e+00 : f32
    %374 = vector.broadcast %cst_78 : f32 to vector<8x128xf32>
    %375 = arith.addf %374, %373 : vector<8x128xf32>
    %376 = arith.divf %374, %375 : vector<8x128xf32>
    %377 = vector.extract_strided_slice %370 {offsets = [0, 128], sizes = [8, 128], strides = [1, 1]} : vector<8x512xf32> to vector<8x128xf32>
    %378 = arith.negf %377 : vector<8x128xf32>
    %379 = math.exp %378 : vector<8x128xf32>
    %cst_79 = arith.constant 1.000000e+00 : f32
    %380 = vector.broadcast %cst_79 : f32 to vector<8x128xf32>
    %381 = arith.addf %380, %379 : vector<8x128xf32>
    %382 = arith.divf %380, %381 : vector<8x128xf32>
    %383 = vector.extract_strided_slice %370 {offsets = [0, 256], sizes = [8, 128], strides = [1, 1]} : vector<8x512xf32> to vector<8x128xf32>
    %384 = math.tanh %383 : vector<8x128xf32>
    %385 = vector.extract_strided_slice %370 {offsets = [0, 384], sizes = [8, 128], strides = [1, 1]} : vector<8x512xf32> to vector<8x128xf32>
    %386 = arith.negf %385 : vector<8x128xf32>
    %387 = math.exp %386 : vector<8x128xf32>
    %cst_80 = arith.constant 1.000000e+00 : f32
    %388 = vector.broadcast %cst_80 : f32 to vector<8x128xf32>
    %389 = arith.addf %388, %387 : vector<8x128xf32>
    %390 = arith.divf %388, %389 : vector<8x128xf32>
    %391 = arith.mulf %382, %365 : vector<8x128xf32>
    %392 = arith.mulf %376, %384 : vector<8x128xf32>
    %393 = arith.addf %391, %392 : vector<8x128xf32>
    %394 = math.tanh %393 : vector<8x128xf32>
    %395 = arith.mulf %390, %394 : vector<8x128xf32>
    %396 = arith.addi %13, %c7_i32 : i32
    %397 = arith.sitofp %396 : i32 to f32
    %398 = vector.broadcast %397 : f32 to vector<8x1xf32>
    %399 = arith.cmpf ogt, %12, %398 : vector<8x1xf32>
    %400 = arith.extui %399 : vector<8x1xi1> to vector<8x1xi32>
    %401 = arith.sitofp %400 : vector<8x1xi32> to vector<8x1xf32>
    %402 = vector.broadcast %401 : vector<8x1xf32> to vector<8x128xf32>
    %403 = arith.mulf %402, %395 : vector<8x128xf32>
    %404 = arith.index_cast %c7_i32 : i32 to index
    %c0_81 = arith.constant 0 : index
    %c0_82 = arith.constant 0 : index
    %405 = vector.load %arg14[%404, %c0_81, %c0_82] : memref<8x8x128xf32, #tpu.memory_space<vmem>>, vector<1x8x128xf32>
    %406 = vector.shape_cast %405 : vector<1x8x128xf32> to vector<8x128xf32>
    %407 = vector.shape_cast %403 : vector<8x128xf32> to vector<1x8x128xf32>
    tpu.vector_store %arg14[%404, %c0_81, %c0_82], %407 {strides = array<i32>} : memref<8x8x128xf32, #tpu.memory_space<vmem>>, vector<1x8x128xf32>,
    %408 = arith.subf %395, %361 : vector<8x128xf32>
    %409 = vector.broadcast %401 : vector<8x1xf32> to vector<8x128xf32>
    %410 = arith.mulf %409, %408 : vector<8x128xf32>
    %411 = arith.addf %361, %410 : vector<8x128xf32>
    %412 = arith.subf %393, %365 : vector<8x128xf32>
    %413 = vector.broadcast %401 : vector<8x1xf32> to vector<8x128xf32>
    %414 = arith.mulf %413, %412 : vector<8x128xf32>
    %415 = arith.addf %365, %414 : vector<8x128xf32>
    %c8_i32_83 = arith.constant 8 : i32
    %c0_84 = arith.constant 0 : index
    %c0_85 = arith.constant 0 : index
    %416 = vector.load %arg11[%c0_84, %c0_85] : memref<8x128xf32, #tpu.memory_space<vmem>>, vector<8x128xf32>
    tpu.vector_store %arg11[%c0_84, %c0_85], %411 {strides = array<i32>} : memref<8x128xf32, #tpu.memory_space<vmem>>, vector<8x128xf32>,
    %c0_86 = arith.constant 0 : index
    %c0_87 = arith.constant 0 : index
    %417 = vector.load %arg12[%c0_86, %c0_87] : memref<8x128xf32, #tpu.memory_space<vmem>>, vector<8x128xf32>
    tpu.vector_store %arg12[%c0_86, %c0_87], %415 {strides = array<i32>} : memref<8x128xf32, #tpu.memory_space<vmem>>, vector<8x128xf32>,
    %c0_88 = arith.constant 0 : index
    %c0_89 = arith.constant 0 : index
    %c0_90 = arith.constant 0 : index
    %418 = vector.load %arg14[%c0_88, %c0_89, %c0_90] : memref<8x8x128xf32, #tpu.memory_space<vmem>>, vector<8x8x128xf32>
    %c0_91 = arith.constant 0 : index
    %c0_92 = arith.constant 0 : index
    %419 = vector.load %arg6[%c0_91, %c0_92] : memref<128x128xf32, #tpu.memory_space<vmem>>, vector<128x128xf32>
    %cst_93 = arith.constant dense<0.000000e+00> : vector<8x8x128xf32>
    %420 = tpu.matmul %418, %419, %cst_93 {dimension_numbers = #tpu.dot_dimension_numbers<[2], [0], [0, 1], [1], [0, 0, 0, 1, 1, 1], [], []>} : vector<8x8x128xf32>, vector<128x128xf32>, vector<8x8x128xf32> -> vector<8x8x128xf32>
    %c0_94 = arith.constant 0 : index
    %c0_95 = arith.constant 0 : index
    %421 = vector.load %arg7[%c0_94, %c0_95] : memref<1x128xf32, #tpu.memory_space<vmem>>, vector<1x128xf32>
    %422 = vector.shape_cast %421 : vector<1x128xf32> to vector<1x1x128xf32>
    %423 = vector.broadcast %422 : vector<1x1x128xf32> to vector<8x8x128xf32>
    %424 = arith.addf %420, %423 : vector<8x8x128xf32>
    %cst_96 = arith.constant 0.000000e+00 : f32
    %425 = vector.broadcast %cst_96 : f32 to vector<8x8x128xf32>
    %426 = arith.maximumf %424, %425 : vector<8x8x128xf32>
    %c0_97 = arith.constant 0 : index
    %c0_98 = arith.constant 0 : index
    %c0_99 = arith.constant 0 : index
    %427 = vector.load %arg8[%c0_97, %c0_98, %c0_99] : memref<8x8x128xf32, #tpu.memory_space<vmem>>, vector<8x8x128xf32>
    tpu.vector_store %arg8[%c0_97, %c0_98, %c0_99], %426 {strides = array<i32>} : memref<8x8x128xf32, #tpu.memory_space<vmem>>, vector<8x8x128xf32>,
    %c0_i32_100 = arith.constant 0 : i32
    %428 = arith.cmpi eq, %arg0, %c0_i32_100 : i32
    %429 = arith.extui %428 : i1 to i32
    %c0_i32_101 = arith.constant 0 : i32
    %430 = arith.cmpi ne, %429, %c0_i32_101 : i32
    scf.if %430 {
      %c0_102 = arith.constant 0 : index
      %c0_103 = arith.constant 0 : index
      %431 = vector.load %arg9[%c0_102, %c0_103] : memref<8x128xf32, #tpu.memory_space<vmem>>, vector<8x128xf32>
      tpu.vector_store %arg9[%c0_102, %c0_103], %411 {strides = array<i32>} : memref<8x128xf32, #tpu.memory_space<vmem>>, vector<8x128xf32>,
      %c0_104 = arith.constant 0 : index
      %c0_105 = arith.constant 0 : index
      %432 = vector.load %arg10[%c0_104, %c0_105] : memref<8x128xf32, #tpu.memory_space<vmem>>, vector<8x128xf32>
      tpu.vector_store %arg10[%c0_104, %c0_105], %415 {strides = array<i32>} : memref<8x128xf32, #tpu.memory_space<vmem>>, vector<8x128xf32>,
    } else {
    }
    return
  }
  func.func @transform_0(%arg0: i32) -> (i32, i32, i32) {
    %c0_i32 = arith.constant 0 : i32
    %c0_i32_0 = arith.constant 0 : i32
    %c0_i32_1 = arith.constant 0 : i32
    return %arg0, %c0_i32, %c0_i32_0 : i32, i32, i32
  }
  func.func @transform_1(%arg0: i32) -> (i32, i32) {
    %c0_i32 = arith.constant 0 : i32
    %c0_i32_0 = arith.constant 0 : i32
    %c0_i32_1 = arith.constant 0 : i32
    return %c0_i32, %c0_i32_0 : i32, i32
  }
  func.func @transform_2(%arg0: i32) -> (i32, i32) {
    %c0_i32 = arith.constant 0 : i32
    %c0_i32_0 = arith.constant 0 : i32
    %c0_i32_1 = arith.constant 0 : i32
    return %c0_i32, %c0_i32_0 : i32, i32
  }
  func.func @transform_3(%arg0: i32) -> (i32, i32) {
    %c0_i32 = arith.constant 0 : i32
    %c0_i32_0 = arith.constant 0 : i32
    %c0_i32_1 = arith.constant 0 : i32
    return %c0_i32, %c0_i32_0 : i32, i32
  }
  func.func @transform_4(%arg0: i32) -> (i32, i32) {
    %c0_i32 = arith.constant 0 : i32
    %c0_i32_0 = arith.constant 0 : i32
    %c0_i32_1 = arith.constant 0 : i32
    return %c0_i32, %c0_i32_0 : i32, i32
  }
  func.func @transform_5(%arg0: i32) -> (i32, i32) {
    %c0_i32 = arith.constant 0 : i32
    %c0_i32_0 = arith.constant 0 : i32
    %c0_i32_1 = arith.constant 0 : i32
    return %c0_i32, %c0_i32_0 : i32, i32
  }
  func.func @transform_6(%arg0: i32) -> (i32, i32) {
    %c0_i32 = arith.constant 0 : i32
    %c0_i32_0 = arith.constant 0 : i32
    %c0_i32_1 = arith.constant 0 : i32
    return %c0_i32, %c0_i32_0 : i32, i32
  }
  func.func @transform_7(%arg0: i32) -> (i32, i32, i32) {
    %c0_i32 = arith.constant 0 : i32
    %c0_i32_0 = arith.constant 0 : i32
    %c0_i32_1 = arith.constant 0 : i32
    return %arg0, %c0_i32, %c0_i32_0 : i32, i32, i32
  }
  func.func @transform_8(%arg0: i32) -> (i32, i32) {
    %c0_i32 = arith.constant 0 : i32
    %c0_i32_0 = arith.constant 0 : i32
    %c0_i32_1 = arith.constant 0 : i32
    return %c0_i32, %c0_i32_0 : i32, i32
  }
  func.func @transform_9(%arg0: i32) -> (i32, i32) {
    %c0_i32 = arith.constant 0 : i32
    %c0_i32_0 = arith.constant 0 : i32
    %c0_i32_1 = arith.constant 0 : i32
    return %c0_i32, %c0_i32_0 : i32, i32
  }
}

</mosaic_0001>

<bundles_post_ra>
// kernel: tpu_custom_call.1
= control target key start
LH: loop header
LB: loop body
LE: loop exit
PB: predicated region body
PF: predicated region fallthrough
CT: control target
= control target key end

     0   :  { %15 = vsyncpa [#allocation7], 0  ;;  %s3964_s0 = inlined_call_operand.hbm [shape: f32[8,8,16], index: 0, kind: input, shape index: {}]   ;;  %s3965_s1 = inlined_call_operand.vmem [shape: f32[8,1], index: 1, kind: input, shape index: {}]   ;;  %s3966_s2 = inlined_call_operand.hbm [shape: f32[16,512], index: 2, kind: input, shape index: {}]   ;;  %s3967_s3 = inlined_call_operand.vmem [shape: f32[1,512], index: 3, kind: input, shape index: {}]   ;;  %s3968_s4 = inlined_call_operand.hbm [shape: f32[128,512], index: 4, kind: input, shape index: {}]   ;;  %s3969_s5 = inlined_call_operand.hbm [shape: f32[128,128], index: 5, kind: input, shape index: {}]   ;;  %s3970_s6 = inlined_call_operand.vmem [shape: f32[1,128], index: 6, kind: input, shape index: {}]   ;;  %s3971_s7 = inlined_call_operand.hbm [shape: f32[8,8,128], index: 7, kind: output, shape index: {0}]   ;;  %s3972_s8 = inlined_call_operand.hbm [shape: f32[8,128], index: 8, kind: output, shape index: {1}]   ;;  %s3973_s9 = inlined_call_operand.hbm [shape: f32[8,128], index: 9, kind: output, shape index: {2}]  }
   0x1   :  { %16 = vsyncpa [#allocation10], 0 }
   0x2   :  { %17 = vsyncpa [#allocation13], 0 }
   0x3   :  { %18 = vsyncpa [#allocation8], 0 }
   0x4   :  { %19 = vsyncpa [#allocation16], 0  ;;  %s2717_s30 = smov [#allocation9]  }
   0x5   :  { %s39_s10 = sshll.u32 %s2717_s30, 4  ;;  %s40_s10 = int_to_ptr.vmem [resolvable:$true] %s39_s10 }
   0x6   :  { %s2575_s11 = scalar_lea.vmem %s40_s10, 1024  ;;  %p2580_p1 = scmp.lt.s32.totalorder %s40_s10, %s40_s10 }
   0x7   :  { %p2576_p0 = scmp.ne.s32.totalorder %s40_s10, %s2575_s11  ;;  %p2581_p2 = scmp.lt.s32.totalorder %s2575_s11, %s2575_s11 }
   0x9   :  { %p2582_p3 = por %p2581_p2, %p2580_p1 }
   0xb   :  { %p2583_p4 = pnand %p2582_p3, %p2576_p0 }
   0xd   :  { %2586 = shalt.err (!%p2583_p4)
}
   0xe   :  { %s2718_s12 = smov 512   ;;  %s2719_s13 = smov 32  }
   0xf   :  { %45 = dma.hbm_to_vmem [thread:$0]  %s3966_s2, 1024, %s40_s10, [#allocation10], %s2718_s12, %s2718_s12, %s2719_s13  }
  0x10   :  { %s2720_s16 = smov [#allocation6]  }
  0x11   :  { %s25_s17 = sshll.u32 %s2720_s16, 4  ;;  %s26_s17 = int_to_ptr.vmem [resolvable:$true] %s25_s17 }
  0x12   :  { %s2595_s18 = scalar_lea.vmem %s26_s17, 1024  ;;  %p2600_p6 = scmp.lt.s32.totalorder %s26_s17, %s26_s17 }
  0x13   :  { %p2596_p5 = scmp.ne.s32.totalorder %s26_s17, %s2595_s18  ;;  %p2601_p7 = scmp.lt.s32.totalorder %s2595_s18, %s2595_s18 }
  0x15   :  { %p2602_p8 = por %p2601_p7, %p2600_p6 }
  0x17   :  { %p2603_p9 = pnand %p2602_p8, %p2596_p5 }
  0x19   :  { %2606 = shalt.err (!%p2603_p9)
}
  0x1a   :  { %s2721_s19 = smov 128   ;;  %s2722_s20 = smov 8  }
  0x1b   :  { %31 = dma.hbm_to_vmem [thread:$0]  %s3964_s0, 1024, %s26_s17, [#allocation7], %s2721_s19, %s2721_s19, %s2722_s20  }
  0x1c   :  { %s2723_s2 = smov [#allocation11]   ;;  %s2724_s24 = smov [#allocation12]  }
  0x1d   :  { %s53_s23 = sshll.u32 %s2723_s2, 4  ;;  %s65_s25 = sshll.u32 %s2724_s24, 4  ;;  %s54_s23 = int_to_ptr.vmem [resolvable:$true] %s53_s23  ;;  %s66_s25 = int_to_ptr.vmem [resolvable:$true] %s65_s25 }
  0x1e   :  { %s2615_s26 = scalar_lea.vmem %s54_s23, 8192  ;;  %p2620_p11 = scmp.lt.s32.totalorder %s54_s23, %s54_s23 }
  0x1f   :  { %p2616_p10 = scmp.ne.s32.totalorder %s54_s23, %s2615_s26  ;;  %p2621_p12 = scmp.lt.s32.totalorder %s2615_s26, %s2615_s26 }
  0x21   :  { %p2622_p13 = por %p2621_p12, %p2620_p11 }
  0x23   :  { %p2623_p0 = pnand %p2622_p13, %p2616_p10 }
  0x25   :  { %2626 = shalt.err (!%p2623_p0)
}
  0x26   :  { %59 = dma.hbm_to_vmem [thread:$0]  %s3968_s4, 8192, %s54_s23, [#allocation10], %s2718_s12, %s2718_s12, %s2719_s13  }
  0x27   :  { %s2635_s0 = scalar_lea.vmem %s66_s25, 2048  ;;  %p2640_p2 = scmp.lt.s32.totalorder %s66_s25, %s66_s25 }
  0x28   :  { %p2636_p1 = scmp.ne.s32.totalorder %s66_s25, %s2635_s0  ;;  %p2641_p3 = scmp.lt.s32.totalorder %s2635_s0, %s2635_s0 }
  0x2a   :  { %p2642_p4 = por %p2641_p3, %p2640_p2 }
  0x2c   :  { %p2643_p5 = pnand %p2642_p4, %p2636_p1 }
  0x2e   :  { %2646 = shalt.err (!%p2643_p5)
}
  0x2f   :  { %71 = dma.hbm_to_vmem [thread:$0]  %s3969_s5, 2048, %s66_s25, [#allocation13], %s2721_s19, %s2721_s19, %s2722_s20  }
  0x30   :  { %2707 = dma.done.wait [#allocation7], 1024  }
  0x31   :  { %2708 = vsyncadd [#allocation7], 4294966272 }
  0x32   :  { %2709 = dma.done.wait [#allocation10], 9216  }
  0x33   :  { %2710 = vsyncadd [#allocation10], 4294958080 }
  0x34   :  { %2711 = dma.done.wait [#allocation13], 2048  }
  0x35   :  { %2712 = vsyncadd [#allocation13], 4294965248  ;;  %v3974_v0 = vmov 0.0   ;;  %v2726_v1 = vmov 0   ;;  %v107_v2 = vld [vmem:[#allocation9 + $0x38] sm:$0xff]  ;;  %v106_v3 = vld [vmem:[#allocation9 + $0x30] sm:$0xff] }
  0x36   :  { %332 = vmatprep.mubr.f32.mxu1 %v3974_v0  ;;  %219 = vmatprep.mubr.f32.mxu0 %v3974_v0  ;;  %v103_v4 = vld [vmem:[#allocation9 + $0x18] sm:$0xff]  ;;  %v102_v5 = vld [vmem:[#allocation9 + $0x10] sm:$0xff]  ;;  %v2806_v6 = vld [vmem:[#allocation6] sm:$0xff]  ;;  %vm130_vm0 = vcmask 130048  }
  0x37   :  { %2373 = vset.pattern.permute.xlu0 %v2726_v1  ;;  %2374 = vset.pattern.permute.xlu1 %v2726_v1  ;;  %v2808_v7 = vld [vmem:[#allocation11 + $0x1e8] sm:$0xff]  ;;  %v2810_v8 = vld [vmem:[#allocation11 + $0x1e0] sm:$0xff]  ;;  %v2838_v16 = vld [vmem:[#allocation6 + $0x10] sm:$0xff] }
  0x38   :  { %296 = vmatprep.subr.mxu1 %v107_v2  ;;  %4081 = vst [vmem:[#allocation23_spill] sm:$0xff] %v2808_v7  ;;  %v2812_v9 = vld [vmem:[#allocation11 + $0x1c8] sm:$0xff]  ;;  %v2817_v10 = vld [vmem:[#allocation11 + $0x1c0] sm:$0xff]  ;;  %v2855_v23 = vld [vmem:[#allocation6 + $0x18] sm:$0xff] }
  0x39   :  { %297 = vmatpush1.msra.mxu1 %v106_v3  ;;  %v2821_v11 = vld [vmem:[#allocation6 + $0x8] sm:$0xff]  ;;  %v2826_v13 = vld [vmem:[#allocation11 + $0x1a0] sm:$0xff]  ;;  %v2909_v40 = vld [vmem:[#allocation6 + $0x30] sm:$0xff] }
  0x3a   :  { %298 = vmatprep.subr.mxu1 %v103_v4  ;;  %v2823_v12 = vld [vmem:[#allocation11 + $0x1a8] sm:$0xff]  ;;  %v2834_v15 = vld [vmem:[#allocation11 + $0x180] sm:$0xff]  ;;  %v2936_v47 = vld [vmem:[#allocation6 + $0x38] sm:$0xff] }
  0x3b   :  { %299 = vmatpush1.msra.mxu1 %v102_v5  ;;  %v2829_v14 = vld [vmem:[#allocation11 + $0x188] sm:$0xff]  ;;  %v2843_v18 = vld [vmem:[#allocation11 + $0x160] sm:$0xff]  ;;  %v2956_v53 = vld [vmem:[#allocation11 + $0x1f8] sm:$0xff] }
  0x3c   :  { %2251 = vmatmul.mubr.msk.f32.vlgmr.msra.gmra.mxu1 %vm130_vm0, %v2806_v6  ;;  %485 = vmatprep.subr.mxu1 %v2808_v7  ;;  %v2840_v17 = vld [vmem:[#allocation11 + $0x168] sm:$0xff]  ;;  %v2851_v21 = vld [vmem:[#allocation11 + $0x140] sm:$0xff]  ;;  %4097 = vst [vmem:[#allocation39_spill] sm:$0xff] %v2956_v53  ;;  %v2959_v54 = vld [vmem:[#allocation11 + $0x1f0] sm:$0xff] }
  0x3d   :  { %486 = vmatpush1.msra.mxu1 %v2810_v8  ;;  %338 = vmatprep.mubr.f32.mxu1 %v3974_v0  ;;  %v2846_v19 = vld [vmem:[#allocation11 + $0x148] sm:$0xff]  ;;  %v104_v22 = vld [vmem:[#allocation9 + $0x20] sm:$0xff]  ;;  %v2962_v55 = vld [vmem:[#allocation11 + $0x1d8] sm:$0xff] }
  0x3e   :  { %487 = vmatprep.subr.mxu1 %v2812_v9  ;;  %v105_v20 = vld [vmem:[#allocation9 + $0x28] sm:$0xff]  ;;  %v2860_v25 = vld [vmem:[#allocation11 + $0x120] sm:$0xff]  ;;  %v2969_v57 = vld [vmem:[#allocation11 + $0x1d0] sm:$0xff] }
  0x3f   :  { %488 = vmatpush1.msra.mxu1 %v2817_v10  ;;  %v2857_v24 = vld [vmem:[#allocation11 + $0x128] sm:$0xff]  ;;  %183 = vmatprep.subr.mxu0 %v105_v20  ;;  %v2868_v28 = vld [vmem:[#allocation11 + $0x100] sm:$0xff]  ;;  %v2973_v58 = vld [vmem:[#allocation11 + $0x1b8] sm:$0xff] }
  0x40   :  { %2252 = vmatmul.mubr.msk.f32.gmra.mxu1 %vm130_vm0, %v2821_v11  ;;  %489 = vmatprep.subr.mxu1 %v2823_v12  ;;  %v2863_v26 = vld [vmem:[#allocation11 + $0x108] sm:$0xff]  ;;  %4083 = vst [vmem:[#allocation25_spill] sm:$0xff] %v2868_v28  ;;  %v100_v29 = vld [vmem:[#allocation9] sm:$0xff]  ;;  %v2977_v59 = vld [vmem:[#allocation11 + $0x1b0] sm:$0xff] }
  0x41   :  { %490 = vmatpush1.msra.mxu1 %v2826_v13  ;;  %344 = vmatprep.mubr.f32.mxu1 %v3974_v0  ;;  %4082 = vst [vmem:[#allocation24_spill] sm:$0xff] %v2863_v26  ;;  %v101_v27 = vld [vmem:[#allocation9 + $0x8] sm:$0xff]  ;;  %v2872_v30 = vld [vmem:[#allocation6 + $0x20] sm:$0xff]  ;;  %v2980_v60 = vld [vmem:[#allocation11 + $0x198] sm:$0xff] }
  0x42   :  { %491 = vmatprep.subr.mxu1 %v2829_v14  ;;  %184 = vmatpush1.msra.mxu0 %v104_v22  ;;  %v2874_v31 = vld [vmem:[#allocation11 + $0xe8] sm:$0xff]  ;;  %v2877_v32 = vld [vmem:[#allocation11 + $0xe0] sm:$0xff]  ;;  %v2985_v62 = vld [vmem:[#allocation11 + $0x190] sm:$0xff] }
  0x43   :  { %492 = vmatpush1.msra.mxu1 %v2834_v15  ;;  %4084 = vst [vmem:[#allocation26_spill] sm:$0xff] %v2874_v31  ;;  %4085 = vst [vmem:[#allocation27_spill] sm:$0xff] %v2877_v32  ;;  %185 = vmatprep.subr.mxu0 %v101_v27  ;;  %v2880_v33 = vld [vmem:[#allocation11 + $0xc8] sm:$0xff]  ;;  %v2885_v34 = vld [vmem:[#allocation11 + $0xc0] sm:$0xff] }
  0x44   :  { %2253 = vmatmul.mubr.msk.f32.gmra.mxu1 %vm130_vm0, %v2838_v16  ;;  %493 = vmatprep.subr.mxu1 %v2840_v17  ;;  %v2889_v35 = vld [vmem:[#allocation6 + $0x28] sm:$0xff]  ;;  %v2894_v37 = vld [vmem:[#allocation11 + $0xa0] sm:$0xff]  ;;  %v2989_v63 = vld [vmem:[#allocation11 + $0x178] sm:$0xff] }
  0x45   :  { %494 = vmatpush1.msra.mxu1 %v2843_v18  ;;  %350 = vmatprep.mubr.f32.mxu1 %v3974_v0  ;;  %v2891_v36 = vld [vmem:[#allocation11 + $0xa8] sm:$0xff]  ;;  %v2905_v39 = vld [vmem:[#allocation11 + $0x80] sm:$0xff]  ;;  %v2993_v1 = vld [vmem:[#allocation11 + $0x170] sm:$0xff] }
  0x46   :  { %495 = vmatprep.subr.mxu1 %v2846_v19  ;;  %186 = vmatpush1.msra.mxu0 %v100_v29  ;;  %v2899_v38 = vld [vmem:[#allocation11 + $0x88] sm:$0xff]  ;;  %4087 = vst [vmem:[#allocation29_spill] sm:$0xff] %v2905_v39  ;;  %v2916_v42 = vld [vmem:[%s3965_s1] sm:$0xff]  ;;  %v2996_v2 = vld [vmem:[#allocation11 + $0x158] sm:$0xff] }
  0x47   :  { %496 = vmatpush1.msra.mxu1 %v2851_v21  ;;  %2243 = vmatmul.mubr.msk.f32.vlgmr.msra.gmra.mxu0 %vm130_vm0, %v2806_v6  ;;  %4086 = vst [vmem:[#allocation28_spill] sm:$0xff] %v2899_v38  ;;  %v2911_v41 = vld [vmem:[#allocation11 + $0x68] sm:$0xff]  ;;  %4089 = vst [vmem:[#allocation31_spill] sm:$0xff] %v2916_v42  ;;  %v2919_v43 = vld [vmem:[#allocation11 + $0x60] sm:$0xff]  ;;  %vm657_vm1 = vcmp.gt.f32.partialorder %v2916_v42, 0.0  ;;  %vm851_vm2 = vcmp.gt.f32.partialorder %v2916_v42, 1.0 }
  0x48   :  { %2254 = vmatmul.mubr.msk.f32.gmra.mxu1 %vm130_vm0, %v2855_v23  ;;  %497 = vmatprep.subr.mxu1 %v2857_v24  ;;  %4088 = vst [vmem:[#allocation30_spill] sm:$0xff] %v2911_v41  ;;  %4090 = vst [vmem:[#allocation32_spill] sm:$0xff] %v2919_v43  ;;  %v2924_v44 = vld [vmem:[#allocation11 + $0x48] sm:$0xff]  ;;  %v2262_v45 = vsel %vm657_vm1, 1.0, %v3974_v0  ;;  %v2931_v46 = vld [vmem:[#allocation11 + $0x40] sm:$0xff]  ;;  %v2266_v51 = vsel %vm851_vm2, 1.0, %v3974_v0 }
  0x49   :  { %498 = vmatpush1.msra.mxu1 %v2860_v25  ;;  %356 = vmatprep.mubr.f32.mxu1 %v3974_v0  ;;  %4091 = vst [vmem:[#allocation33_spill] sm:$0xff] %v2924_v44  ;;  %4092 = vst [vmem:[#allocation34_spill] sm:$0xff] %v2931_v46  ;;  %v2938_v48 = vld [vmem:[#allocation11 + $0x28] sm:$0xff]  ;;  %v2941_v49 = vld [vmem:[#allocation11 + $0x20] sm:$0xff]  ;;  %vm1436_vm3 = vcmp.gt.f32.partialorder %v2916_v42, 4.0  ;;  %vm1826_vm4 = vcmp.gt.f32.partialorder %v2916_v42, 6.0 }
  0x4a   :  { %499 = vmatprep.subr.mxu1 %v2863_v26  ;;  %678 = vmatprep.subr.mxu0 %v2808_v7  ;;  %4093 = vst [vmem:[#allocation35_spill] sm:$0xff] %v2938_v48  ;;  %4094 = vst [vmem:[#allocation36_spill] sm:$0xff] %v2941_v49  ;;  %v2944_v50 = vld [vmem:[#allocation11 + $0x8] sm:$0xff]  ;;  %v2951_v52 = vld [vmem:[#allocation11] sm:$0xff]  ;;  %v2278_v56 = vsel %vm1436_vm3, 1.0, %v3974_v0  ;;  %v2286_v61 = vsel %vm1826_vm4, 1.0, %v3974_v0 }
  0x4b   :  { %500 = vmatpush1.msra.mxu1 %v2868_v28  ;;  %679 = vmatpush1.msra.mxu0 %v2810_v8  ;;  %4095 = vst [vmem:[#allocation37_spill] sm:$0xff] %v2944_v50  ;;  %4096 = vst [vmem:[#allocation38_spill] sm:$0xff] %v2951_v52  ;;  %v3000_v3 = vld [vmem:[#allocation11 + $0x150] sm:$0xff]  ;;  %v3004_v4 = vld [vmem:[#allocation11 + $0x138] sm:$0xff] }
  0x4c   :  { %2255 = vmatmul.mubr.msk.f32.gmra.mxu1 %vm130_vm0, %v2872_v30  ;;  %501 = vmatprep.subr.mxu1 %v2874_v31  ;;  %v3009_v5 = vld [vmem:[#allocation11 + $0x130] sm:$0xff]  ;;  %v3013_v6 = vld [vmem:[#allocation11 + $0x118] sm:$0xff] }
  0x4d   :  { %502 = vmatpush1.msra.mxu1 %v2877_v32  ;;  %362 = vmatprep.mubr.f32.mxu1 %v3974_v0  ;;  %v3025_v20 = vld [vmem:[#allocation11 + $0xf0] sm:$0xff]  ;;  %v3029_v22 = vld [vmem:[#allocation11 + $0xd8] sm:$0xff] }
  0x4e   :  { %503 = vmatprep.subr.mxu1 %v2880_v33  ;;  %225 = vmatprep.mubr.f32.mxu0 %v3974_v0  ;;  %v3034_v27 = vld [vmem:[#allocation11 + $0xd0] sm:$0xff]  ;;  %v3038_v29 = vld [vmem:[#allocation11 + $0xb8] sm:$0xff] }
  0x4f   :  { %504 = vmatpush1.msra.mxu1 %v2885_v34  ;;  %662 = vperm.xlu0 %2373, %v2262_v45   ;;  %v3042_v45 = vld [vmem:[#allocation11 + $0xb0] sm:$0xff] }
  0x50   :  { %2256 = vmatmul.mubr.msk.f32.gmra.mxu1 %vm130_vm0, %v2889_v35  ;;  %505 = vmatprep.subr.mxu1 %v2891_v36  ;;  %4098 = vst [vmem:[#allocation40_spill] sm:$0xff] %v3042_v45  ;;  %v3067_v42 = vld [vmem:[#allocation11 + $0x50] sm:$0xff] }
  0x51   :  { %506 = vmatpush1.msra.mxu1 %v2894_v37  ;;  %368 = vmatprep.mubr.f32.mxu1 %v3974_v0  ;;  %4104 = vst [vmem:[#allocation46_spill] sm:$0xff] %v3067_v42 }
  0x52   :  { %507 = vmatprep.subr.mxu1 %v2899_v38  ;;  %680 = vmatprep.subr.mxu0 %v2812_v9 }
  0x53   :  { %508 = vmatpush1.msra.mxu1 %v2905_v39  ;;  %856 = vperm.xlu0 %2373, %v2266_v51   ;;  %v3050_v51 = vld [vmem:[#allocation11 + $0x90] sm:$0xff] }
  0x54   :  { %2257 = vmatmul.mubr.msk.f32.gmra.mxu1 %vm130_vm0, %v2909_v40  ;;  %509 = vmatprep.subr.mxu1 %v2911_v41  ;;  %4100 = vst [vmem:[#allocation42_spill] sm:$0xff] %v3050_v51 }
  0x55   :  { %510 = vmatpush1.msra.mxu1 %v2919_v43  ;;  %374 = vmatprep.mubr.f32.mxu1 %v3974_v0 }
  0x56   :  { %511 = vmatprep.subr.mxu1 %v2924_v44  ;;  %2244 = vmatmul.mubr.msk.f32.gmra.mxu0 %vm130_vm0, %v2821_v11  ;;  %v3017_v11 = vld [vmem:[#allocation11 + $0x110] sm:$0xff] }
  0x57   :  { %512 = vmatpush1.msra.mxu1 %v2931_v46  ;;  %1441 = vperm.xlu0 %2373, %v2278_v56   ;;  %v3054_v56 = vld [vmem:[#allocation11 + $0x78] sm:$0xff] }
  0x58   :  { %2258 = vmatmul.mubr.msk.f32.gmra.mxu1 %vm130_vm0, %v2936_v47  ;;  %513 = vmatprep.subr.mxu1 %v2938_v48  ;;  %4101 = vst [vmem:[#allocation43_spill] sm:$0xff] %v3054_v56 }
  0x59   :  { %514 = vmatpush1.msra.mxu1 %v2941_v49  ;;  %549 = vmatprep.mubr.f32.mxu1 %v3974_v0 }
  0x5a   :  { %515 = vmatprep.subr.mxu1 %v2944_v50  ;;  %681 = vmatpush1.msra.mxu0 %v2817_v10 }
  0x5b   :  { %516 = vmatpush1.msra.mxu1 %v2951_v52  ;;  %682 = vmatprep.subr.mxu0 %v2823_v12 }
  0x5c   :  { %550 = vmatmul.mubr.f32.vlgmr.msra.gmra.mxu1 %v3974_v0  ;;  %556 = vmatprep.subr.mxu1 %v2956_v53 }
  0x5d   :  { %557 = vmatpush1.msra.mxu1 %v2959_v54  ;;  %620 = vmatprep.mubr.f32.mxu1 %v3974_v0 }
  0x5e   :  { %558 = vmatprep.subr.mxu1 %v2962_v55  ;;  %683 = vmatpush1.msra.mxu0 %v2826_v13 }
  0x5f   :  { %559 = vmatpush1.msra.mxu1 %v2969_v57  ;;  %1831 = vperm.xlu0 %2373, %v2286_v61   ;;  %v3059_v61 = vld [vmem:[#allocation11 + $0x70] sm:$0xff] }
  0x60   :  { %560 = vmatprep.subr.mxu1 %v2973_v58  ;;  %231 = vmatprep.mubr.f32.mxu0 %v3974_v0  ;;  %4102 = vst [vmem:[#allocation44_spill] sm:$0xff] %v3059_v61 }
  0x61   :  { %561 = vmatpush1.msra.mxu1 %v2977_v59  ;;  %684 = vmatprep.subr.mxu0 %v2829_v14 }
  0x62   :  { %562 = vmatprep.subr.mxu1 %v2980_v60  ;;  %2245 = vmatmul.mubr.msk.f32.gmra.mxu0 %vm130_vm0, %v2838_v16  ;;  %v3021_v16 = vld [vmem:[#allocation11 + $0xf8] sm:$0xff] }
  0x63   :  { %563 = vmatpush1.msra.mxu1 %v2985_v62  ;;  %685 = vmatpush1.msra.mxu0 %v2834_v15 }
  0x64   :  { %564 = vmatprep.subr.mxu1 %v2989_v63  ;;  %686 = vmatprep.subr.mxu0 %v2840_v17 }
  0x65   :  { %565 = vmatpush1.msra.mxu1 %v2993_v1  ;;  %687 = vmatpush1.msra.mxu0 %v2843_v18 }
  0x66   :  { %566 = vmatprep.subr.mxu1 %v2996_v2  ;;  %237 = vmatprep.mubr.f32.mxu0 %v3974_v0 }
  0x67   :  { %567 = vmatpush1.msra.mxu1 %v3000_v3  ;;  %688 = vmatprep.subr.mxu0 %v2846_v19 }
  0x68   :  { %568 = vmatprep.subr.mxu1 %v3004_v4  ;;  %2246 = vmatmul.mubr.msk.f32.gmra.mxu0 %vm130_vm0, %v2855_v23  ;;  %v3046_v23 = vld [vmem:[#allocation11 + $0x98] sm:$0xff] }
  0x69   :  { %569 = vmatpush1.msra.mxu1 %v3009_v5  ;;  %689 = vmatpush1.msra.mxu0 %v2851_v21  ;;  %4099 = vst [vmem:[#allocation41_spill] sm:$0xff] %v3046_v23 }
  0x6a   :  { %570 = vmatprep.subr.mxu1 %v3013_v6  ;;  %690 = vmatprep.subr.mxu0 %v2857_v24 }
  0x6b   :  { %571 = vmatpush1.msra.mxu1 %v3017_v11  ;;  %691 = vmatpush1.msra.mxu0 %v2860_v25 }
  0x6c   :  { %572 = vmatprep.subr.mxu1 %v3021_v16  ;;  %243 = vmatprep.mubr.f32.mxu0 %v3974_v0  ;;  %v3063_v0 = vld [vmem:[#allocation11 + $0x58] sm:$0xff] }
  0x6d   :  { %573 = vmatpush1.msra.mxu1 %v3025_v20  ;;  %692 = vmatprep.subr.mxu0 %v2863_v26  ;;  %4103 = vst [vmem:[#allocation45_spill] sm:$0xff] %v3063_v0  ;;  %v4106_v26 = vmov 0.0  }
  0x6e   :  { %574 = vmatprep.subr.mxu1 %v3029_v22  ;;  %2247 = vmatmul.mubr.msk.f32.gmra.mxu0 %vm130_vm0, %v2872_v30  ;;  %v3071_v30 = vld [vmem:[#allocation11 + $0x38] sm:$0xff] }
  0x6f   :  { %575 = vmatpush1.msra.mxu1 %v3034_v27  ;;  %693 = vmatpush1.msra.mxu0 %v2868_v28  ;;  %4105 = vst [vmem:[#allocation47_spill] sm:$0xff] %v3071_v30  ;;  %v3075_v28 = vld [vmem:[#allocation11 + $0x30] sm:$0xff] }
  0x70   :  { %576 = vmatprep.subr.mxu1 %v3038_v29  ;;  %694 = vmatprep.subr.mxu0 %v2874_v31  ;;  %4107 = vst [vmem:[#allocation48_spill] sm:$0xff] %v3075_v28  ;;  %v3079_v31 = vld [vmem:[#allocation11 + $0x18] sm:$0xff] }
  0x71   :  { %577 = vmatpush1.msra.mxu1 %v3042_v45  ;;  %695 = vmatpush1.msra.mxu0 %v2877_v32  ;;  %4108 = vst [vmem:[#allocation49_spill] sm:$0xff] %v3079_v31  ;;  %v3084_v32 = vld [vmem:[#allocation11 + $0x10] sm:$0xff] }
  0x72   :  { %578 = vmatprep.subr.mxu1 %v3046_v23  ;;  %249 = vmatprep.mubr.f32.mxu0 %v4106_v26  ;;  %4109 = vst [vmem:[#allocation50_spill] sm:$0xff] %v3084_v32 }
  0x73   :  { %579 = vmatpush1.msra.mxu1 %v3050_v51  ;;  %696 = vmatprep.subr.mxu0 %v2880_v33 }
  0x74   :  { %580 = vmatprep.subr.mxu1 %v3054_v56  ;;  %2248 = vmatmul.mubr.msk.f32.gmra.mxu0 %vm130_vm0, %v2889_v35  ;;  %v110_v35 = vlaneseq }
  0x75   :  { %581 = vmatpush1.msra.mxu1 %v3059_v61  ;;  %697 = vmatpush1.msra.mxu0 %v2885_v34 }
  0x76   :  { %582 = vmatprep.subr.mxu1 %v3063_v0  ;;  %698 = vmatprep.subr.mxu0 %v2891_v36 }
  0x77   :  { %583 = vmatpush1.msra.mxu1 %v3067_v42  ;;  %699 = vmatpush1.msra.mxu0 %v2894_v37 }
  0x78   :  { %584 = vmatprep.subr.mxu1 %v3071_v30  ;;  %255 = vmatprep.mubr.f32.mxu0 %v4106_v26 }
  0x79   :  { %585 = vmatpush1.msra.mxu1 %v3075_v28  ;;  %700 = vmatprep.subr.mxu0 %v2899_v38 }
  0x7a   :  { %586 = vmatprep.subr.mxu1 %v3079_v31  ;;  %2249 = vmatmul.mubr.msk.f32.gmra.mxu0 %vm130_vm0, %v2909_v40  ;;  %v111_v40 = vshrl.u32 %v110_v35, 7 }
  0x7b   :  { %587 = vmatpush1.msra.mxu1 %v3084_v32  ;;  %701 = vmatpush1.msra.mxu0 %v2905_v39 }
  0x7c   :  { %621 = vmatmul.mubr.f32.vlgmr.msra.gmra.mxu1 %v4106_v26  ;;  %749 = vmatprep.subr.mxu1 %v2956_v53 }
  0x7d   :  { %750 = vmatpush1.msra.mxu1 %v2959_v54  ;;  %702 = vmatprep.subr.mxu0 %v2911_v41 }
  0x7e   :  { %751 = vmatprep.subr.mxu1 %v2962_v55  ;;  %703 = vmatpush1.msra.mxu0 %v2919_v43 }
  0x7f   :  { %752 = vmatpush1.msra.mxu1 %v2969_v57  ;;  %261 = vmatprep.mubr.f32.mxu0 %v4106_v26 }
  0x80   :  { %753 = vmatprep.subr.mxu1 %v2973_v58  ;;  %704 = vmatprep.subr.mxu0 %v2924_v44 }
  0x81   :  { %754 = vmatpush1.msra.mxu1 %v2977_v59  ;;  %2250 = vmatmul.mubr.msk.f32.gmra.mxu0 %vm130_vm0, %v2936_v47  ;;  %v120_v47 = vsub.s32 2, %v111_v40 }
  0x82   :  { %755 = vmatprep.subr.mxu1 %v2980_v60  ;;  %705 = vmatpush1.msra.mxu0 %v2931_v46 }
  0x83   :  { %756 = vmatpush1.msra.mxu1 %v2985_v62  ;;  %706 = vmatprep.subr.mxu0 %v2938_v48 }
  0x84   :  { %757 = vmatprep.subr.mxu1 %v2989_v63  ;;  %707 = vmatpush1.msra.mxu0 %v2941_v49 }
  0x85   :  { %758 = vmatpush1.msra.mxu1 %v2993_v1  ;;  %708 = vmatprep.subr.mxu0 %v2944_v50 }
  0x86   :  { %759 = vmatprep.subr.mxu1 %v2996_v2  ;;  %709 = vmatpush1.msra.mxu0 %v2951_v52  ;;  %v124_v52 = vsub.s32 3, %v111_v40 }
  0x87   :  { %760 = vmatpush1.msra.mxu1 %v3000_v3  ;;  %742 = vmatprep.mubr.f32.mxu0 %v4106_v26 }
  0x88   :  { %761 = vmatprep.subr.mxu1 %v3004_v4  ;;  %813 = vmatprep.mubr.f32.mxu1 %v4106_v26 }
  0x89   :  { %762 = vmatpush1.msra.mxu1 %v3009_v5  ;;  %873 = vmatprep.subr.mxu0 %v2808_v7  ;;  %v108_v7 = vld [vmem:[%s3967_s3] sm:$0xf] }
  0x8a   :  { %763 = vmatprep.subr.mxu1 %v3013_v6  ;;  %v3152_v49 = vrot.slane %v108_v7, %v120_v47 }
  0x8b   :  { %764 = vmatpush1.msra.mxu1 %v3017_v11 }
  0x8c   :  { %765 = vmatprep.subr.mxu1 %v3021_v16 }
  0x8d   :  { %766 = vmatpush1.msra.mxu1 %v3025_v20 }
  0x8e   :  { %767 = vmatprep.subr.mxu1 %v3029_v22 }
  0x8f   :  { %768 = vmatpush1.msra.mxu1 %v3034_v27 }
  0x90   :  { %769 = vmatprep.subr.mxu1 %v3038_v29 }
  0x91   :  { %770 = vmatpush1.msra.mxu1 %v3042_v45 }
  0x92   :  { %771 = vmatprep.subr.mxu1 %v3046_v23 }
  0x93   :  { %772 = vmatpush1.msra.mxu1 %v3050_v51 }
  0x94   :  { %773 = vmatprep.subr.mxu1 %v3054_v56 }
  0x95   :  { %774 = vmatpush1.msra.mxu1 %v3059_v61 }
  0x96   :  { %775 = vmatprep.subr.mxu1 %v3063_v0 }
  0x97   :  { %776 = vmatpush1.msra.mxu1 %v3067_v42 }
  0x98   :  { %777 = vmatprep.subr.mxu1 %v3071_v30 }
  0x99   :  { %778 = vmatpush1.msra.mxu1 %v3075_v28 }
  0x9a   :  { %779 = vmatprep.subr.mxu1 %v3079_v31  ;;  %v3154_v31 = vrot.slane %v108_v7, %v124_v52 }
  0x9b   :  { %780 = vmatpush1.msra.mxu1 %v3084_v32 }
  0x9c   :  { %944 = vmatprep.subr.mxu1 %v2956_v53 }
  0xfc   :  { %v3148_v26 = vpop.f32.mrf.mxu1 }
  0xfe   :  { %v3150_v50 = vpop.f32.mrf.mxu1 }
 0x100   :  { %v340_v28 = vpop.f32.mrf.mxu1 }
 0x101   :  { %v3157_v32 = vadd.f32 %v340_v28, %v3152_v49 }
 0x102   :  { %v342_v53 = vpop.f32.mrf.mxu1 }
 0x103   :  { %4110 = vst [vmem:[#allocation51_spill] sm:$0xff] %v3157_v32  ;;  %v3160_v35 = vadd.f32 %v342_v53, %v3154_v31 }
 0x104   :  { %v346_v30 = vpop.f32.mrf.mxu1 }
 0x105   :  { %4111 = vst [vmem:[#allocation52_spill] sm:$0xff] %v3160_v35  ;;  %v3163_v48 = vadd.f32 %v346_v30, %v3152_v49 }
 0x106   :  { %v348_v42 = vpop.f32.mrf.mxu1 }
 0x107   :  { %4112 = vst [vmem:[#allocation53_spill] sm:$0xff] %v3163_v48  ;;  %v3166_v46 = vadd.f32 %v348_v42, %v3154_v31 }
 0x108   :  { %v352_v47 = vpop.f32.mrf.mxu1 }
 0x109   :  { %4113 = vst [vmem:[#allocation54_spill] sm:$0xff] %v3166_v46  ;;  %v3169_v0 = vadd.f32 %v352_v47, %v3152_v49 }
 0x10a   :  { %v354_v52 = vpop.f32.mrf.mxu1 }
 0x10b   :  { %4114 = vst [vmem:[#allocation55_spill] sm:$0xff] %v3169_v0  ;;  %v3172_v28 = vadd.f32 %v354_v52, %v3154_v31 }
 0x10c   :  { %v358_v32 = vpop.f32.mrf.mxu1 }
 0x10d   :  { %4115 = vst [vmem:[#allocation56_spill] sm:$0xff] %v3172_v28  ;;  %v3175_v53 = vadd.f32 %v358_v32, %v3152_v49  ;;  %v116_v28 = vsub.s32 1, %v111_v40  ;;  %v112_v32 = vsub.s32 0, %v111_v40 }
 0x10e   :  { %v360_v35 = vpop.f32.mrf.mxu1 }
 0x10f   :  { %4116 = vst [vmem:[#allocation57_spill] sm:$0xff] %v3175_v53  ;;  %v3178_v30 = vadd.f32 %v360_v35, %v3154_v31  ;;  %v221_v53 = vpop.f32.mrf.mxu0 }
 0x110   :  { %v364_v48 = vpop.f32.mrf.mxu1 }
 0x111   :  { %4117 = vst [vmem:[#allocation58_spill] sm:$0xff] %v3178_v30  ;;  %v3181_v42 = vadd.f32 %v364_v48, %v3152_v49  ;;  %v3195_v48 = vrot.slane %v108_v7, %v116_v28 }
 0x112   :  { %v366_v46 = vpop.f32.mrf.mxu1 }
 0x113   :  { %4118 = vst [vmem:[#allocation59_spill] sm:$0xff] %v3181_v42  ;;  %v3184_v47 = vadd.f32 %v366_v46, %v3154_v31  ;;  %4123 = vst [vmem:[#allocation64_spill] sm:$0xff] %v3195_v48  ;;  %v3197_v42 = vrot.slane %v108_v7, %v112_v32 }
 0x114   :  { %v370_v0 = vpop.f32.mrf.mxu1 }
 0x115   :  { %4119 = vst [vmem:[#allocation60_spill] sm:$0xff] %v3184_v47  ;;  %v3187_v52 = vadd.f32 %v370_v0, %v3152_v49  ;;  %v223_v47 = vpop.f32.mrf.mxu0 }
 0x116   :  { %v372_v44 = vpop.f32.mrf.mxu1  ;;  %v224_v40 = vadd.f32 %v223_v47, %v3195_v48 }
 0x117   :  { %4120 = vst [vmem:[#allocation61_spill] sm:$0xff] %v3187_v52  ;;  %v3190_v61 = vadd.f32 %v372_v44, %v3154_v31  ;;  %v3203_v43 = vpop.f32.mrf.mxu0  ;;  %v222_v44 = vadd.f32 %v221_v53, %v3197_v42 }
 0x118   :  { %v376_v35 = vpop.f32.mrf.mxu1 }
 0x119   :  { %4121 = vst [vmem:[#allocation62_spill] sm:$0xff] %v3190_v61  ;;  %v3193_v30 = vadd.f32 %v376_v35, %v3152_v49  ;;  %v3206_v35 = vpop.f32.mrf.mxu0 }
 0x11a   :  { %v378_v46 = vpop.f32.mrf.mxu1 }
 0x11b   :  { %4122 = vst [vmem:[#allocation63_spill] sm:$0xff] %v3193_v30  ;;  %v3200_v0 = vadd.f32 %v378_v46, %v3154_v31 }
 0x11c   :  { %v551_v52 = vpop.f32.mrf.mxu1 }
 0x11d   :  { %4124 = vst [vmem:[#allocation65_spill] sm:$0xff] %v3200_v0  ;;  %v627_v28 = vadd.f32 %v551_v52, %v222_v44 }
 0x11e   :  { %v553_v61 = vpop.f32.mrf.mxu1 }
 0x11f   :  { %v628_v56 = vadd.f32 %v553_v61, %v224_v40  ;;  %v2259_v32 = vmul.f32 -1.442695, %v627_v28 }
 0x121   :  { %v2260_v30 = vmul.f32 -1.442695, %v628_v56 }
 0x122   :  { %v233_v7 = vpop.f32.mrf.mxu0 }
 0x123   :  { %v3209_v41 = vadd.f32 %v233_v7, %v3197_v42  ;;  %2375 = vpow2.f32 %v2260_v30 }
 0x124   :  { %v235_v46 = vpop.f32.mrf.mxu0  ;;  %2377 = vpow2.f32 %v2259_v32 }
 0x125   :  { %4125 = vst [vmem:[#allocation66_spill] sm:$0xff] %v3209_v41  ;;  %v3212_v0 = vadd.f32 %v235_v46, %v3195_v48 }
 0x127   :  { %4126 = vst [vmem:[#allocation67_spill] sm:$0xff] %v3212_v0 }
 0x128   :  { %v239_v47 = vpop.f32.mrf.mxu0 }
 0x129   :  { %v3215_v53 = vadd.f32 %v239_v47, %v3197_v42 }
 0x12a   :  { %v241_v61 = vpop.f32.mrf.mxu0 }
 0x12b   :  { %4127 = vst [vmem:[#allocation68_spill] sm:$0xff] %v3215_v53  ;;  %v3218_v40 = vadd.f32 %v241_v61, %v3195_v48 }
 0x12d   :  { %4128 = vst [vmem:[#allocation69_spill] sm:$0xff] %v3218_v40 }
 0x12e   :  { %v245_v56 = vpop.f32.mrf.mxu0 }
 0x12f   :  { %v3221_v52 = vadd.f32 %v245_v56, %v3197_v42  ;;  %v335_v56 = vadd.f32 %v3148_v26, %v3152_v49 }
 0x130   :  { %v247_v44 = vpop.f32.mrf.mxu0  ;;  %v2376_v7 = vpop.eup %2375 }
 0x131   :  { %4129 = vst [vmem:[#allocation70_spill] sm:$0xff] %v3221_v52  ;;  %v3224_v28 = vadd.f32 %v247_v44, %v3195_v48  ;;  %v2378_v46 = vpop.eup %2377  ;;  %v640_v47 = vadd.f32 1.0, %v2376_v7  ;;  %v337_v44 = vadd.f32 %v3150_v50, %v3154_v31 }
 0x132   :  { %v634_v0 = vadd.f32 1.0, %v2378_v46 }
 0x133   :  { %4130 = vst [vmem:[#allocation71_spill] sm:$0xff] %v3224_v28  ;;  %2379 = vrcp.f32 %v640_v47 }
 0x134   :  { %v251_v30 = vpop.f32.mrf.mxu0  ;;  %2381 = vrcp.f32 %v634_v0 }
 0x135   :  { %v3227_v32 = vadd.f32 %v251_v30, %v3197_v42 }
 0x136   :  { %v253_v53 = vpop.f32.mrf.mxu0 }
 0x137   :  { %4131 = vst [vmem:[#allocation72_spill] sm:$0xff] %v3227_v32  ;;  %v3230_v61 = vadd.f32 %v253_v53, %v3195_v48  ;;  %v4151_v32 = vld [vmem:[#allocation36_spill] sm:$0xff] }
 0x139   :  { %4132 = vst [vmem:[#allocation73_spill] sm:$0xff] %v3230_v61 }
 0x13a   :  { %v257_v41 = vpop.f32.mrf.mxu0 }
 0x13b   :  { %v3237_v7 = vadd.f32 %v257_v41, %v3197_v42 }
 0x13c   :  { %v622_v52 = vpop.f32.mrf.mxu1  ;;  %v259_v46 = vpop.f32.mrf.mxu0 }
 0x13d   :  { %v629_v28 = vadd.f32 %v622_v52, %v335_v56  ;;  %4133 = vst [vmem:[#allocation74_spill] sm:$0xff] %v3237_v7  ;;  %v3240_v61 = vadd.f32 %v259_v46, %v3195_v48  ;;  %v3248_v46 = vpop.permute.xlu0 %662  ;;  %v4150_v7 = vld [vmem:[#allocation47_spill] sm:$0xff] }
 0x13e   :  { %v624_v40 = vpop.f32.mrf.mxu1 }
 0x13f   :  { %2383 = vtanh.f32 %v629_v28  ;;  %v630_v30 = vadd.f32 %v624_v40, %v337_v44  ;;  %4134 = vst [vmem:[#allocation75_spill] sm:$0xff] %v3240_v61  ;;  %v4149_v61 = vld [vmem:[#allocation35_spill] sm:$0xff] }
 0x140   :  { %v2380_v31 = vpop.eup %2379 }
 0x141   :  { %v2261_v53 = vmul.f32 -1.442695, %v630_v30  ;;  %v263_v26 = vpop.f32.mrf.mxu0  ;;  %v2382_v50 = vpop.eup %2381  ;;  %v650_v52 = vmul.f32 0.0, %v2380_v31  ;;  %v4138_v31 = vld [vmem:[#allocation25_spill] sm:$0xff] }
 0x142   :  { %v3243_v49 = vadd.f32 %v263_v26, %v3197_v42  ;;  %v4137_v26 = vld [vmem:[#allocation24_spill] sm:$0xff] }
 0x143   :  { %2385 = vpow2.f32 %v2261_v53 }
 0x144   :  { %4135 = vst [vmem:[#allocation76_spill] sm:$0xff] %v3243_v49  ;;  %v4148_v49 = vld [vmem:[#allocation46_spill] sm:$0xff] }
 0x14c   :  { %v2384_v0 = vpop.eup %2383 }
 0x14d   :  { %v651_v47 = vmul.f32 %v2384_v0, %v2382_v50  ;;  %v4139_v50 = vld [vmem:[#allocation26_spill] sm:$0xff]  ;;  %v4140_v0 = vld [vmem:[#allocation27_spill] sm:$0xff] }
 0x14f   :  { %v3245_v28 = vadd.f32 %v651_v47, %v650_v52  ;;  %v4141_v52 = vld [vmem:[#allocation30_spill] sm:$0xff]  ;;  %v4142_v47 = vld [vmem:[#allocation43_spill] sm:$0xff] }
 0x150   :  { %v2386_v40 = vpop.eup %2385 }
 0x151   :  { %v647_v41 = vadd.f32 1.0, %v2386_v40  ;;  %2387 = vtanh.f32 %v3245_v28  ;;  %v4143_v40 = vld [vmem:[#allocation32_spill] sm:$0xff] }
 0x153   :  { %2389 = vrcp.f32 %v647_v41  ;;  %v4144_v41 = vld [vmem:[#allocation44_spill] sm:$0xff] }
 0x15e   :  { %v2388_v56 = vpop.eup %2387 }
 0x160   :  { %v2390_v44 = vpop.eup %2389 }
 0x161   :  { %v654_v30 = vmul.f32 %v2390_v44, %v2388_v56  ;;  %v4145_v56 = vld [vmem:[#allocation33_spill] sm:$0xff] }
 0x162   :  { %v4146_v44 = vld [vmem:[#allocation45_spill] sm:$0xff] }
 0x163   :  { %v3251_v53 = vmul.f32 %v3248_v46, %v654_v30  ;;  %v4147_v30 = vld [vmem:[#allocation34_spill] sm:$0xff] }
 0x165   :  { %4136 = vst [vmem:[#allocation77_spill] sm:$0xff] %v3251_v53  ;;  %743 = vmatmul.mubr.f32.vlgmr.msra.gmra.mxu0 %v3251_v53  ;;  %814 = vmatmul.mubr.f32.vlgmr.msra.gmra.mxu1 %v3251_v53 }
 0x166   :  { %874 = vmatpush1.msra.mxu0 %v2810_v8  ;;  %945 = vmatpush1.msra.mxu1 %v2959_v54 }
 0x167   :  { %875 = vmatprep.subr.mxu0 %v2812_v9  ;;  %946 = vmatprep.subr.mxu1 %v2962_v55 }
 0x168   :  { %876 = vmatpush1.msra.mxu0 %v2817_v10  ;;  %947 = vmatpush1.msra.mxu1 %v2969_v57 }
 0x169   :  { %877 = vmatprep.subr.mxu0 %v2823_v12  ;;  %948 = vmatprep.subr.mxu1 %v2973_v58 }
 0x16a   :  { %878 = vmatpush1.msra.mxu0 %v2826_v13  ;;  %949 = vmatpush1.msra.mxu1 %v2977_v59 }
 0x16b   :  { %879 = vmatprep.subr.mxu0 %v2829_v14  ;;  %950 = vmatprep.subr.mxu1 %v2980_v60 }
 0x16c   :  { %880 = vmatpush1.msra.mxu0 %v2834_v15  ;;  %951 = vmatpush1.msra.mxu1 %v2985_v62 }
 0x16d   :  { %881 = vmatprep.subr.mxu0 %v2840_v17  ;;  %952 = vmatprep.subr.mxu1 %v2989_v63 }
 0x16e   :  { %882 = vmatpush1.msra.mxu0 %v2843_v18  ;;  %953 = vmatpush1.msra.mxu1 %v2993_v1 }
 0x16f   :  { %883 = vmatprep.subr.mxu0 %v2846_v19  ;;  %954 = vmatprep.subr.mxu1 %v2996_v2 }
 0x170   :  { %884 = vmatpush1.msra.mxu0 %v2851_v21  ;;  %955 = vmatpush1.msra.mxu1 %v3000_v3 }
 0x171   :  { %885 = vmatprep.subr.mxu0 %v2857_v24  ;;  %956 = vmatprep.subr.mxu1 %v3004_v4 }
 0x172   :  { %886 = vmatpush1.msra.mxu0 %v2860_v25  ;;  %957 = vmatpush1.msra.mxu1 %v3009_v5 }
 0x173   :  { %887 = vmatprep.subr.mxu0 %v4137_v26  ;;  %958 = vmatprep.subr.mxu1 %v3013_v6 }
 0x174   :  { %888 = vmatpush1.msra.mxu0 %v4138_v31  ;;  %959 = vmatpush1.msra.mxu1 %v3017_v11 }
 0x175   :  { %889 = vmatprep.subr.mxu0 %v4139_v50  ;;  %960 = vmatprep.subr.mxu1 %v3021_v16 }
 0x176   :  { %890 = vmatpush1.msra.mxu0 %v4140_v0  ;;  %961 = vmatpush1.msra.mxu1 %v3025_v20 }
 0x177   :  { %891 = vmatprep.subr.mxu0 %v2880_v33  ;;  %962 = vmatprep.subr.mxu1 %v3029_v22 }
 0x178   :  { %892 = vmatpush1.msra.mxu0 %v2885_v34  ;;  %963 = vmatpush1.msra.mxu1 %v3034_v27 }
 0x179   :  { %893 = vmatprep.subr.mxu0 %v2891_v36  ;;  %964 = vmatprep.subr.mxu1 %v3038_v29 }
 0x17a   :  { %894 = vmatpush1.msra.mxu0 %v2894_v37  ;;  %965 = vmatpush1.msra.mxu1 %v3042_v45 }
 0x17b   :  { %895 = vmatprep.subr.mxu0 %v2899_v38  ;;  %966 = vmatprep.subr.mxu1 %v3046_v23  ;;  %v4163_v23 = vld [vmem:[#allocation51_spill] sm:$0xff] }
 0x17c   :  { %896 = vmatpush1.msra.mxu0 %v2905_v39  ;;  %967 = vmatpush1.msra.mxu1 %v3050_v51 }
 0x17d   :  { %897 = vmatprep.subr.mxu0 %v4141_v52  ;;  %968 = vmatprep.subr.mxu1 %v4142_v47  ;;  %v4152_v52 = vld [vmem:[#allocation48_spill] sm:$0xff]  ;;  %v4153_v47 = vld [vmem:[#allocation37_spill] sm:$0xff] }
 0x17e   :  { %898 = vmatpush1.msra.mxu0 %v4143_v40  ;;  %969 = vmatpush1.msra.mxu1 %v4144_v41  ;;  %v4154_v40 = vld [vmem:[#allocation49_spill] sm:$0xff]  ;;  %v4155_v41 = vld [vmem:[#allocation38_spill] sm:$0xff] }
 0x17f   :  { %899 = vmatprep.subr.mxu0 %v4145_v56  ;;  %970 = vmatprep.subr.mxu1 %v4146_v44  ;;  %v4156_v56 = vmov 0.0   ;;  %v4157_v44 = vld [vmem:[#allocation50_spill] sm:$0xff] }
 0x180   :  { %900 = vmatpush1.msra.mxu0 %v4147_v30  ;;  %971 = vmatpush1.msra.mxu1 %v4148_v49  ;;  %v4158_v49 = vld [vmem:[#allocation23_spill] sm:$0xff] }
 0x181   :  { %901 = vmatprep.subr.mxu0 %v4149_v61  ;;  %972 = vmatprep.subr.mxu1 %v4150_v7  ;;  %v4159_v61 = vld [vmem:[#allocation39_spill] sm:$0xff] }
 0x182   :  { %902 = vmatpush1.msra.mxu0 %v4151_v32  ;;  %973 = vmatpush1.msra.mxu1 %v4152_v52  ;;  %v4160_v7 = vld [vmem:[#allocation31_spill] sm:$0xff] }
 0x183   :  { %903 = vmatprep.subr.mxu0 %v4153_v47  ;;  %974 = vmatprep.subr.mxu1 %v4154_v40  ;;  %vm1046_vm5 = vcmp.gt.f32.partialorder %v4160_v7, 2.0  ;;  %vm1241_vm6 = vcmp.gt.f32.partialorder %v4160_v7, 3.0  ;;  %vm1631_vm7 = vcmp.gt.f32.partialorder %v4160_v7, 5.0  ;;  %vm2021_vm8 = vcmp.gt.f32.partialorder %v4160_v7, 7.0 }
 0x184   :  { %904 = vmatpush1.msra.mxu0 %v4155_v41  ;;  %937 = vmatprep.mubr.f32.mxu0 %v4156_v56  ;;  %v2270_v47 = vsel %vm1046_vm5, 1.0, %v4156_v56  ;;  %v2274_v40 = vsel %vm1241_vm6, 1.0, %v4156_v56  ;;  %v228_v41 = vadd.f32 %v3203_v43, %v3197_v42 }
 0x185   :  { %975 = vmatpush1.msra.mxu1 %v4157_v44  ;;  %1008 = vmatprep.mubr.f32.mxu1 %v4156_v56  ;;  %v2282_v44 = vsel %vm1631_vm7, 1.0, %v4156_v56 }
 0x186   :  { %1068 = vmatprep.subr.mxu0 %v4158_v49  ;;  %1139 = vmatprep.subr.mxu1 %v4159_v61  ;;  %v2290_v49 = vsel %vm2021_vm8, 1.0, %v4156_v56  ;;  %v3329_v61 = vpop.f32.mrf.mxu0  ;;  %v4162_v56 = vld [vmem:[#allocation52_spill] sm:$0xff] }
 0x187   :  { %1051 = vperm.xlu1 %2374, %v2270_v47   ;;  %4161 = vst [vmem:[#allocation24_spill] sm:$0xff] %v3329_v61  ;;  %v230_v47 = vadd.f32 %v3206_v35, %v3195_v48  ;;  %v3677_v48 = vld [vmem:[#allocation11 + $0xb0] sm:$0xff] }
 0x18b   :  { %1246 = vperm.xlu1 %2374, %v2274_v40  }
 0x18f   :  { %1636 = vperm.xlu1 %2374, %v2282_v44  }
 0x193   :  { %2026 = vperm.xlu1 %2374, %v2290_v49  }
 0x225   :  { %v744_v52 = vpop.f32.mrf.mxu0  ;;  %v815_v39 = vpop.f32.mrf.mxu1 }
 0x226   :  { %v820_v32 = vadd.f32 %v744_v52, %v228_v41  ;;  %v822_v61 = vadd.f32 %v815_v39, %v4163_v23  ;;  %v3339_v23 = vpop.permute.xlu0 %856 }
 0x227   :  { %v746_v30 = vpop.f32.mrf.mxu0  ;;  %v817_v44 = vpop.f32.mrf.mxu1  ;;  %4164 = vst [vmem:[#allocation25_spill] sm:$0xff] %v3339_v23 }
 0x228   :  { %v2263_v40 = vmul.f32 -1.442695, %v820_v32  ;;  %v821_v51 = vadd.f32 %v746_v30, %v230_v47  ;;  %v823_v49 = vadd.f32 %v817_v44, %v4162_v56 }
 0x22a   :  { %2391 = vpow2.f32 %v2263_v40  ;;  %v2264_v7 = vmul.f32 -1.442695, %v821_v51  ;;  %v2265_v38 = vmul.f32 -1.442695, %v823_v49  ;;  %v671_v51 = vmul.f32 %v3248_v46, %v3245_v28 }
 0x22c   :  { %2393 = vpow2.f32 %v2264_v7 }
 0x22d   :  { %2395 = vtanh.f32 %v822_v61 }
 0x22e   :  { %2397 = vpow2.f32 %v2265_v38 }
 0x237   :  { %v2392_v45 = vpop.eup %2391 }
 0x238   :  { %v827_v43 = vadd.f32 1.0, %v2392_v45 }
 0x239   :  { %v2394_v42 = vpop.eup %2393 }
 0x23a   :  { %2399 = vrcp.f32 %v827_v43  ;;  %v833_v35 = vadd.f32 1.0, %v2394_v42  ;;  %v2396_v32 = vpop.eup %2395  ;;  %v4187_v42 = vld [vmem:[#allocation50_spill] sm:$0xff] }
 0x23b   :  { %v2398_v52 = vpop.eup %2397 }
 0x23c   :  { %2401 = vrcp.f32 %v833_v35  ;;  %v840_v56 = vadd.f32 1.0, %v2398_v52  ;;  %v3418_v35 = vld [vmem:[#allocation11 + $0x1e8] sm:$0xff] }
 0x23d   :  { %4188 = vst [vmem:[#allocation27_spill] sm:$0xff] %v3418_v35 }
 0x23e   :  { %2403 = vrcp.f32 %v840_v56  ;;  %v4191_v56 = vld [vmem:[#allocation67_spill] sm:$0xff] }
 0x247   :  { %v2400_v41 = vpop.eup %2399 }
 0x248   :  { %v844_v30 = vmul.f32 %v2400_v41, %v2396_v32  ;;  %v4189_v32 = vld [vmem:[#allocation39_spill] sm:$0xff]  ;;  %v4190_v41 = vld [vmem:[#allocation66_spill] sm:$0xff] }
 0x249   :  { %v2402_v47 = vpop.eup %2401 }
 0x24a   :  { %v843_v40 = vmul.f32 %v2402_v47, %v671_v51 }
 0x24b   :  { %v2404_v7 = vpop.eup %2403 }
 0x24c   :  { %v845_v39 = vadd.f32 %v844_v30, %v843_v40 }
 0x24e   :  { %2405 = vtanh.f32 %v845_v39  ;;  %v865_v45 = vsub.f32 %v845_v39, %v671_v51 }
 0x250   :  { %v866_v38 = vmul.f32 %v865_v45, %v3339_v23 }
 0x252   :  { %v3342_v61 = vadd.f32 %v866_v38, %v671_v51 }
 0x25b   :  { %v2406_v44 = vpop.eup %2405 }
 0x25c   :  { %v3344_v49 = vmul.f32 %v2406_v44, %v2404_v7  ;;  %v4192_v7 = vld [vmem:[#allocation54_spill] sm:$0xff] }
 0x25e   :  { %4165 = vst [vmem:[#allocation26_spill] sm:$0xff] %v3344_v49  ;;  %v862_v28 = vsub.f32 %v3344_v49, %v3251_v53  ;;  %v3701_v49 = vld [vmem:[#allocation11 + $0x50] sm:$0xff] }
 0x260   :  { %v863_v46 = vmul.f32 %v862_v28, %v3339_v23  ;;  %v4193_v28 = vld [vmem:[#allocation53_spill] sm:$0xff]  ;;  %v3697_v23 = vld [vmem:[#allocation11 + $0x58] sm:$0xff] }
 0x262   :  { %v3350_v43 = vadd.f32 %v863_v46, %v3251_v53  ;;  %v3705_v53 = vld [vmem:[#allocation11 + $0x38] sm:$0xff] }
 0x264   :  { %938 = vmatmul.mubr.f32.vlgmr.msra.gmra.mxu0 %v3350_v43  ;;  %1009 = vmatmul.mubr.f32.vlgmr.msra.gmra.mxu1 %v3350_v43 }
 0x265   :  { %1069 = vmatpush1.msra.mxu0 %v2810_v8  ;;  %1140 = vmatpush1.msra.mxu1 %v2959_v54  ;;  %v4166_v8 = vld [vmem:[#allocation40_spill] sm:$0xff] }
 0x266   :  { %1070 = vmatprep.subr.mxu0 %v2812_v9  ;;  %1141 = vmatprep.subr.mxu1 %v2962_v55  ;;  %v4167_v9 = vld [vmem:[#allocation28_spill] sm:$0xff] }
 0x267   :  { %1071 = vmatpush1.msra.mxu0 %v2817_v10  ;;  %1142 = vmatpush1.msra.mxu1 %v2969_v57  ;;  %v4168_v10 = vld [vmem:[#allocation41_spill] sm:$0xff] }
 0x268   :  { %1072 = vmatprep.subr.mxu0 %v2823_v12  ;;  %1143 = vmatprep.subr.mxu1 %v2973_v58  ;;  %v4169_v12 = vld [vmem:[#allocation29_spill] sm:$0xff] }
 0x269   :  { %1073 = vmatpush1.msra.mxu0 %v2826_v13  ;;  %1144 = vmatpush1.msra.mxu1 %v2977_v59  ;;  %v4170_v13 = vld [vmem:[#allocation42_spill] sm:$0xff] }
 0x26a   :  { %1074 = vmatprep.subr.mxu0 %v2829_v14  ;;  %1145 = vmatprep.subr.mxu1 %v2980_v60  ;;  %v4171_v14 = vld [vmem:[#allocation30_spill] sm:$0xff] }
 0x26b   :  { %1075 = vmatpush1.msra.mxu0 %v2834_v15  ;;  %1146 = vmatpush1.msra.mxu1 %v2985_v62  ;;  %v4172_v15 = vld [vmem:[#allocation43_spill] sm:$0xff] }
 0x26c   :  { %1076 = vmatprep.subr.mxu0 %v2840_v17  ;;  %1147 = vmatprep.subr.mxu1 %v2989_v63  ;;  %v4173_v17 = vld [vmem:[#allocation32_spill] sm:$0xff] }
 0x26d   :  { %1077 = vmatpush1.msra.mxu0 %v2843_v18  ;;  %1148 = vmatpush1.msra.mxu1 %v2993_v1  ;;  %v4174_v18 = vld [vmem:[#allocation44_spill] sm:$0xff] }
 0x26e   :  { %1078 = vmatprep.subr.mxu0 %v2846_v19  ;;  %1149 = vmatprep.subr.mxu1 %v2996_v2  ;;  %v4175_v19 = vld [vmem:[#allocation33_spill] sm:$0xff] }
 0x26f   :  { %1079 = vmatpush1.msra.mxu0 %v2851_v21  ;;  %1150 = vmatpush1.msra.mxu1 %v3000_v3  ;;  %v4176_v21 = vld [vmem:[#allocation45_spill] sm:$0xff] }
 0x270   :  { %1080 = vmatprep.subr.mxu0 %v2857_v24  ;;  %1151 = vmatprep.subr.mxu1 %v3004_v4  ;;  %v4177_v24 = vld [vmem:[#allocation34_spill] sm:$0xff] }
 0x271   :  { %1081 = vmatpush1.msra.mxu0 %v2860_v25  ;;  %1152 = vmatpush1.msra.mxu1 %v3009_v5  ;;  %v4178_v25 = vld [vmem:[#allocation46_spill] sm:$0xff] }
 0x272   :  { %1082 = vmatprep.subr.mxu0 %v4137_v26  ;;  %1153 = vmatprep.subr.mxu1 %v3013_v6  ;;  %v4183_v26 = vld [vmem:[#allocation37_spill] sm:$0xff] }
 0x273   :  { %1083 = vmatpush1.msra.mxu0 %v4138_v31  ;;  %1154 = vmatpush1.msra.mxu1 %v3017_v11  ;;  %v4184_v31 = vld [vmem:[#allocation49_spill] sm:$0xff] }
 0x274   :  { %1084 = vmatprep.subr.mxu0 %v4139_v50  ;;  %1155 = vmatprep.subr.mxu1 %v3021_v16  ;;  %v4185_v50 = vld [vmem:[#allocation38_spill] sm:$0xff] }
 0x275   :  { %1085 = vmatpush1.msra.mxu0 %v4140_v0  ;;  %1156 = vmatpush1.msra.mxu1 %v3025_v20  ;;  %v4186_v0 = vmov 0.0  }
 0x276   :  { %1086 = vmatprep.subr.mxu0 %v2880_v33  ;;  %1157 = vmatprep.subr.mxu1 %v3029_v22  ;;  %v4179_v33 = vld [vmem:[#allocation35_spill] sm:$0xff] }
 0x277   :  { %1087 = vmatpush1.msra.mxu0 %v2885_v34  ;;  %1158 = vmatpush1.msra.mxu1 %v3034_v27  ;;  %v4180_v34 = vld [vmem:[#allocation47_spill] sm:$0xff]  ;;  %4215 = vst [vmem:[#allocation35_spill] sm:$0xff] %v3697_v23 }
 0x278   :  { %1088 = vmatprep.subr.mxu0 %v2891_v36  ;;  %1159 = vmatprep.subr.mxu1 %v3038_v29  ;;  %v4181_v36 = vld [vmem:[#allocation36_spill] sm:$0xff]  ;;  %4216 = vst [vmem:[#allocation47_spill] sm:$0xff] %v3701_v49 }
 0x279   :  { %1089 = vmatpush1.msra.mxu0 %v2894_v37  ;;  %1160 = vmatpush1.msra.mxu1 %v4166_v8  ;;  %v4182_v37 = vld [vmem:[#allocation48_spill] sm:$0xff]  ;;  %4217 = vst [vmem:[#allocation36_spill] sm:$0xff] %v3705_v53 }
 0x27a   :  { %1090 = vmatprep.subr.mxu0 %v4167_v9  ;;  %1161 = vmatprep.subr.mxu1 %v4168_v10 }
 0x27b   :  { %1091 = vmatpush1.msra.mxu0 %v4169_v12  ;;  %1162 = vmatpush1.msra.mxu1 %v4170_v13 }
 0x27c   :  { %1092 = vmatprep.subr.mxu0 %v4171_v14  ;;  %1163 = vmatprep.subr.mxu1 %v4172_v15 }
 0x27d   :  { %1093 = vmatpush1.msra.mxu0 %v4173_v17  ;;  %1164 = vmatpush1.msra.mxu1 %v4174_v18 }
 0x27e   :  { %1094 = vmatprep.subr.mxu0 %v4175_v19  ;;  %1165 = vmatprep.subr.mxu1 %v4176_v21 }
 0x27f   :  { %1095 = vmatpush1.msra.mxu0 %v4177_v24  ;;  %1166 = vmatpush1.msra.mxu1 %v4178_v25 }
 0x280   :  { %1096 = vmatprep.subr.mxu0 %v4179_v33  ;;  %1167 = vmatprep.subr.mxu1 %v4180_v34 }
 0x281   :  { %1097 = vmatpush1.msra.mxu0 %v4181_v36  ;;  %1168 = vmatpush1.msra.mxu1 %v4182_v37 }
 0x282   :  { %1098 = vmatprep.subr.mxu0 %v4183_v26  ;;  %1169 = vmatprep.subr.mxu1 %v4184_v31 }
 0x283   :  { %1099 = vmatpush1.msra.mxu0 %v4185_v50  ;;  %1132 = vmatprep.mubr.f32.mxu0 %v4186_v0 }
 0x284   :  { %1170 = vmatpush1.msra.mxu1 %v4187_v42  ;;  %1203 = vmatprep.mubr.f32.mxu1 %v4186_v0 }
 0x285   :  { %1263 = vmatprep.subr.mxu0 %v3418_v35  ;;  %1334 = vmatprep.subr.mxu1 %v4189_v32 }
 0x324   :  { %v939_v52 = vpop.f32.mrf.mxu0  ;;  %v1010_v39 = vpop.f32.mrf.mxu1 }
 0x325   :  { %v1015_v51 = vadd.f32 %v939_v52, %v4190_v41  ;;  %v1017_v46 = vadd.f32 %v1010_v39, %v4193_v28  ;;  %v3444_v28 = vld [vmem:[#allocation11 + $0x1e0] sm:$0xff] }
 0x326   :  { %v941_v30 = vpop.f32.mrf.mxu0  ;;  %v1012_v38 = vpop.f32.mrf.mxu1 }
 0x327   :  { %v2267_v47 = vmul.f32 -1.442695, %v1015_v51  ;;  %v1016_v40 = vadd.f32 %v941_v30, %v4191_v56  ;;  %v1018_v44 = vadd.f32 %v1012_v38, %v4192_v7  ;;  %v3427_v51 = vpop.permute.xlu1 %1051 }
 0x328   :  { %4194 = vst [vmem:[#allocation23_spill] sm:$0xff] %v3427_v51 }
 0x329   :  { %2407 = vpow2.f32 %v2267_v47  ;;  %v2268_v45 = vmul.f32 -1.442695, %v1016_v40  ;;  %v2269_v9 = vmul.f32 -1.442695, %v1018_v44 }
 0x32b   :  { %2409 = vpow2.f32 %v2268_v45 }
 0x32c   :  { %2411 = vtanh.f32 %v1017_v46  ;;  %v3452_v46 = vld [vmem:[#allocation11 + $0x1c0] sm:$0xff] }
 0x32d   :  { %2413 = vpow2.f32 %v2269_v9  ;;  %v3460_v9 = vld [vmem:[#allocation11 + $0x1a0] sm:$0xff] }
 0x336   :  { %v2408_v12 = vpop.eup %2407 }
 0x337   :  { %v1022_v14 = vadd.f32 1.0, %v2408_v12 }
 0x338   :  { %v2410_v17 = vpop.eup %2409 }
 0x339   :  { %2415 = vrcp.f32 %v1022_v14  ;;  %v1028_v19 = vadd.f32 1.0, %v2410_v17  ;;  %v2412_v24 = vpop.eup %2411  ;;  %v4207_v17 = vld [vmem:[#allocation69_spill] sm:$0xff] }
 0x33a   :  { %v2414_v33 = vpop.eup %2413 }
 0x33b   :  { %2417 = vrcp.f32 %v1028_v19  ;;  %v1035_v32 = vadd.f32 1.0, %v2414_v33 }
 0x33d   :  { %2419 = vrcp.f32 %v1035_v32 }
 0x346   :  { %v2416_v36 = vpop.eup %2415 }
 0x347   :  { %v1039_v26 = vmul.f32 %v2416_v36, %v2412_v24  ;;  %v4208_v36 = vld [vmem:[#allocation56_spill] sm:$0xff] }
 0x348   :  { %v2418_v50 = vpop.eup %2417 }
 0x349   :  { %v1038_v52 = vmul.f32 %v2418_v50, %v3342_v61  ;;  %v4209_v50 = vld [vmem:[#allocation55_spill] sm:$0xff] }
 0x34a   :  { %v2420_v40 = vpop.eup %2419 }
 0x34b   :  { %v1040_v41 = vadd.f32 %v1039_v26, %v1038_v52 }
 0x34d   :  { %2421 = vtanh.f32 %v1040_v41  ;;  %v1060_v30 = vsub.f32 %v1040_v41, %v3342_v61 }
 0x34f   :  { %v1061_v47 = vmul.f32 %v1060_v30, %v3427_v51 }
 0x351   :  { %v3432_v56 = vadd.f32 %v1061_v47, %v3342_v61  ;;  %v3448_v61 = vld [vmem:[#allocation11 + $0x1c8] sm:$0xff] }
 0x35a   :  { %v2422_v39 = vpop.eup %2421 }
 0x35b   :  { %v3434_v45 = vmul.f32 %v2422_v39, %v2420_v40 }
 0x35d   :  { %4195 = vst [vmem:[#allocation31_spill] sm:$0xff] %v3434_v45  ;;  %v1057_v38 = vsub.f32 %v3434_v45, %v3350_v43  ;;  %v3693_v45 = vld [vmem:[#allocation11 + $0x70] sm:$0xff] }
 0x35e   :  { %4214 = vst [vmem:[#allocation46_spill] sm:$0xff] %v3693_v45 }
 0x35f   :  { %v1058_v7 = vmul.f32 %v1057_v38, %v3427_v51  ;;  %v3689_v51 = vld [vmem:[#allocation11 + $0x78] sm:$0xff] }
 0x360   :  { %4213 = vst [vmem:[#allocation34_spill] sm:$0xff] %v3689_v51 }
 0x361   :  { %v3440_v44 = vadd.f32 %v1058_v7, %v3350_v43  ;;  %v3456_v43 = vld [vmem:[#allocation11 + $0x1a8] sm:$0xff] }
 0x363   :  { %1133 = vmatmul.mubr.f32.vlgmr.msra.gmra.mxu0 %v3440_v44  ;;  %1204 = vmatmul.mubr.f32.vlgmr.msra.gmra.mxu1 %v3440_v44 }
 0x364   :  { %1264 = vmatpush1.msra.mxu0 %v3444_v28  ;;  %1335 = vmatpush1.msra.mxu1 %v2959_v54  ;;  %v3464_v54 = vld [vmem:[#allocation11 + $0x188] sm:$0xff] }
 0x365   :  { %1265 = vmatprep.subr.mxu0 %v3448_v61  ;;  %1336 = vmatprep.subr.mxu1 %v2962_v55  ;;  %v3468_v55 = vld [vmem:[#allocation11 + $0x180] sm:$0xff] }
 0x366   :  { %1266 = vmatpush1.msra.mxu0 %v3452_v46  ;;  %1337 = vmatpush1.msra.mxu1 %v2969_v57  ;;  %v3472_v57 = vld [vmem:[#allocation11 + $0x168] sm:$0xff] }
 0x367   :  { %1267 = vmatprep.subr.mxu0 %v3456_v43  ;;  %1338 = vmatprep.subr.mxu1 %v2973_v58  ;;  %v3476_v58 = vld [vmem:[#allocation11 + $0x160] sm:$0xff] }
 0x368   :  { %1268 = vmatpush1.msra.mxu0 %v3460_v9  ;;  %1339 = vmatpush1.msra.mxu1 %v2977_v59  ;;  %v3480_v59 = vld [vmem:[#allocation11 + $0x148] sm:$0xff] }
 0x369   :  { %1269 = vmatprep.subr.mxu0 %v3464_v54  ;;  %1340 = vmatprep.subr.mxu1 %v2980_v60  ;;  %v3484_v60 = vld [vmem:[#allocation11 + $0x140] sm:$0xff] }
 0x36a   :  { %1270 = vmatpush1.msra.mxu0 %v3468_v55  ;;  %1341 = vmatpush1.msra.mxu1 %v2985_v62  ;;  %v3488_v62 = vld [vmem:[#allocation11 + $0x128] sm:$0xff] }
 0x36b   :  { %1271 = vmatprep.subr.mxu0 %v3472_v57  ;;  %1342 = vmatprep.subr.mxu1 %v2989_v63  ;;  %v3492_v63 = vld [vmem:[#allocation11 + $0x120] sm:$0xff] }
 0x36c   :  { %1272 = vmatpush1.msra.mxu0 %v3476_v58  ;;  %1343 = vmatpush1.msra.mxu1 %v2993_v1  ;;  %v3496_v1 = vld [vmem:[#allocation11 + $0x108] sm:$0xff] }
 0x36d   :  { %1273 = vmatprep.subr.mxu0 %v3480_v59  ;;  %1344 = vmatprep.subr.mxu1 %v2996_v2  ;;  %v3500_v2 = vld [vmem:[#allocation11 + $0x100] sm:$0xff] }
 0x36e   :  { %1274 = vmatpush1.msra.mxu0 %v3484_v60  ;;  %1345 = vmatpush1.msra.mxu1 %v3000_v3  ;;  %v3504_v3 = vld [vmem:[#allocation11 + $0xe8] sm:$0xff] }
 0x36f   :  { %1275 = vmatprep.subr.mxu0 %v3488_v62  ;;  %1346 = vmatprep.subr.mxu1 %v3004_v4  ;;  %v3508_v4 = vld [vmem:[#allocation11 + $0xe0] sm:$0xff] }
 0x370   :  { %1276 = vmatpush1.msra.mxu0 %v3492_v63  ;;  %1347 = vmatpush1.msra.mxu1 %v3009_v5  ;;  %v3512_v5 = vld [vmem:[#allocation11 + $0xc8] sm:$0xff] }
 0x371   :  { %1277 = vmatprep.subr.mxu0 %v3496_v1  ;;  %1348 = vmatprep.subr.mxu1 %v3013_v6  ;;  %v3516_v6 = vld [vmem:[#allocation11 + $0xc0] sm:$0xff] }
 0x372   :  { %1278 = vmatpush1.msra.mxu0 %v3500_v2  ;;  %1349 = vmatpush1.msra.mxu1 %v3017_v11  ;;  %v3520_v11 = vld [vmem:[#allocation11 + $0xa8] sm:$0xff] }
 0x373   :  { %1279 = vmatprep.subr.mxu0 %v3504_v3  ;;  %1350 = vmatprep.subr.mxu1 %v3021_v16  ;;  %v3524_v16 = vld [vmem:[#allocation11 + $0xa0] sm:$0xff] }
 0x374   :  { %1280 = vmatpush1.msra.mxu0 %v3508_v4  ;;  %1351 = vmatpush1.msra.mxu1 %v3025_v20  ;;  %v3528_v20 = vld [vmem:[#allocation11 + $0x88] sm:$0xff] }
 0x375   :  { %1281 = vmatprep.subr.mxu0 %v3512_v5  ;;  %1352 = vmatprep.subr.mxu1 %v3029_v22  ;;  %v3532_v22 = vld [vmem:[#allocation11 + $0x80] sm:$0xff] }
 0x376   :  { %1282 = vmatpush1.msra.mxu0 %v3516_v6  ;;  %1353 = vmatpush1.msra.mxu1 %v3034_v27  ;;  %4196 = vst [vmem:[#allocation52_spill] sm:$0xff] %v3532_v22  ;;  %v3536_v27 = vld [vmem:[#allocation11 + $0x68] sm:$0xff] }
 0x377   :  { %1283 = vmatprep.subr.mxu0 %v3520_v11  ;;  %1354 = vmatprep.subr.mxu1 %v3038_v29  ;;  %4197 = vst [vmem:[#allocation51_spill] sm:$0xff] %v3536_v27  ;;  %v3540_v29 = vld [vmem:[#allocation11 + $0x60] sm:$0xff] }
 0x378   :  { %1284 = vmatpush1.msra.mxu0 %v3524_v16  ;;  %1355 = vmatpush1.msra.mxu1 %v4166_v8  ;;  %4198 = vst [vmem:[#allocation40_spill] sm:$0xff] %v3540_v29  ;;  %v3544_v8 = vld [vmem:[#allocation11 + $0x48] sm:$0xff] }
 0x379   :  { %1285 = vmatprep.subr.mxu0 %v3528_v20  ;;  %1356 = vmatprep.subr.mxu1 %v4168_v10  ;;  %4199 = vst [vmem:[#allocation28_spill] sm:$0xff] %v3544_v8  ;;  %v3548_v10 = vld [vmem:[#allocation11 + $0x40] sm:$0xff] }
 0x37a   :  { %1286 = vmatpush1.msra.mxu0 %v3532_v22  ;;  %1357 = vmatpush1.msra.mxu1 %v4170_v13  ;;  %4200 = vst [vmem:[#allocation41_spill] sm:$0xff] %v3548_v10  ;;  %v3552_v13 = vld [vmem:[#allocation11 + $0x28] sm:$0xff] }
 0x37b   :  { %1287 = vmatprep.subr.mxu0 %v3536_v27  ;;  %1358 = vmatprep.subr.mxu1 %v4172_v15  ;;  %4201 = vst [vmem:[#allocation29_spill] sm:$0xff] %v3552_v13  ;;  %v3556_v15 = vld [vmem:[#allocation11 + $0x20] sm:$0xff] }
 0x37c   :  { %1288 = vmatpush1.msra.mxu0 %v3540_v29  ;;  %1359 = vmatpush1.msra.mxu1 %v4174_v18  ;;  %4202 = vst [vmem:[#allocation42_spill] sm:$0xff] %v3556_v15  ;;  %v3560_v18 = vld [vmem:[#allocation11 + $0x8] sm:$0xff] }
 0x37d   :  { %1289 = vmatprep.subr.mxu0 %v3544_v8  ;;  %1360 = vmatprep.subr.mxu1 %v4176_v21  ;;  %4203 = vst [vmem:[#allocation30_spill] sm:$0xff] %v3560_v18  ;;  %v3564_v21 = vld [vmem:[#allocation11] sm:$0xff] }
 0x37e   :  { %1290 = vmatpush1.msra.mxu0 %v3548_v10  ;;  %1361 = vmatpush1.msra.mxu1 %v4178_v25  ;;  %4204 = vst [vmem:[#allocation43_spill] sm:$0xff] %v3564_v21  ;;  %v3571_v25 = vld [vmem:[#allocation11 + $0x1f8] sm:$0xff] }
 0x37f   :  { %1291 = vmatprep.subr.mxu0 %v3552_v13  ;;  %1362 = vmatprep.subr.mxu1 %v4180_v34  ;;  %4205 = vst [vmem:[#allocation32_spill] sm:$0xff] %v3571_v25 }
 0x380   :  { %1292 = vmatpush1.msra.mxu0 %v3556_v15  ;;  %1363 = vmatpush1.msra.mxu1 %v4182_v37  ;;  %v4206_v37 = vld [vmem:[#allocation68_spill] sm:$0xff] }
 0x381   :  { %1293 = vmatprep.subr.mxu0 %v3560_v18  ;;  %1364 = vmatprep.subr.mxu1 %v4184_v31 }
 0x382   :  { %1294 = vmatpush1.msra.mxu0 %v3564_v21  ;;  %1327 = vmatprep.mubr.f32.mxu0 %v4186_v0 }
 0x383   :  { %1365 = vmatpush1.msra.mxu1 %v4187_v42  ;;  %1398 = vmatprep.mubr.f32.mxu1 %v4186_v0 }
 0x384   :  { %1458 = vmatprep.subr.mxu0 %v3418_v35  ;;  %1529 = vmatprep.subr.mxu1 %v3571_v25 }
 0x423   :  { %v1134_v34 = vpop.f32.mrf.mxu0  ;;  %v1205_v24 = vpop.f32.mrf.mxu1 }
 0x424   :  { %v1210_v12 = vadd.f32 %v1134_v34, %v4206_v37  ;;  %v1212_v32 = vadd.f32 %v1205_v24, %v4209_v50 }
 0x425   :  { %v1136_v31 = vpop.f32.mrf.mxu0  ;;  %v1207_v42 = vpop.f32.mrf.mxu1 }
 0x426   :  { %v2271_v14 = vmul.f32 -1.442695, %v1210_v12  ;;  %v1211_v19 = vadd.f32 %v1136_v31, %v4207_v17  ;;  %v1213_v26 = vadd.f32 %v1207_v42, %v4208_v36 }
 0x428   :  { %2423 = vpow2.f32 %v2271_v14  ;;  %v2272_v33 = vmul.f32 -1.442695, %v1211_v19  ;;  %v2273_v52 = vmul.f32 -1.442695, %v1213_v26  ;;  %v3580_v19 = vpop.permute.xlu1 %1246 }
 0x429   :  { %4210 = vst [vmem:[#allocation44_spill] sm:$0xff] %v3580_v19 }
 0x42a   :  { %2425 = vpow2.f32 %v2272_v33 }
 0x42b   :  { %2427 = vtanh.f32 %v1212_v32 }
 0x42c   :  { %2429 = vpow2.f32 %v2273_v52 }
 0x435   :  { %v2424_v41 = vpop.eup %2423 }
 0x436   :  { %v1217_v30 = vadd.f32 1.0, %v2424_v41  ;;  %v3601_v41 = vld [vmem:[#allocation11 + $0x1d8] sm:$0xff] }
 0x437   :  { %v2426_v47 = vpop.eup %2425 }
 0x438   :  { %2431 = vrcp.f32 %v1217_v30  ;;  %v1223_v40 = vadd.f32 1.0, %v2426_v47  ;;  %v2428_v39 = vpop.eup %2427  ;;  %v3609_v30 = vld [vmem:[#allocation11 + $0x1b8] sm:$0xff]  ;;  %v3613_v47 = vld [vmem:[#allocation11 + $0x1b0] sm:$0xff] }
 0x439   :  { %v2430_v38 = vpop.eup %2429 }
 0x43a   :  { %2433 = vrcp.f32 %v1223_v40  ;;  %v1230_v12 = vadd.f32 1.0, %v2430_v38  ;;  %v3617_v40 = vld [vmem:[#allocation11 + $0x198] sm:$0xff] }
 0x43b   :  { %v3625_v38 = vld [vmem:[#allocation11 + $0x178] sm:$0xff] }
 0x43c   :  { %2435 = vrcp.f32 %v1230_v12  ;;  %v3641_v12 = vld [vmem:[#allocation11 + $0x138] sm:$0xff] }
 0x445   :  { %v2432_v7 = vpop.eup %2431 }
 0x446   :  { %v1234_v34 = vmul.f32 %v2432_v7, %v2428_v39  ;;  %v3621_v39 = vld [vmem:[#allocation11 + $0x190] sm:$0xff] }
 0x447   :  { %v2434_v37 = vpop.eup %2433  ;;  %v3629_v7 = vld [vmem:[#allocation11 + $0x170] sm:$0xff] }
 0x448   :  { %v1233_v31 = vmul.f32 %v2434_v37, %v3432_v56  ;;  %v3637_v37 = vld [vmem:[#allocation11 + $0x150] sm:$0xff] }
 0x449   :  { %v2436_v42 = vpop.eup %2435 }
 0x44a   :  { %v1235_v14 = vadd.f32 %v1234_v34, %v1233_v31  ;;  %v3633_v34 = vld [vmem:[#allocation11 + $0x158] sm:$0xff]  ;;  %v3645_v31 = vld [vmem:[#allocation11 + $0x130] sm:$0xff] }
 0x44c   :  { %2437 = vtanh.f32 %v1235_v14  ;;  %v1255_v17 = vsub.f32 %v1235_v14, %v3432_v56  ;;  %v3649_v14 = vld [vmem:[#allocation11 + $0x118] sm:$0xff] }
 0x44e   :  { %v1256_v24 = vmul.f32 %v1255_v17, %v3580_v19  ;;  %v3653_v17 = vld [vmem:[#allocation11 + $0x110] sm:$0xff] }
 0x450   :  { %v3584_v33 = vadd.f32 %v1256_v24, %v3432_v56  ;;  %v3597_v56 = vld [vmem:[#allocation11 + $0x1f0] sm:$0xff]  ;;  %v3657_v24 = vld [vmem:[#allocation11 + $0xf8] sm:$0xff] }
 0x459   :  { %v2438_v36 = vpop.eup %2437 }
 0x45a   :  { %v3586_v26 = vmul.f32 %v2438_v36, %v2436_v42  ;;  %v3661_v42 = vld [vmem:[#allocation11 + $0xf0] sm:$0xff]  ;;  %v3665_v36 = vld [vmem:[#allocation11 + $0xd8] sm:$0xff] }
 0x45c   :  { %4211 = vst [vmem:[#allocation33_spill] sm:$0xff] %v3586_v26  ;;  %v1252_v50 = vsub.f32 %v3586_v26, %v3440_v44  ;;  %v3685_v26 = vld [vmem:[#allocation11 + $0x90] sm:$0xff] }
 0x45d   :  { %4212 = vst [vmem:[#allocation45_spill] sm:$0xff] %v3685_v26 }
 0x45e   :  { %v1253_v32 = vmul.f32 %v1252_v50, %v3580_v19  ;;  %v3669_v50 = vld [vmem:[#allocation11 + $0xd0] sm:$0xff]  ;;  %v3681_v19 = vld [vmem:[#allocation11 + $0x98] sm:$0xff] }
 0x460   :  { %v3592_v52 = vadd.f32 %v1253_v32, %v3440_v44  ;;  %v3605_v44 = vld [vmem:[#allocation11 + $0x1d0] sm:$0xff]  ;;  %v3673_v32 = vld [vmem:[#allocation11 + $0xb8] sm:$0xff] }
 0x462   :  { %1328 = vmatmul.mubr.f32.vlgmr.msra.gmra.mxu0 %v3592_v52  ;;  %1399 = vmatmul.mubr.f32.vlgmr.msra.gmra.mxu1 %v3592_v52 }
 0x463   :  { %1459 = vmatpush1.msra.mxu0 %v3444_v28  ;;  %1530 = vmatpush1.msra.mxu1 %v3597_v56 }
 0x464   :  { %1460 = vmatprep.subr.mxu0 %v3448_v61  ;;  %1531 = vmatprep.subr.mxu1 %v3601_v41 }
 0x465   :  { %1461 = vmatpush1.msra.mxu0 %v3452_v46  ;;  %1532 = vmatpush1.msra.mxu1 %v3605_v44 }
 0x466   :  { %1462 = vmatprep.subr.mxu0 %v3456_v43  ;;  %1533 = vmatprep.subr.mxu1 %v3609_v30 }
 0x467   :  { %1463 = vmatpush1.msra.mxu0 %v3460_v9  ;;  %1534 = vmatpush1.msra.mxu1 %v3613_v47 }
 0x468   :  { %1464 = vmatprep.subr.mxu0 %v3464_v54  ;;  %1535 = vmatprep.subr.mxu1 %v3617_v40 }
 0x469   :  { %1465 = vmatpush1.msra.mxu0 %v3468_v55  ;;  %1536 = vmatpush1.msra.mxu1 %v3621_v39 }
 0x46a   :  { %1466 = vmatprep.subr.mxu0 %v3472_v57  ;;  %1537 = vmatprep.subr.mxu1 %v3625_v38 }
 0x46b   :  { %1467 = vmatpush1.msra.mxu0 %v3476_v58  ;;  %1538 = vmatpush1.msra.mxu1 %v3629_v7 }
 0x46c   :  { %1468 = vmatprep.subr.mxu0 %v3480_v59  ;;  %1539 = vmatprep.subr.mxu1 %v3633_v34 }
 0x46d   :  { %1469 = vmatpush1.msra.mxu0 %v3484_v60  ;;  %1540 = vmatpush1.msra.mxu1 %v3637_v37 }
 0x46e   :  { %1470 = vmatprep.subr.mxu0 %v3488_v62  ;;  %1541 = vmatprep.subr.mxu1 %v3641_v12 }
 0x46f   :  { %1471 = vmatpush1.msra.mxu0 %v3492_v63  ;;  %1542 = vmatpush1.msra.mxu1 %v3645_v31 }
 0x470   :  { %1472 = vmatprep.subr.mxu0 %v3496_v1  ;;  %1543 = vmatprep.subr.mxu1 %v3649_v14 }
 0x471   :  { %1473 = vmatpush1.msra.mxu0 %v3500_v2  ;;  %1544 = vmatpush1.msra.mxu1 %v3653_v17 }
 0x472   :  { %1474 = vmatprep.subr.mxu0 %v3504_v3  ;;  %1545 = vmatprep.subr.mxu1 %v3657_v24 }
 0x473   :  { %1475 = vmatpush1.msra.mxu0 %v3508_v4  ;;  %1546 = vmatpush1.msra.mxu1 %v3661_v42 }
 0x474   :  { %1476 = vmatprep.subr.mxu0 %v3512_v5  ;;  %1547 = vmatprep.subr.mxu1 %v3665_v36 }
 0x475   :  { %1477 = vmatpush1.msra.mxu0 %v3516_v6  ;;  %1548 = vmatpush1.msra.mxu1 %v3669_v50 }
 0x476   :  { %1478 = vmatprep.subr.mxu0 %v3520_v11  ;;  %1549 = vmatprep.subr.mxu1 %v3673_v32 }
 0x477   :  { %1479 = vmatpush1.msra.mxu0 %v3524_v16  ;;  %1550 = vmatpush1.msra.mxu1 %v3677_v48 }
 0x478   :  { %1480 = vmatprep.subr.mxu0 %v3528_v20  ;;  %1551 = vmatprep.subr.mxu1 %v3681_v19 }
 0x479   :  { %1481 = vmatpush1.msra.mxu0 %v3532_v22  ;;  %1552 = vmatpush1.msra.mxu1 %v3685_v26 }
 0x47a   :  { %1482 = vmatprep.subr.mxu0 %v3536_v27  ;;  %1553 = vmatprep.subr.mxu1 %v3689_v51  ;;  %v4223_v51 = vld [vmem:[#allocation58_spill] sm:$0xff]  ;;  %v4224_v27 = vld [vmem:[#allocation57_spill] sm:$0xff] }
 0x47b   :  { %1483 = vmatpush1.msra.mxu0 %v3540_v29  ;;  %1554 = vmatpush1.msra.mxu1 %v3693_v45  ;;  %v3709_v45 = vld [vmem:[#allocation11 + $0x30] sm:$0xff] }
 0x47c   :  { %1484 = vmatprep.subr.mxu0 %v3544_v8  ;;  %1555 = vmatprep.subr.mxu1 %v3697_v23  ;;  %4218 = vst [vmem:[#allocation48_spill] sm:$0xff] %v3709_v45  ;;  %v3713_v23 = vld [vmem:[#allocation11 + $0x18] sm:$0xff] }
 0x47d   :  { %1485 = vmatpush1.msra.mxu0 %v3548_v10  ;;  %1556 = vmatpush1.msra.mxu1 %v3701_v49  ;;  %4219 = vst [vmem:[#allocation37_spill] sm:$0xff] %v3713_v23 }
 0x47e   :  { %1486 = vmatprep.subr.mxu0 %v3552_v13  ;;  %1557 = vmatprep.subr.mxu1 %v3705_v53  ;;  %v3718_v13 = vld [vmem:[#allocation11 + $0x10] sm:$0xff] }
 0x47f   :  { %1487 = vmatpush1.msra.mxu0 %v3556_v15  ;;  %1558 = vmatpush1.msra.mxu1 %v3709_v45  ;;  %4220 = vst [vmem:[#allocation49_spill] sm:$0xff] %v3718_v13 }
 0x480   :  { %1488 = vmatprep.subr.mxu0 %v3560_v18  ;;  %1559 = vmatprep.subr.mxu1 %v3713_v23  ;;  %v4221_v18 = vld [vmem:[#allocation70_spill] sm:$0xff]  ;;  %v4222_v23 = vld [vmem:[#allocation71_spill] sm:$0xff] }
 0x481   :  { %1489 = vmatpush1.msra.mxu0 %v3564_v21  ;;  %1522 = vmatprep.mubr.f32.mxu0 %v4186_v0 }
 0x482   :  { %1560 = vmatpush1.msra.mxu1 %v3718_v13  ;;  %1593 = vmatprep.mubr.f32.mxu1 %v4186_v0 }
 0x483   :  { %1653 = vmatprep.subr.mxu0 %v3418_v35  ;;  %1724 = vmatprep.subr.mxu1 %v3571_v25 }
 0x522   :  { %v1329_v45 = vpop.f32.mrf.mxu0  ;;  %v1400_v21 = vpop.f32.mrf.mxu1 }
 0x523   :  { %v1405_v15 = vadd.f32 %v1329_v45, %v4221_v18  ;;  %v1407_v0 = vadd.f32 %v1400_v21, %v4224_v27 }
 0x524   :  { %v1331_v53 = vpop.f32.mrf.mxu0  ;;  %v1402_v29 = vpop.f32.mrf.mxu1 }
 0x525   :  { %v2275_v49 = vmul.f32 -1.442695, %v1405_v15  ;;  %v1406_v10 = vadd.f32 %v1331_v53, %v4222_v23  ;;  %v1408_v13 = vadd.f32 %v1402_v29, %v4223_v51 }
 0x527   :  { %2439 = vpow2.f32 %v2275_v49  ;;  %v2276_v8 = vmul.f32 -1.442695, %v1406_v10  ;;  %v2277_v26 = vmul.f32 -1.442695, %v1408_v13 }
 0x529   :  { %2441 = vpow2.f32 %v2276_v8 }
 0x52a   :  { %2443 = vtanh.f32 %v1407_v0 }
 0x52b   :  { %2445 = vpow2.f32 %v2277_v26 }
 0x534   :  { %v2440_v35 = vpop.eup %2439 }
 0x535   :  { %v1412_v22 = vadd.f32 1.0, %v2440_v35  ;;  %v3730_v35 = vpop.permute.xlu0 %1441 }
 0x536   :  { %v2442_v25 = vpop.eup %2441  ;;  %4225 = vst [vmem:[#allocation38_spill] sm:$0xff] %v3730_v35 }
 0x537   :  { %2447 = vrcp.f32 %v1412_v22  ;;  %v1418_v45 = vadd.f32 1.0, %v2442_v25  ;;  %v2444_v15 = vpop.eup %2443 }
 0x538   :  { %v2446_v53 = vpop.eup %2445 }
 0x539   :  { %2449 = vrcp.f32 %v1418_v45  ;;  %v1425_v8 = vadd.f32 1.0, %v2446_v53  ;;  %v4230_v53 = vld [vmem:[#allocation34_spill] sm:$0xff] }
 0x53b   :  { %2451 = vrcp.f32 %v1425_v8  ;;  %v4234_v8 = vld [vmem:[#allocation35_spill] sm:$0xff] }
 0x544   :  { %v2448_v23 = vpop.eup %2447 }
 0x545   :  { %v1429_v49 = vmul.f32 %v2448_v23, %v2444_v15  ;;  %v4229_v15 = vld [vmem:[#allocation51_spill] sm:$0xff]  ;;  %v4231_v23 = vld [vmem:[#allocation40_spill] sm:$0xff] }
 0x546   :  { %v2450_v10 = vpop.eup %2449 }
 0x547   :  { %v1428_v18 = vmul.f32 %v2450_v10, %v3584_v33  ;;  %v4233_v10 = vld [vmem:[#allocation28_spill] sm:$0xff] }
 0x548   :  { %v2452_v29 = vpop.eup %2451 }
 0x549   :  { %v1430_v51 = vadd.f32 %v1429_v49, %v1428_v18  ;;  %v4232_v49 = vld [vmem:[#allocation46_spill] sm:$0xff]  ;;  %v4235_v18 = vld [vmem:[#allocation41_spill] sm:$0xff] }
 0x54b   :  { %2453 = vtanh.f32 %v1430_v51  ;;  %v1450_v27 = vsub.f32 %v1430_v51, %v3584_v33  ;;  %v4236_v51 = vld [vmem:[#allocation47_spill] sm:$0xff] }
 0x54d   :  { %v1451_v0 = vmul.f32 %v1450_v27, %v3730_v35  ;;  %v4237_v27 = vld [vmem:[#allocation29_spill] sm:$0xff] }
 0x54f   :  { %v3734_v22 = vadd.f32 %v1451_v0, %v3584_v33  ;;  %v4227_v33 = vld [vmem:[#allocation52_spill] sm:$0xff] }
 0x550   :  { %v4238_v0 = vld [vmem:[#allocation36_spill] sm:$0xff] }
 0x558   :  { %v2454_v13 = vpop.eup %2453 }
 0x559   :  { %v3736_v21 = vmul.f32 %v2454_v13, %v2452_v29  ;;  %v4239_v29 = vld [vmem:[#allocation42_spill] sm:$0xff]  ;;  %v4240_v13 = vld [vmem:[#allocation48_spill] sm:$0xff] }
 0x55b   :  { %4226 = vst [vmem:[#allocation50_spill] sm:$0xff] %v3736_v21  ;;  %v1447_v25 = vsub.f32 %v3736_v21, %v3592_v52  ;;  %v4244_v21 = vmov 0.0  }
 0x55d   :  { %v1448_v26 = vmul.f32 %v1447_v25, %v3730_v35  ;;  %v4241_v25 = vld [vmem:[#allocation30_spill] sm:$0xff]  ;;  %v4243_v35 = vld [vmem:[#allocation43_spill] sm:$0xff] }
 0x55f   :  { %v3742_v45 = vadd.f32 %v1448_v26, %v3592_v52  ;;  %v4228_v52 = vld [vmem:[#allocation45_spill] sm:$0xff] }
 0x560   :  { %v4242_v26 = vld [vmem:[#allocation37_spill] sm:$0xff] }
 0x561   :  { %1523 = vmatmul.mubr.f32.vlgmr.msra.gmra.mxu0 %v3742_v45  ;;  %1594 = vmatmul.mubr.f32.vlgmr.msra.gmra.mxu1 %v3742_v45 }
 0x562   :  { %1654 = vmatpush1.msra.mxu0 %v3444_v28  ;;  %1725 = vmatpush1.msra.mxu1 %v3597_v56 }
 0x563   :  { %1655 = vmatprep.subr.mxu0 %v3448_v61  ;;  %1726 = vmatprep.subr.mxu1 %v3601_v41 }
 0x564   :  { %1656 = vmatpush1.msra.mxu0 %v3452_v46  ;;  %1727 = vmatpush1.msra.mxu1 %v3605_v44 }
 0x565   :  { %1657 = vmatprep.subr.mxu0 %v3456_v43  ;;  %1728 = vmatprep.subr.mxu1 %v3609_v30 }
 0x566   :  { %1658 = vmatpush1.msra.mxu0 %v3460_v9  ;;  %1729 = vmatpush1.msra.mxu1 %v3613_v47 }
 0x567   :  { %1659 = vmatprep.subr.mxu0 %v3464_v54  ;;  %1730 = vmatprep.subr.mxu1 %v3617_v40 }
 0x568   :  { %1660 = vmatpush1.msra.mxu0 %v3468_v55  ;;  %1731 = vmatpush1.msra.mxu1 %v3621_v39 }
 0x569   :  { %1661 = vmatprep.subr.mxu0 %v3472_v57  ;;  %1732 = vmatprep.subr.mxu1 %v3625_v38 }
 0x56a   :  { %1662 = vmatpush1.msra.mxu0 %v3476_v58  ;;  %1733 = vmatpush1.msra.mxu1 %v3629_v7 }
 0x56b   :  { %1663 = vmatprep.subr.mxu0 %v3480_v59  ;;  %1734 = vmatprep.subr.mxu1 %v3633_v34 }
 0x56c   :  { %1664 = vmatpush1.msra.mxu0 %v3484_v60  ;;  %1735 = vmatpush1.msra.mxu1 %v3637_v37 }
 0x56d   :  { %1665 = vmatprep.subr.mxu0 %v3488_v62  ;;  %1736 = vmatprep.subr.mxu1 %v3641_v12 }
 0x56e   :  { %1666 = vmatpush1.msra.mxu0 %v3492_v63  ;;  %1737 = vmatpush1.msra.mxu1 %v3645_v31 }
 0x56f   :  { %1667 = vmatprep.subr.mxu0 %v3496_v1  ;;  %1738 = vmatprep.subr.mxu1 %v3649_v14 }
 0x570   :  { %1668 = vmatpush1.msra.mxu0 %v3500_v2  ;;  %1739 = vmatpush1.msra.mxu1 %v3653_v17 }
 0x571   :  { %1669 = vmatprep.subr.mxu0 %v3504_v3  ;;  %1740 = vmatprep.subr.mxu1 %v3657_v24 }
 0x572   :  { %1670 = vmatpush1.msra.mxu0 %v3508_v4  ;;  %1741 = vmatpush1.msra.mxu1 %v3661_v42 }
 0x573   :  { %1671 = vmatprep.subr.mxu0 %v3512_v5  ;;  %1742 = vmatprep.subr.mxu1 %v3665_v36 }
 0x574   :  { %1672 = vmatpush1.msra.mxu0 %v3516_v6  ;;  %1743 = vmatpush1.msra.mxu1 %v3669_v50 }
 0x575   :  { %1673 = vmatprep.subr.mxu0 %v3520_v11  ;;  %1744 = vmatprep.subr.mxu1 %v3673_v32 }
 0x576   :  { %1674 = vmatpush1.msra.mxu0 %v3524_v16  ;;  %1745 = vmatpush1.msra.mxu1 %v3677_v48 }
 0x577   :  { %1675 = vmatprep.subr.mxu0 %v3528_v20  ;;  %1746 = vmatprep.subr.mxu1 %v3681_v19 }
 0x578   :  { %1676 = vmatpush1.msra.mxu0 %v4227_v33  ;;  %1747 = vmatpush1.msra.mxu1 %v4228_v52 }
 0x579   :  { %1677 = vmatprep.subr.mxu0 %v4229_v15  ;;  %1748 = vmatprep.subr.mxu1 %v4230_v53  ;;  %v4250_v53 = vld [vmem:[#allocation60_spill] sm:$0xff]  ;;  %v4251_v15 = vld [vmem:[#allocation59_spill] sm:$0xff] }
 0x57a   :  { %1678 = vmatpush1.msra.mxu0 %v4231_v23  ;;  %1749 = vmatpush1.msra.mxu1 %v4232_v49 }
 0x57b   :  { %1679 = vmatprep.subr.mxu0 %v4233_v10  ;;  %1750 = vmatprep.subr.mxu1 %v4234_v8  ;;  %v4245_v8 = vld [vmem:[#allocation49_spill] sm:$0xff] }
 0x57c   :  { %1680 = vmatpush1.msra.mxu0 %v4235_v18  ;;  %1751 = vmatpush1.msra.mxu1 %v4236_v51  ;;  %v4246_v51 = vld [vmem:[#allocation27_spill] sm:$0xff] }
 0x57d   :  { %1681 = vmatprep.subr.mxu0 %v4237_v27  ;;  %1752 = vmatprep.subr.mxu1 %v4238_v0  ;;  %v4247_v27 = vld [vmem:[#allocation32_spill] sm:$0xff] }
 0x57e   :  { %1682 = vmatpush1.msra.mxu0 %v4239_v29  ;;  %1753 = vmatpush1.msra.mxu1 %v4240_v13  ;;  %v4248_v29 = vld [vmem:[#allocation72_spill] sm:$0xff] }
 0x57f   :  { %1683 = vmatprep.subr.mxu0 %v4241_v25  ;;  %1754 = vmatprep.subr.mxu1 %v4242_v26  ;;  %v4249_v25 = vld [vmem:[#allocation73_spill] sm:$0xff] }
 0x580   :  { %1684 = vmatpush1.msra.mxu0 %v4243_v35  ;;  %1717 = vmatprep.mubr.f32.mxu0 %v4244_v21 }
 0x581   :  { %1755 = vmatpush1.msra.mxu1 %v4245_v8  ;;  %1788 = vmatprep.mubr.f32.mxu1 %v4244_v21 }
 0x582   :  { %1848 = vmatprep.subr.mxu0 %v4246_v51  ;;  %1919 = vmatprep.subr.mxu1 %v4247_v27 }
 0x621   :  { %v1524_v0 = vpop.f32.mrf.mxu0  ;;  %v1595_v26 = vpop.f32.mrf.mxu1 }
 0x622   :  { %v1600_v18 = vadd.f32 %v1524_v0, %v4248_v29  ;;  %v1602_v21 = vadd.f32 %v1595_v26, %v4251_v15 }
 0x623   :  { %v1526_v13 = vpop.f32.mrf.mxu0  ;;  %v1597_v23 = vpop.f32.mrf.mxu1 }
 0x624   :  { %v2279_v10 = vmul.f32 -1.442695, %v1600_v18  ;;  %v1601_v49 = vadd.f32 %v1526_v13, %v4249_v25  ;;  %v1603_v8 = vadd.f32 %v1597_v23, %v4250_v53  ;;  %v3818_v23 = vpop.permute.xlu1 %1636 }
 0x626   :  { %2455 = vpow2.f32 %v2279_v10  ;;  %v2280_v35 = vmul.f32 -1.442695, %v1601_v49  ;;  %v2281_v52 = vmul.f32 -1.442695, %v1603_v8 }
 0x628   :  { %2457 = vpow2.f32 %v2280_v35 }
 0x629   :  { %2459 = vtanh.f32 %v1602_v21 }
 0x62a   :  { %2461 = vpow2.f32 %v2281_v52 }
 0x633   :  { %v2456_v51 = vpop.eup %2455 }
 0x634   :  { %v1607_v33 = vadd.f32 1.0, %v2456_v51 }
 0x635   :  { %v2458_v27 = vpop.eup %2457 }
 0x636   :  { %2463 = vrcp.f32 %v1607_v33  ;;  %v1613_v0 = vadd.f32 1.0, %v2458_v27  ;;  %v2460_v18 = vpop.eup %2459 }
 0x637   :  { %v2462_v29 = vpop.eup %2461 }
 0x638   :  { %2465 = vrcp.f32 %v1613_v0  ;;  %v1620_v35 = vadd.f32 1.0, %v2462_v29 }
 0x63a   :  { %2467 = vrcp.f32 %v1620_v35 }
 0x643   :  { %v2464_v10 = vpop.eup %2463 }
 0x644   :  { %v1624_v13 = vmul.f32 %v2464_v10, %v2460_v18  ;;  %v3904_v10 = vpop.permute.xlu0 %1831 }
 0x645   :  { %v2466_v49 = vpop.eup %2465 }
 0x646   :  { %v1623_v25 = vmul.f32 %v2466_v49, %v3734_v22 }
 0x647   :  { %v2468_v52 = vpop.eup %2467 }
 0x648   :  { %v1625_v53 = vadd.f32 %v1624_v13, %v1623_v25 }
 0x64a   :  { %2469 = vtanh.f32 %v1625_v53  ;;  %v1645_v15 = vsub.f32 %v1625_v53, %v3734_v22 }
 0x64c   :  { %v1646_v21 = vmul.f32 %v1645_v15, %v3818_v23 }
 0x64e   :  { %v3822_v33 = vadd.f32 %v1646_v21, %v3734_v22 }
 0x657   :  { %v2470_v8 = vpop.eup %2469 }
 0x658   :  { %v3824_v26 = vmul.f32 %v2470_v8, %v2468_v52  ;;  %v2062_v8 = vld [vmem:[#allocation12 + $0x70] sm:$0xff] }
 0x65a   :  { %v1642_v51 = vsub.f32 %v3824_v26, %v3742_v45 }
 0x65c   :  { %v1643_v27 = vmul.f32 %v1642_v51, %v3818_v23  ;;  %v4275_v51 = vld [vmem:[#allocation77_spill] sm:$0xff] }
 0x65e   :  { %v3830_v0 = vadd.f32 %v1643_v27, %v3742_v45  ;;  %v2060_v27 = vld [vmem:[#allocation12 + $0x60] sm:$0xff] }
 0x660   :  { %1718 = vmatmul.mubr.f32.vlgmr.msra.gmra.mxu0 %v3830_v0  ;;  %1789 = vmatmul.mubr.f32.vlgmr.msra.gmra.mxu1 %v3830_v0 }
 0x661   :  { %1849 = vmatpush1.msra.mxu0 %v3444_v28  ;;  %1920 = vmatpush1.msra.mxu1 %v3597_v56  ;;  %v4252_v28 = vld [vmem:[#allocation52_spill] sm:$0xff] }
 0x662   :  { %1850 = vmatprep.subr.mxu0 %v3448_v61  ;;  %1921 = vmatprep.subr.mxu1 %v3601_v41  ;;  %v4253_v61 = vld [vmem:[#allocation45_spill] sm:$0xff]  ;;  %v4272_v41 = vld [vmem:[#allocation75_spill] sm:$0xff] }
 0x663   :  { %1851 = vmatpush1.msra.mxu0 %v3452_v46  ;;  %1922 = vmatpush1.msra.mxu1 %v3605_v44  ;;  %v4254_v46 = vld [vmem:[#allocation51_spill] sm:$0xff] }
 0x664   :  { %1852 = vmatprep.subr.mxu0 %v3456_v43  ;;  %1923 = vmatprep.subr.mxu1 %v3609_v30  ;;  %v4255_v43 = vld [vmem:[#allocation34_spill] sm:$0xff] }
 0x665   :  { %1853 = vmatpush1.msra.mxu0 %v3460_v9  ;;  %1924 = vmatpush1.msra.mxu1 %v3613_v47  ;;  %v4256_v9 = vld [vmem:[#allocation40_spill] sm:$0xff] }
 0x666   :  { %1854 = vmatprep.subr.mxu0 %v3464_v54  ;;  %1925 = vmatprep.subr.mxu1 %v3617_v40  ;;  %v4257_v54 = vld [vmem:[#allocation46_spill] sm:$0xff] }
 0x667   :  { %1855 = vmatpush1.msra.mxu0 %v3468_v55  ;;  %1926 = vmatpush1.msra.mxu1 %v3621_v39  ;;  %v4258_v55 = vld [vmem:[#allocation28_spill] sm:$0xff]  ;;  %v4273_v39 = vld [vmem:[#allocation62_spill] sm:$0xff] }
 0x668   :  { %1856 = vmatprep.subr.mxu0 %v3472_v57  ;;  %1927 = vmatprep.subr.mxu1 %v3625_v38  ;;  %v4259_v57 = vld [vmem:[#allocation35_spill] sm:$0xff] }
 0x669   :  { %1857 = vmatpush1.msra.mxu0 %v3476_v58  ;;  %1928 = vmatpush1.msra.mxu1 %v3629_v7  ;;  %v4261_v58 = vld [vmem:[#allocation47_spill] sm:$0xff]  ;;  %v4274_v7 = vld [vmem:[#allocation61_spill] sm:$0xff] }
 0x66a   :  { %1858 = vmatprep.subr.mxu0 %v3480_v59  ;;  %1929 = vmatprep.subr.mxu1 %v3633_v34  ;;  %v4262_v59 = vld [vmem:[#allocation29_spill] sm:$0xff] }
 0x66b   :  { %1859 = vmatpush1.msra.mxu0 %v3484_v60  ;;  %1930 = vmatpush1.msra.mxu1 %v3637_v37  ;;  %v4263_v60 = vld [vmem:[#allocation36_spill] sm:$0xff] }
 0x66c   :  { %1860 = vmatprep.subr.mxu0 %v3488_v62  ;;  %1931 = vmatprep.subr.mxu1 %v3641_v12  ;;  %v4264_v62 = vld [vmem:[#allocation42_spill] sm:$0xff] }
 0x66d   :  { %1861 = vmatpush1.msra.mxu0 %v3492_v63  ;;  %1932 = vmatpush1.msra.mxu1 %v3645_v31  ;;  %v4265_v63 = vld [vmem:[#allocation48_spill] sm:$0xff] }
 0x66e   :  { %1862 = vmatprep.subr.mxu0 %v3496_v1  ;;  %1933 = vmatprep.subr.mxu1 %v3649_v14  ;;  %v4266_v1 = vld [vmem:[#allocation30_spill] sm:$0xff] }
 0x66f   :  { %1863 = vmatpush1.msra.mxu0 %v3500_v2  ;;  %1934 = vmatpush1.msra.mxu1 %v3653_v17  ;;  %v4267_v2 = vld [vmem:[#allocation37_spill] sm:$0xff] }
 0x670   :  { %1864 = vmatprep.subr.mxu0 %v3504_v3  ;;  %1935 = vmatprep.subr.mxu1 %v3657_v24  ;;  %v4268_v3 = vld [vmem:[#allocation43_spill] sm:$0xff] }
 0x671   :  { %1865 = vmatpush1.msra.mxu0 %v3508_v4  ;;  %1936 = vmatpush1.msra.mxu1 %v3661_v42  ;;  %v4269_v4 = vmov 0.0  }
 0x672   :  { %1866 = vmatprep.subr.mxu0 %v3512_v5  ;;  %1937 = vmatprep.subr.mxu1 %v3665_v36  ;;  %v4270_v5 = vld [vmem:[#allocation49_spill] sm:$0xff] }
 0x673   :  { %1867 = vmatpush1.msra.mxu0 %v3516_v6  ;;  %1938 = vmatpush1.msra.mxu1 %v3669_v50  ;;  %v2063_v6 = vld [vmem:[#allocation12 + $0x78] sm:$0xff] }
 0x674   :  { %1868 = vmatprep.subr.mxu0 %v3520_v11  ;;  %1939 = vmatprep.subr.mxu1 %v3673_v32 }
 0x675   :  { %1869 = vmatpush1.msra.mxu0 %v3524_v16  ;;  %1940 = vmatpush1.msra.mxu1 %v3677_v48  ;;  %v4260_v48 = vld [vmem:[#allocation41_spill] sm:$0xff]  ;;  %v4271_v16 = vld [vmem:[#allocation74_spill] sm:$0xff] }
 0x676   :  { %1870 = vmatprep.subr.mxu0 %v3528_v20  ;;  %1941 = vmatprep.subr.mxu1 %v3681_v19 }
 0x677   :  { %1871 = vmatpush1.msra.mxu0 %v4252_v28  ;;  %1942 = vmatpush1.msra.mxu1 %v4253_v61  ;;  %v2059_v28 = vld [vmem:[#allocation12 + $0x58] sm:$0xff]  ;;  %v2058_v61 = vld [vmem:[#allocation12 + $0x50] sm:$0xff] }
 0x678   :  { %1872 = vmatprep.subr.mxu0 %v4254_v46  ;;  %1943 = vmatprep.subr.mxu1 %v4255_v43  ;;  %v2056_v46 = vld [vmem:[#allocation12 + $0x40] sm:$0xff]  ;;  %v2055_v43 = vld [vmem:[#allocation12 + $0x38] sm:$0xff] }
 0x679   :  { %1873 = vmatpush1.msra.mxu0 %v4256_v9  ;;  %1944 = vmatpush1.msra.mxu1 %v4257_v54  ;;  %v2054_v9 = vld [vmem:[#allocation12 + $0x30] sm:$0xff]  ;;  %v2053_v54 = vld [vmem:[#allocation12 + $0x28] sm:$0xff] }
 0x67a   :  { %1874 = vmatprep.subr.mxu0 %v4258_v55  ;;  %1945 = vmatprep.subr.mxu1 %v4259_v57  ;;  %v2052_v55 = vld [vmem:[#allocation12 + $0x20] sm:$0xff]  ;;  %v2051_v57 = vld [vmem:[#allocation12 + $0x18] sm:$0xff] }
 0x67b   :  { %1875 = vmatpush1.msra.mxu0 %v4260_v48  ;;  %1946 = vmatpush1.msra.mxu1 %v4261_v58  ;;  %v2050_v48 = vld [vmem:[#allocation12 + $0x10] sm:$0xff]  ;;  %v2049_v58 = vld [vmem:[#allocation12 + $0x8] sm:$0xff] }
 0x67c   :  { %1876 = vmatprep.subr.mxu0 %v4262_v59  ;;  %1947 = vmatprep.subr.mxu1 %v4263_v60  ;;  %v2048_v59 = vld [vmem:[#allocation12] sm:$0xff]  ;;  %v4276_v60 = vld [vmem:[#allocation26_spill] sm:$0xff] }
 0x67d   :  { %1877 = vmatpush1.msra.mxu0 %v4264_v62  ;;  %1948 = vmatpush1.msra.mxu1 %v4265_v63  ;;  %v4277_v62 = vld [vmem:[#allocation25_spill] sm:$0xff] }
 0x67e   :  { %1878 = vmatprep.subr.mxu0 %v4266_v1  ;;  %1949 = vmatprep.subr.mxu1 %v4267_v2  ;;  %v859_v63 = vmul.f32 %v4277_v62, %v4276_v60  ;;  %v4278_v1 = vld [vmem:[#allocation31_spill] sm:$0xff] }
 0x67f   :  { %1879 = vmatpush1.msra.mxu0 %v4268_v3  ;;  %1912 = vmatprep.mubr.f32.mxu0 %v4269_v4  ;;  %v4279_v2 = vld [vmem:[#allocation23_spill] sm:$0xff] }
 0x680   :  { %1950 = vmatpush1.msra.mxu1 %v4270_v5  ;;  %1983 = vmatprep.mubr.f32.mxu1 %v4269_v4  ;;  %v1054_v3 = vmul.f32 %v4279_v2, %v4278_v1  ;;  %v4280_v4 = vld [vmem:[#allocation33_spill] sm:$0xff]  ;;  %v4281_v5 = vld [vmem:[#allocation44_spill] sm:$0xff] }
 0x681   :  { %2316 = vmatprep.subr.mxu0 %v2063_v6 }
 0x720   :  { %v1719_v11 = vpop.f32.mrf.mxu0  ;;  %v1790_v30 = vpop.f32.mrf.mxu1 }
 0x721   :  { %v1795_v20 = vadd.f32 %v1719_v11, %v4271_v16  ;;  %v1797_v34 = vadd.f32 %v1790_v30, %v4274_v7  ;;  %v4282_v11 = vld [vmem:[#allocation50_spill] sm:$0xff]  ;;  %v4285_v30 = vld [vmem:[#allocation24_spill] sm:$0xff] }
 0x722   :  { %v1721_v19 = vpop.f32.mrf.mxu0  ;;  %v1792_v40 = vpop.f32.mrf.mxu1  ;;  %v4283_v16 = vld [vmem:[#allocation38_spill] sm:$0xff] }
 0x723   :  { %v2283_v56 = vmul.f32 -1.442695, %v1795_v20  ;;  %v1796_v44 = vadd.f32 %v1721_v19, %v4272_v41  ;;  %v1798_v38 = vadd.f32 %v1792_v40, %v4273_v39  ;;  %v1444_v20 = vmul.f32 %v4283_v16, %v4282_v11  ;;  %v4286_v40 = vld [vmem:[#allocation76_spill] sm:$0xff] }
 0x724   :  { %v1639_v19 = vmul.f32 %v3818_v23, %v3824_v26  ;;  %v4288_v26 = vld [vmem:[#allocation63_spill] sm:$0xff] }
 0x725   :  { %2471 = vpow2.f32 %v2283_v56  ;;  %v2284_v47 = vmul.f32 -1.442695, %v1796_v44  ;;  %v2285_v37 = vmul.f32 -1.442695, %v1798_v38  ;;  %v4284_v44 = vld [vmem:[#allocation64_spill] sm:$0xff] }
 0x727   :  { %2473 = vpow2.f32 %v2284_v47  ;;  %v266_v47 = vadd.f32 %v4285_v30, %v4284_v44 }
 0x728   :  { %2475 = vtanh.f32 %v1797_v34 }
 0x729   :  { %2477 = vpow2.f32 %v2285_v37 }
 0x732   :  { %v2472_v12 = vpop.eup %2471 }
 0x733   :  { %v1802_v31 = vadd.f32 1.0, %v2472_v12 }
 0x734   :  { %v2474_v14 = vpop.eup %2473 }
 0x735   :  { %2479 = vrcp.f32 %v1802_v31  ;;  %v1808_v17 = vadd.f32 1.0, %v2474_v14  ;;  %v2476_v24 = vpop.eup %2475  ;;  %v4287_v14 = vld [vmem:[#allocation65_spill] sm:$0xff] }
 0x736   :  { %v2478_v42 = vpop.eup %2477 }
 0x737   :  { %2481 = vrcp.f32 %v1808_v17  ;;  %v1815_v22 = vadd.f32 1.0, %v2478_v42 }
 0x739   :  { %2483 = vrcp.f32 %v1815_v22  ;;  %v3937_v22 = vld [vmem:[%s3970_s6] ss:$0 sm:$0xff]  ;;  %s2727_s6 = smov [#allocation15]  }
 0x73a   :  { %s2215_s12 = sshll.u32 %s2727_s6, 4  ;;  %s2216_s12 = int_to_ptr.vmem [resolvable:$true] %s2215_s12 }
 0x73b   :  { %s2647_s13 = scalar_lea.vmem %s2216_s12, 128  ;;  %p2652_p7 = scmp.lt.s32.totalorder %s2216_s12, %s2216_s12 }
 0x73c   :  { %p2648_p6 = scmp.ne.s32.totalorder %s2216_s12, %s2647_s13  ;;  %p2653_p8 = scmp.lt.s32.totalorder %s2647_s13, %s2647_s13 }
 0x73e   :  { %p2654_p9 = por %p2653_p8, %p2652_p7 }
 0x740   :  { %p2655_p10 = pnand %p2654_p9, %p2648_p6 }
 0x742   :  { %v2480_v36 = vpop.eup %2479 }
 0x743   :  { %v1819_v50 = vmul.f32 %v2480_v36, %v2476_v24 }
 0x744   :  { %v2482_v32 = vpop.eup %2481 }
 0x745   :  { %v1818_v45 = vmul.f32 %v2482_v32, %v3822_v33 }
 0x746   :  { %v2484_v35 = vpop.eup %2483 }
 0x747   :  { %v1820_v18 = vadd.f32 %v1819_v50, %v1818_v45 }
 0x749   :  { %2485 = vtanh.f32 %v1820_v18  ;;  %v1840_v29 = vsub.f32 %v1820_v18, %v3822_v33 }
 0x74b   :  { %v1841_v13 = vmul.f32 %v1840_v29, %v3904_v10 }
 0x74d   :  { %v3908_v49 = vadd.f32 %v1841_v13, %v3822_v33  ;;  %v2061_v33 = vld [vmem:[#allocation12 + $0x68] sm:$0xff] }
 0x756   :  { %v2486_v25 = vpop.eup %2485 }
 0x757   :  { %v1822_v53 = vmul.f32 %v2486_v25, %v2484_v35 }
 0x759   :  { %v1837_v15 = vsub.f32 %v1822_v53, %v3830_v0  ;;  %v1834_v56 = vmul.f32 %v3904_v10, %v1822_v53 }
 0x75b   :  { %v1838_v21 = vmul.f32 %v1837_v15, %v3904_v10 }
 0x75d   :  { %v3913_v52 = vadd.f32 %v1838_v21, %v3830_v0  ;;  %v2057_v0 = vld [vmem:[#allocation12 + $0x48] sm:$0xff] }
 0x75f   :  { %1913 = vmatmul.mubr.f32.vlgmr.msra.gmra.mxu0 %v3913_v52  ;;  %1984 = vmatmul.mubr.f32.vlgmr.msra.gmra.mxu1 %v3913_v52 }
 0x760   :  { %2317 = vmatpush3.msra.mxu0 %v2063_v6  ;;  %2348 = vmatprep.mubr.f32.mxu0 %v4275_v51  ;;  %v1249_v6 = vmul.f32 %v4281_v5, %v4280_v4 }
 0x761   :  { %2318 = vmatprep.subr.mxu0 %v2062_v8 }
 0x762   :  { %2319 = vmatpush3.msra.mxu0 %v2062_v8 }
 0x763   :  { %2320 = vmatprep.subr.mxu0 %v2061_v33 }
 0x764   :  { %2321 = vmatpush3.msra.mxu0 %v2061_v33 }
 0x765   :  { %2322 = vmatprep.subr.mxu0 %v2060_v27 }
 0x766   :  { %2323 = vmatpush3.msra.mxu0 %v2060_v27 }
 0x767   :  { %2324 = vmatprep.subr.mxu0 %v2059_v28 }
 0x768   :  { %2325 = vmatpush3.msra.mxu0 %v2059_v28 }
 0x769   :  { %2326 = vmatprep.subr.mxu0 %v2058_v61 }
 0x76a   :  { %2327 = vmatpush3.msra.mxu0 %v2058_v61 }
 0x76b   :  { %2328 = vmatprep.subr.mxu0 %v2057_v0 }
 0x76c   :  { %2329 = vmatpush3.msra.mxu0 %v2057_v0 }
 0x76d   :  { %2330 = vmatprep.subr.mxu0 %v2056_v46 }
 0x76e   :  { %2331 = vmatpush3.msra.mxu0 %v2056_v46 }
 0x76f   :  { %2332 = vmatprep.subr.mxu0 %v2055_v43 }
 0x770   :  { %2333 = vmatpush3.msra.mxu0 %v2055_v43 }
 0x771   :  { %2334 = vmatprep.subr.mxu0 %v2054_v9 }
 0x772   :  { %2335 = vmatpush3.msra.mxu0 %v2054_v9 }
 0x773   :  { %2336 = vmatprep.subr.mxu0 %v2053_v54 }
 0x774   :  { %2337 = vmatpush3.msra.mxu0 %v2053_v54 }
 0x775   :  { %2338 = vmatprep.subr.mxu0 %v2052_v55 }
 0x776   :  { %2339 = vmatpush3.msra.mxu0 %v2052_v55 }
 0x777   :  { %2340 = vmatprep.subr.mxu0 %v2051_v57 }
 0x778   :  { %2341 = vmatpush3.msra.mxu0 %v2051_v57 }
 0x779   :  { %2342 = vmatprep.subr.mxu0 %v2050_v48 }
 0x77a   :  { %2343 = vmatpush3.msra.mxu0 %v2050_v48  ;;  %v2027_v48 = vpop.permute.xlu1 %2026 }
 0x77b   :  { %2344 = vmatprep.subr.mxu0 %v2049_v58 }
 0x77c   :  { %2345 = vmatpush3.msra.mxu0 %v2049_v58 }
 0x77d   :  { %2346 = vmatprep.subr.mxu0 %v2048_v59 }
 0x77e   :  { %2347 = vmatpush3.msra.mxu0 %v2048_v59 }
 0x77f   :  { %2349 = vmatmul.mubr.f32.vlgmr.msra.gmra.mxu0 %v859_v63 }
 0x780   :  { %2351 = vmatprep.mubr.f32.mxu0 %v1054_v3 }
 0x783   :  { %2352 = vmatmul.mubr.f32.gmra.mxu0 %v1249_v6 }
 0x784   :  { %2354 = vmatprep.mubr.f32.mxu0 %v1444_v20 }
 0x787   :  { %2355 = vmatmul.mubr.f32.gmra.mxu0 %v1639_v19 }
 0x788   :  { %2357 = vmatprep.mubr.f32.mxu0 %v1834_v56 }
 0x81f   :  { %v1914_v41 = vpop.f32.mrf.mxu0  ;;  %v1985_v37 = vpop.f32.mrf.mxu1 }
 0x820   :  { %v1990_v39 = vadd.f32 %v1914_v41, %v4286_v40  ;;  %v1992_v17 = vadd.f32 %v1985_v37, %v4288_v26 }
 0x821   :  { %v1916_v38 = vpop.f32.mrf.mxu0  ;;  %v1987_v31 = vpop.f32.mrf.mxu1 }
 0x822   :  { %v2287_v7 = vmul.f32 -1.442695, %v1990_v39  ;;  %v1991_v34 = vadd.f32 %v1916_v38, %v266_v47  ;;  %v1993_v23 = vadd.f32 %v1987_v31, %v4287_v14 }
 0x824   :  { %2487 = vpow2.f32 %v2287_v7  ;;  %v2288_v12 = vmul.f32 -1.442695, %v1991_v34  ;;  %v2289_v24 = vmul.f32 -1.442695, %v1993_v23 }
 0x826   :  { %2489 = vpow2.f32 %v2288_v12 }
 0x827   :  { %2491 = vtanh.f32 %v1992_v17 }
 0x828   :  { %2493 = vpow2.f32 %v2289_v24 }
 0x831   :  { %v2488_v42 = vpop.eup %2487 }
 0x832   :  { %v1997_v36 = vadd.f32 1.0, %v2488_v42 }
 0x833   :  { %v2490_v50 = vpop.eup %2489 }
 0x834   :  { %2495 = vrcp.f32 %v1997_v36  ;;  %v2003_v32 = vadd.f32 1.0, %v2490_v50  ;;  %v2492_v45 = vpop.eup %2491 }
 0x835   :  { %v2494_v29 = vpop.eup %2493 }
 0x836   :  { %2497 = vrcp.f32 %v2003_v32  ;;  %v2010_v8 = vadd.f32 1.0, %v2494_v29 }
 0x838   :  { %2499 = vrcp.f32 %v2010_v8 }
 0x83f   :  { %v2350_v18 = vpop.f32.mrf.mxu0 }
 0x840   :  { %v2143_v10 = vadd.f32 %v2350_v18, %v3937_v22 }
 0x841   :  { %v2496_v13 = vpop.eup %2495  ;;  %v2137_v35 = vpop.f32.mrf.mxu0 }
 0x842   :  { %v2014_v25 = vmul.f32 %v2496_v13, %v2492_v45  ;;  %v2177_v53 = vmax.f32 %v2143_v10, 0.0  ;;  %v2138_v15 = vadd.f32 %v3937_v22, %v2137_v35 }
 0x843   :  { %v2498_v21 = vpop.eup %2497  ;;  %v2353_v51 = vpop.f32.mrf.mxu0 }
 0x844   :  { %v2013_v33 = vmul.f32 %v2498_v21, %v3908_v49  ;;  %2185 = vst [vmem:[#allocation14 + $0x8] sm:$0xff] %v2177_v53  ;;  %v2176_v27 = vmax.f32 %v2138_v15, 0.0  ;;  %v2153_v28 = vadd.f32 %v2353_v51, %v3937_v22 }
 0x845   :  { %v2147_v61 = vpop.f32.mrf.mxu0  ;;  %v2500_v2 = vpop.eup %2499 }
 0x846   :  { %v2015_v0 = vadd.f32 %v2014_v25, %v2013_v33  ;;  %2184 = vst [vmem:[#allocation14] sm:$0xff] %v2176_v27  ;;  %v2179_v46 = vmax.f32 %v2153_v28, 0.0  ;;  %v2148_v43 = vadd.f32 %v3937_v22, %v2147_v61 }
 0x847   :  { %v2356_v9 = vpop.f32.mrf.mxu0 }
 0x848   :  { %2187 = vst [vmem:[#allocation14 + $0x18] sm:$0xff] %v2179_v46  ;;  %v2178_v54 = vmax.f32 %v2148_v43, 0.0  ;;  %v2163_v55 = vadd.f32 %v2356_v9, %v3937_v22  ;;  %2501 = vtanh.f32 %v2015_v0  ;;  %v2035_v57 = vsub.f32 %v2015_v0, %v3908_v49 }
 0x849   :  { %v2157_v58 = vpop.f32.mrf.mxu0 }
 0x84a   :  { %2186 = vst [vmem:[#allocation14 + $0x10] sm:$0xff] %v2178_v54  ;;  %v2181_v59 = vmax.f32 %v2163_v55, 0.0  ;;  %v2158_v60 = vadd.f32 %v3937_v22, %v2157_v58  ;;  %v2036_v62 = vmul.f32 %v2035_v57, %v2027_v48 }
 0x84c   :  { %2189 = vst [vmem:[#allocation14 + $0x28] sm:$0xff] %v2181_v59  ;;  %v2180_v63 = vmax.f32 %v2158_v60, 0.0  ;;  %v2037_v1 = vadd.f32 %v2036_v62, %v3908_v49 }
 0x84e   :  { %2188 = vst [vmem:[#allocation14 + $0x20] sm:$0xff] %v2180_v63  ;;  %2196 = vst [vmem:[#allocation17] sm:$0xff] %v2037_v1 }
 0x855   :  { %v2502_v3 = vpop.eup %2501 }
 0x856   :  { %v2017_v4 = vmul.f32 %v2502_v3, %v2500_v2 }
 0x858   :  { %v2029_v5 = vmul.f32 %v2027_v48, %v2017_v4  ;;  %v2032_v6 = vsub.f32 %v2017_v4, %v3913_v52 }
 0x85a   :  { %2358 = vmatmul.mubr.f32.gmra.mxu0 %v2029_v5  ;;  %v2033_v11 = vmul.f32 %v2032_v6, %v2027_v48 }
 0x85c   :  { %v2034_v16 = vadd.f32 %v2033_v11, %v3913_v52 }
 0x85e   :  { %2195 = vst [vmem:[#allocation15] sm:$0xff] %v2034_v16 }
 0x85f   :  { %2658 = shalt.err (!%p2655_p10)
}
 0x860   :  { %2218 = dma.vmem_to_hbm [thread:$0]  %s2216_s12, 128, %s3972_s8, [#allocation16]  }
 0x861   :  { %s2728_s16 = smov [#allocation17]  }
 0x862   :  { %s2225_s17 = sshll.u32 %s2728_s16, 4  ;;  %s2226_s17 = int_to_ptr.vmem [resolvable:$true] %s2225_s17 }
 0x863   :  { %s2667_s18 = scalar_lea.vmem %s2226_s17, 128  ;;  %p2672_p12 = scmp.lt.s32.totalorder %s2226_s17, %s2226_s17 }
 0x864   :  { %p2668_p11 = scmp.ne.s32.totalorder %s2226_s17, %s2667_s18  ;;  %p2673_p13 = scmp.lt.s32.totalorder %s2667_s18, %s2667_s18 }
 0x866   :  { %p2674_p0 = por %p2673_p13, %p2672_p12 }
 0x868   :  { %p2675_p1 = pnand %p2674_p0, %p2668_p11 }
 0x86a   :  { %2678 = shalt.err (!%p2675_p1)
}
 0x86b   :  { %2228 = dma.vmem_to_hbm [thread:$0]  %s2226_s17, 128, %s3973_s9, [#allocation16]  }
 0x86c   :  { %s2729_s2 = smov [#allocation14]  }
 0x86d   :  { %s2202_s8 = sshll.u32 %s2729_s2, 4  ;;  %s2203_s8 = int_to_ptr.vmem [resolvable:$true] %s2202_s8 }
 0x86e   :  { %s2687_s23 = scalar_lea.vmem %s2203_s8, 1024  ;;  %p2692_p3 = scmp.lt.s32.totalorder %s2203_s8, %s2203_s8 }
 0x86f   :  { %p2688_p2 = scmp.ne.s32.totalorder %s2203_s8, %s2687_s23  ;;  %p2693_p4 = scmp.lt.s32.totalorder %s2687_s23, %s2687_s23 }
 0x871   :  { %p2694_p5 = por %p2693_p4, %p2692_p3 }
 0x873   :  { %p2695_p6 = pnand %p2694_p5, %p2688_p2 }
 0x91a   :  { %v2359_v49 = vpop.f32.mrf.mxu0 }
 0x91b   :  { %v2173_v52 = vadd.f32 %v2359_v49, %v3937_v22 }
 0x91c   :  { %v2167_v20 = vpop.f32.mrf.mxu0 }
 0x91d   :  { %v2183_v19 = vmax.f32 %v2173_v52, 0.0  ;;  %v2168_v56 = vadd.f32 %v3937_v22, %v2167_v20 }
 0x91f   :  { %2191 = vst [vmem:[#allocation14 + $0x38] sm:$0xff] %v2183_v19  ;;  %v2182_v41 = vmax.f32 %v2168_v56, 0.0 }
 0x921   :  { %2190 = vst [vmem:[#allocation14 + $0x30] sm:$0xff] %v2182_v41 }
 0x922   :  { %2698 = shalt.err (!%p2695_p6)
}
 0x923   :  { %2208 = dma.vmem_to_hbm [thread:$0]  %s2203_s8, 1024, %s3971_s7, [#allocation8], %s2721_s19, %s2721_s19, %s2722_s20  }
 0x924   :  { %2713 = dma.done.wait [#allocation8], 1024  }
 0x925   :  { %2714 = vsyncadd [#allocation8], 4294966272 }
 0x926   :  { %2715 = dma.done.wait [#allocation16], 256  }
 0x927   :  { %2716 = vsyncadd [#allocation16], 4294967040 }
 0x928   :  { %2238 = vsyncpa [#allocation7], 1 }
 0x929   :  { %2239 = vsyncpa [#allocation10], 1 }
 0x92a   :  { %2240 = vsyncpa [#allocation13], 1 }
 0x92b   :  { %2241 = vsyncpa [#allocation8], 1 }
 0x92c   :  { %2242 = vsyncpa [#allocation16], 1 }

// kernel: tpu_custom_call.1
= control target key start
LH: loop header
LB: loop body
LE: loop exit
PB: predicated region body
PF: predicated region fallthrough
CT: control target
= control target key end

     0   :  { %15 = vsyncpa [#allocation7], 0  ;;  %s3964_s0 = inlined_call_operand.hbm [shape: f32[8,8,16], index: 0, kind: input, shape index: {}]   ;;  %s3965_s1 = inlined_call_operand.vmem [shape: f32[8,1], index: 1, kind: input, shape index: {}]   ;;  %s3966_s2 = inlined_call_operand.hbm [shape: f32[16,512], index: 2, kind: input, shape index: {}]   ;;  %s3967_s3 = inlined_call_operand.vmem [shape: f32[1,512], index: 3, kind: input, shape index: {}]   ;;  %s3968_s4 = inlined_call_operand.hbm [shape: f32[128,512], index: 4, kind: input, shape index: {}]   ;;  %s3969_s5 = inlined_call_operand.hbm [shape: f32[128,128], index: 5, kind: input, shape index: {}]   ;;  %s3970_s6 = inlined_call_operand.vmem [shape: f32[1,128], index: 6, kind: input, shape index: {}]   ;;  %s3971_s7 = inlined_call_operand.hbm [shape: f32[8,8,128], index: 7, kind: output, shape index: {0}]   ;;  %s3972_s8 = inlined_call_operand.hbm [shape: f32[8,128], index: 8, kind: output, shape index: {1}]   ;;  %s3973_s9 = inlined_call_operand.hbm [shape: f32[8,128], index: 9, kind: output, shape index: {2}]  }
   0x1   :  { %16 = vsyncpa [#allocation10], 0 }
   0x2   :  { %17 = vsyncpa [#allocation13], 0 }
   0x3   :  { %18 = vsyncpa [#allocation8], 0 }
   0x4   :  { %19 = vsyncpa [#allocation16], 0  ;;  %s2717_s30 = smov [#allocation9]  }
   0x5   :  { %s39_s10 = sshll.u32 %s2717_s30, 4  ;;  %s40_s10 = int_to_ptr.vmem [resolvable:$true] %s39_s10 }
   0x6   :  { %s2575_s11 = scalar_lea.vmem %s40_s10, 1024  ;;  %p2580_p1 = scmp.lt.s32.totalorder %s40_s10, %s40_s10 }
   0x7   :  { %p2576_p0 = scmp.ne.s32.totalorder %s40_s10, %s2575_s11  ;;  %p2581_p2 = scmp.lt.s32.totalorder %s2575_s11, %s2575_s11 }
   0x9   :  { %p2582_p3 = por %p2581_p2, %p2580_p1 }
   0xb   :  { %p2583_p4 = pnand %p2582_p3, %p2576_p0 }
   0xd   :  { %2586 = shalt.err (!%p2583_p4)
}
   0xe   :  { %s2718_s12 = smov 512   ;;  %s2719_s13 = smov 32  }
   0xf   :  { %45 = dma.hbm_to_vmem [thread:$0]  %s3966_s2, 1024, %s40_s10, [#allocation10], %s2718_s12, %s2718_s12, %s2719_s13  }
  0x10   :  { %s2720_s16 = smov [#allocation6]  }
  0x11   :  { %s25_s17 = sshll.u32 %s2720_s16, 4  ;;  %s26_s17 = int_to_ptr.vmem [resolvable:$true] %s25_s17 }
  0x12   :  { %s2595_s18 = scalar_lea.vmem %s26_s17, 1024  ;;  %p2600_p6 = scmp.lt.s32.totalorder %s26_s17, %s26_s17 }
  0x13   :  { %p2596_p5 = scmp.ne.s32.totalorder %s26_s17, %s2595_s18  ;;  %p2601_p7 = scmp.lt.s32.totalorder %s2595_s18, %s2595_s18 }
  0x15   :  { %p2602_p8 = por %p2601_p7, %p2600_p6 }
  0x17   :  { %p2603_p9 = pnand %p2602_p8, %p2596_p5 }
  0x19   :  { %2606 = shalt.err (!%p2603_p9)
}
  0x1a   :  { %s2721_s19 = smov 128   ;;  %s2722_s20 = smov 8  }
  0x1b   :  { %31 = dma.hbm_to_vmem [thread:$0]  %s3964_s0, 1024, %s26_s17, [#allocation7], %s2721_s19, %s2721_s19, %s2722_s20  }
  0x1c   :  { %s2723_s2 = smov [#allocation11]   ;;  %s2724_s24 = smov [#allocation12]  }
  0x1d   :  { %s53_s23 = sshll.u32 %s2723_s2, 4  ;;  %s65_s25 = sshll.u32 %s2724_s24, 4  ;;  %s54_s23 = int_to_ptr.vmem [resolvable:$true] %s53_s23  ;;  %s66_s25 = int_to_ptr.vmem [resolvable:$true] %s65_s25 }
  0x1e   :  { %s2615_s26 = scalar_lea.vmem %s54_s23, 8192  ;;  %p2620_p11 = scmp.lt.s32.totalorder %s54_s23, %s54_s23 }
  0x1f   :  { %p2616_p10 = scmp.ne.s32.totalorder %s54_s23, %s2615_s26  ;;  %p2621_p12 = scmp.lt.s32.totalorder %s2615_s26, %s2615_s26 }
  0x21   :  { %p2622_p13 = por %p2621_p12, %p2620_p11 }
  0x23   :  { %p2623_p0 = pnand %p2622_p13, %p2616_p10 }
  0x25   :  { %2626 = shalt.err (!%p2623_p0)
}
  0x26   :  { %59 = dma.hbm_to_vmem [thread:$0]  %s3968_s4, 8192, %s54_s23, [#allocation10], %s2718_s12, %s2718_s12, %s2719_s13  }
  0x27   :  { %s2635_s0 = scalar_lea.vmem %s66_s25, 2048  ;;  %p2640_p2 = scmp.lt.s32.totalorder %s66_s25, %s66_s25 }
  0x28   :  { %p2636_p1 = scmp.ne.s32.totalorder %s66_s25, %s2635_s0  ;;  %p2641_p3 = scmp.lt.s32.totalorder %s2635_s0, %s2635_s0 }
  0x2a   :  { %p2642_p4 = por %p2641_p3, %p2640_p2 }
  0x2c   :  { %p2643_p5 = pnand %p2642_p4, %p2636_p1 }
  0x2e   :  { %2646 = shalt.err (!%p2643_p5)
}
  0x2f   :  { %71 = dma.hbm_to_vmem [thread:$0]  %s3969_s5, 2048, %s66_s25, [#allocation13], %s2721_s19, %s2721_s19, %s2722_s20  }
  0x30   :  { %2707 = dma.done.wait [#allocation7], 1024  }
  0x31   :  { %2708 = vsyncadd [#allocation7], 4294966272 }
  0x32   :  { %2709 = dma.done.wait [#allocation10], 9216  }
  0x33   :  { %2710 = vsyncadd [#allocation10], 4294958080 }
  0x34   :  { %2711 = dma.done.wait [#allocation13], 2048  }
  0x35   :  { %2712 = vsyncadd [#allocation13], 4294965248  ;;  %v3974_v0 = vmov 0.0   ;;  %v2726_v1 = vmov 0   ;;  %v107_v2 = vld [vmem:[#allocation9 + $0x38] sm:$0xff]  ;;  %v106_v3 = vld [vmem:[#allocation9 + $0x30] sm:$0xff] }
  0x36   :  { %332 = vmatprep.mubr.f32.mxu1 %v3974_v0  ;;  %219 = vmatprep.mubr.f32.mxu0 %v3974_v0  ;;  %v103_v4 = vld [vmem:[#allocation9 + $0x18] sm:$0xff]  ;;  %v102_v5 = vld [vmem:[#allocation9 + $0x10] sm:$0xff]  ;;  %v2806_v6 = vld [vmem:[#allocation6] sm:$0xff]  ;;  %vm130_vm0 = vcmask 130048  }
  0x37   :  { %2373 = vset.pattern.permute.xlu0 %v2726_v1  ;;  %2374 = vset.pattern.permute.xlu1 %v2726_v1  ;;  %v2808_v7 = vld [vmem:[#allocation11 + $0x1e8] sm:$0xff]  ;;  %v2810_v8 = vld [vmem:[#allocation11 + $0x1e0] sm:$0xff]  ;;  %v2838_v16 = vld [vmem:[#allocation6 + $0x10] sm:$0xff] }
  0x38   :  { %296 = vmatprep.subr.mxu1 %v107_v2  ;;  %4081 = vst [vmem:[#allocation23_spill] sm:$0xff] %v2808_v7  ;;  %v2812_v9 = vld [vmem:[#allocation11 + $0x1c8] sm:$0xff]  ;;  %v2817_v10 = vld [vmem:[#allocation11 + $0x1c0] sm:$0xff]  ;;  %v2855_v23 = vld [vmem:[#allocation6 + $0x18] sm:$0xff] }
  0x39   :  { %297 = vmatpush1.msra.mxu1 %v106_v3  ;;  %v2821_v11 = vld [vmem:[#allocation6 + $0x8] sm:$0xff]  ;;  %v2826_v13 = vld [vmem:[#allocation11 + $0x1a0] sm:$0xff]  ;;  %v2909_v40 = vld [vmem:[#allocation6 + $0x30] sm:$0xff] }
  0x3a   :  { %298 = vmatprep.subr.mxu1 %v103_v4  ;;  %v2823_v12 = vld [vmem:[#allocation11 + $0x1a8] sm:$0xff]  ;;  %v2834_v15 = vld [vmem:[#allocation11 + $0x180] sm:$0xff]  ;;  %v2936_v47 = vld [vmem:[#allocation6 + $0x38] sm:$0xff] }
  0x3b   :  { %299 = vmatpush1.msra.mxu1 %v102_v5  ;;  %v2829_v14 = vld [vmem:[#allocation11 + $0x188] sm:$0xff]  ;;  %v2843_v18 = vld [vmem:[#allocation11 + $0x160] sm:$0xff]  ;;  %v2956_v53 = vld [vmem:[#allocation11 + $0x1f8] sm:$0xff] }
  0x3c   :  { %2251 = vmatmul.mubr.msk.f32.vlgmr.msra.gmra.mxu1 %vm130_vm0, %v2806_v6  ;;  %485 = vmatprep.subr.mxu1 %v2808_v7  ;;  %v2840_v17 = vld [vmem:[#allocation11 + $0x168] sm:$0xff]  ;;  %v2851_v21 = vld [vmem:[#allocation11 + $0x140] sm:$0xff]  ;;  %4097 = vst [vmem:[#allocation39_spill] sm:$0xff] %v2956_v53  ;;  %v2959_v54 = vld [vmem:[#allocation11 + $0x1f0] sm:$0xff] }
  0x3d   :  { %486 = vmatpush1.msra.mxu1 %v2810_v8  ;;  %338 = vmatprep.mubr.f32.mxu1 %v3974_v0  ;;  %v2846_v19 = vld [vmem:[#allocation11 + $0x148] sm:$0xff]  ;;  %v104_v22 = vld [vmem:[#allocation9 + $0x20] sm:$0xff]  ;;  %v2962_v55 = vld [vmem:[#allocation11 + $0x1d8] sm:$0xff] }
  0x3e   :  { %487 = vmatprep.subr.mxu1 %v2812_v9  ;;  %v105_v20 = vld [vmem:[#allocation9 + $0x28] sm:$0xff]  ;;  %v2860_v25 = vld [vmem:[#allocation11 + $0x120] sm:$0xff]  ;;  %v2969_v57 = vld [vmem:[#allocation11 + $0x1d0] sm:$0xff] }
  0x3f   :  { %488 = vmatpush1.msra.mxu1 %v2817_v10  ;;  %v2857_v24 = vld [vmem:[#allocation11 + $0x128] sm:$0xff]  ;;  %183 = vmatprep.subr.mxu0 %v105_v20  ;;  %v2868_v28 = vld [vmem:[#allocation11 + $0x100] sm:$0xff]  ;;  %v2973_v58 = vld [vmem:[#allocation11 + $0x1b8] sm:$0xff] }
  0x40   :  { %2252 = vmatmul.mubr.msk.f32.gmra.mxu1 %vm130_vm0, %v2821_v11  ;;  %489 = vmatprep.subr.mxu1 %v2823_v12  ;;  %v2863_v26 = vld [vmem:[#allocation11 + $0x108] sm:$0xff]  ;;  %4083 = vst [vmem:[#allocation25_spill] sm:$0xff] %v2868_v28  ;;  %v100_v29 = vld [vmem:[#allocation9] sm:$0xff]  ;;  %v2977_v59 = vld [vmem:[#allocation11 + $0x1b0] sm:$0xff] }
  0x41   :  { %490 = vmatpush1.msra.mxu1 %v2826_v13  ;;  %344 = vmatprep.mubr.f32.mxu1 %v3974_v0  ;;  %4082 = vst [vmem:[#allocation24_spill] sm:$0xff] %v2863_v26  ;;  %v101_v27 = vld [vmem:[#allocation9 + $0x8] sm:$0xff]  ;;  %v2872_v30 = vld [vmem:[#allocation6 + $0x20] sm:$0xff]  ;;  %v2980_v60 = vld [vmem:[#allocation11 + $0x198] sm:$0xff] }
  0x42   :  { %491 = vmatprep.subr.mxu1 %v2829_v14  ;;  %184 = vmatpush1.msra.mxu0 %v104_v22  ;;  %v2874_v31 = vld [vmem:[#allocation11 + $0xe8] sm:$0xff]  ;;  %v2877_v32 = vld [vmem:[#allocation11 + $0xe0] sm:$0xff]  ;;  %v2985_v62 = vld [vmem:[#allocation11 + $0x190] sm:$0xff] }
  0x43   :  { %492 = vmatpush1.msra.mxu1 %v2834_v15  ;;  %4084 = vst [vmem:[#allocation26_spill] sm:$0xff] %v2874_v31  ;;  %4085 = vst [vmem:[#allocation27_spill] sm:$0xff] %v2877_v32  ;;  %185 = vmatprep.subr.mxu0 %v101_v27  ;;  %v2880_v33 = vld [vmem:[#allocation11 + $0xc8] sm:$0xff]  ;;  %v2885_v34 = vld [vmem:[#allocation11 + $0xc0] sm:$0xff] }
  0x44   :  { %2253 = vmatmul.mubr.msk.f32.gmra.mxu1 %vm130_vm0, %v2838_v16  ;;  %493 = vmatprep.subr.mxu1 %v2840_v17  ;;  %v2889_v35 = vld [vmem:[#allocation6 + $0x28] sm:$0xff]  ;;  %v2894_v37 = vld [vmem:[#allocation11 + $0xa0] sm:$0xff]  ;;  %v2989_v63 = vld [vmem:[#allocation11 + $0x178] sm:$0xff] }
  0x45   :  { %494 = vmatpush1.msra.mxu1 %v2843_v18  ;;  %350 = vmatprep.mubr.f32.mxu1 %v3974_v0  ;;  %v2891_v36 = vld [vmem:[#allocation11 + $0xa8] sm:$0xff]  ;;  %v2905_v39 = vld [vmem:[#allocation11 + $0x80] sm:$0xff]  ;;  %v2993_v1 = vld [vmem:[#allocation11 + $0x170] sm:$0xff] }
  0x46   :  { %495 = vmatprep.subr.mxu1 %v2846_v19  ;;  %186 = vmatpush1.msra.mxu0 %v100_v29  ;;  %v2899_v38 = vld [vmem:[#allocation11 + $0x88] sm:$0xff]  ;;  %4087 = vst [vmem:[#allocation29_spill] sm:$0xff] %v2905_v39  ;;  %v2916_v42 = vld [vmem:[%s3965_s1] sm:$0xff]  ;;  %v2996_v2 = vld [vmem:[#allocation11 + $0x158] sm:$0xff] }
  0x47   :  { %496 = vmatpush1.msra.mxu1 %v2851_v21  ;;  %2243 = vmatmul.mubr.msk.f32.vlgmr.msra.gmra.mxu0 %vm130_vm0, %v2806_v6  ;;  %4086 = vst [vmem:[#allocation28_spill] sm:$0xff] %v2899_v38  ;;  %v2911_v41 = vld [vmem:[#allocation11 + $0x68] sm:$0xff]  ;;  %4089 = vst [vmem:[#allocation31_spill] sm:$0xff] %v2916_v42  ;;  %v2919_v43 = vld [vmem:[#allocation11 + $0x60] sm:$0xff]  ;;  %vm657_vm1 = vcmp.gt.f32.partialorder %v2916_v42, 0.0  ;;  %vm851_vm2 = vcmp.gt.f32.partialorder %v2916_v42, 1.0 }
  0x48   :  { %2254 = vmatmul.mubr.msk.f32.gmra.mxu1 %vm130_vm0, %v2855_v23  ;;  %497 = vmatprep.subr.mxu1 %v2857_v24  ;;  %4088 = vst [vmem:[#allocation30_spill] sm:$0xff] %v2911_v41  ;;  %4090 = vst [vmem:[#allocation32_spill] sm:$0xff] %v2919_v43  ;;  %v2924_v44 = vld [vmem:[#allocation11 + $0x48] sm:$0xff]  ;;  %v2262_v45 = vsel %vm657_vm1, 1.0, %v3974_v0  ;;  %v2931_v46 = vld [vmem:[#allocation11 + $0x40] sm:$0xff]  ;;  %v2266_v51 = vsel %vm851_vm2, 1.0, %v3974_v0 }
  0x49   :  { %498 = vmatpush1.msra.mxu1 %v2860_v25  ;;  %356 = vmatprep.mubr.f32.mxu1 %v3974_v0  ;;  %4091 = vst [vmem:[#allocation33_spill] sm:$0xff] %v2924_v44  ;;  %4092 = vst [vmem:[#allocation34_spill] sm:$0xff] %v2931_v46  ;;  %v2938_v48 = vld [vmem:[#allocation11 + $0x28] sm:$0xff]  ;;  %v2941_v49 = vld [vmem:[#allocation11 + $0x20] sm:$0xff]  ;;  %vm1436_vm3 = vcmp.gt.f32.partialorder %v2916_v42, 4.0  ;;  %vm1826_vm4 = vcmp.gt.f32.partialorder %v2916_v42, 6.0 }
  0x4a   :  { %499 = vmatprep.subr.mxu1 %v2863_v26  ;;  %678 = vmatprep.subr.mxu0 %v2808_v7  ;;  %4093 = vst [vmem:[#allocation35_spill] sm:$0xff] %v2938_v48  ;;  %4094 = vst [vmem:[#allocation36_spill] sm:$0xff] %v2941_v49  ;;  %v2944_v50 = vld [vmem:[#allocation11 + $0x8] sm:$0xff]  ;;  %v2951_v52 = vld [vmem:[#allocation11] sm:$0xff]  ;;  %v2278_v56 = vsel %vm1436_vm3, 1.0, %v3974_v0  ;;  %v2286_v61 = vsel %vm1826_vm4, 1.0, %v3974_v0 }
  0x4b   :  { %500 = vmatpush1.msra.mxu1 %v2868_v28  ;;  %679 = vmatpush1.msra.mxu0 %v2810_v8  ;;  %4095 = vst [vmem:[#allocation37_spill] sm:$0xff] %v2944_v50  ;;  %4096 = vst [vmem:[#allocation38_spill] sm:$0xff] %v2951_v52  ;;  %v3000_v3 = vld [vmem:[#allocation11 + $0x150] sm:$0xff]  ;;  %v3004_v4 = vld [vmem:[#allocation11 + $0x138] sm:$0xff] }
  0x4c   :  { %2255 = vmatmul.mubr.msk.f32.gmra.mxu1 %vm130_vm0, %v2872_v30  ;;  %501 = vmatprep.subr.mxu1 %v2874_v31  ;;  %v3009_v5 = vld [vmem:[#allocation11 + $0x130] sm:$0xff]  ;;  %v3013_v6 = vld [vmem:[#allocation11 + $0x118] sm:$0xff] }
  0x4d   :  { %502 = vmatpush1.msra.mxu1 %v2877_v32  ;;  %362 = vmatprep.mubr.f32.mxu1 %v3974_v0  ;;  %v3025_v20 = vld [vmem:[#allocation11 + $0xf0] sm:$0xff]  ;;  %v3029_v22 = vld [vmem:[#allocation11 + $0xd8] sm:$0xff] }
  0x4e   :  { %503 = vmatprep.subr.mxu1 %v2880_v33  ;;  %225 = vmatprep.mubr.f32.mxu0 %v3974_v0  ;;  %v3034_v27 = vld [vmem:[#allocation11 + $0xd0] sm:$0xff]  ;;  %v3038_v29 = vld [vmem:[#allocation11 + $0xb8] sm:$0xff] }
  0x4f   :  { %504 = vmatpush1.msra.mxu1 %v2885_v34  ;;  %662 = vperm.xlu0 %2373, %v2262_v45   ;;  %v3042_v45 = vld [vmem:[#allocation11 + $0xb0] sm:$0xff] }
  0x50   :  { %2256 = vmatmul.mubr.msk.f32.gmra.mxu1 %vm130_vm0, %v2889_v35  ;;  %505 = vmatprep.subr.mxu1 %v2891_v36  ;;  %4098 = vst [vmem:[#allocation40_spill] sm:$0xff] %v3042_v45  ;;  %v3067_v42 = vld [vmem:[#allocation11 + $0x50] sm:$0xff] }
  0x51   :  { %506 = vmatpush1.msra.mxu1 %v2894_v37  ;;  %368 = vmatprep.mubr.f32.mxu1 %v3974_v0  ;;  %4104 = vst [vmem:[#allocation46_spill] sm:$0xff] %v3067_v42 }
  0x52   :  { %507 = vmatprep.subr.mxu1 %v2899_v38  ;;  %680 = vmatprep.subr.mxu0 %v2812_v9 }
  0x53   :  { %508 = vmatpush1.msra.mxu1 %v2905_v39  ;;  %856 = vperm.xlu0 %2373, %v2266_v51   ;;  %v3050_v51 = vld [vmem:[#allocation11 + $0x90] sm:$0xff] }
  0x54   :  { %2257 = vmatmul.mubr.msk.f32.gmra.mxu1 %vm130_vm0, %v2909_v40  ;;  %509 = vmatprep.subr.mxu1 %v2911_v41  ;;  %4100 = vst [vmem:[#allocation42_spill] sm:$0xff] %v3050_v51 }
  0x55   :  { %510 = vmatpush1.msra.mxu1 %v2919_v43  ;;  %374 = vmatprep.mubr.f32.mxu1 %v3974_v0 }
  0x56   :  { %511 = vmatprep.subr.mxu1 %v2924_v44  ;;  %2244 = vmatmul.mubr.msk.f32.gmra.mxu0 %vm130_vm0, %v2821_v11  ;;  %v3017_v11 = vld [vmem:[#allocation11 + $0x110] sm:$0xff] }
  0x57   :  { %512 = vmatpush1.msra.mxu1 %v2931_v46  ;;  %1441 = vperm.xlu0 %2373, %v2278_v56   ;;  %v3054_v56 = vld [vmem:[#allocation11 + $0x78] sm:$0xff] }
  0x58   :  { %2258 = vmatmul.mubr.msk.f32.gmra.mxu1 %vm130_vm0, %v2936_v47  ;;  %513 = vmatprep.subr.mxu1 %v2938_v48  ;;  %4101 = vst [vmem:[#allocation43_spill] sm:$0xff] %v3054_v56 }
  0x59   :  { %514 = vmatpush1.msra.mxu1 %v2941_v49  ;;  %549 = vmatprep.mubr.f32.mxu1 %v3974_v0 }
  0x5a   :  { %515 = vmatprep.subr.mxu1 %v2944_v50  ;;  %681 = vmatpush1.msra.mxu0 %v2817_v10 }
  0x5b   :  { %516 = vmatpush1.msra.mxu1 %v2951_v52  ;;  %682 = vmatprep.subr.mxu0 %v2823_v12 }
  0x5c   :  { %550 = vmatmul.mubr.f32.vlgmr.msra.gmra.mxu1 %v3974_v0  ;;  %556 = vmatprep.subr.mxu1 %v2956_v53 }
  0x5d   :  { %557 = vmatpush1.msra.mxu1 %v2959_v54  ;;  %620 = vmatprep.mubr.f32.mxu1 %v3974_v0 }
  0x5e   :  { %558 = vmatprep.subr.mxu1 %v2962_v55  ;;  %683 = vmatpush1.msra.mxu0 %v2826_v13 }
  0x5f   :  { %559 = vmatpush1.msra.mxu1 %v2969_v57  ;;  %1831 = vperm.xlu0 %2373, %v2286_v61   ;;  %v3059_v61 = vld [vmem:[#allocation11 + $0x70] sm:$0xff] }
  0x60   :  { %560 = vmatprep.subr.mxu1 %v2973_v58  ;;  %231 = vmatprep.mubr.f32.mxu0 %v3974_v0  ;;  %4102 = vst [vmem:[#allocation44_spill] sm:$0xff] %v3059_v61 }
  0x61   :  { %561 = vmatpush1.msra.mxu1 %v2977_v59  ;;  %684 = vmatprep.subr.mxu0 %v2829_v14 }
  0x62   :  { %562 = vmatprep.subr.mxu1 %v2980_v60  ;;  %2245 = vmatmul.mubr.msk.f32.gmra.mxu0 %vm130_vm0, %v2838_v16  ;;  %v3021_v16 = vld [vmem:[#allocation11 + $0xf8] sm:$0xff] }
  0x63   :  { %563 = vmatpush1.msra.mxu1 %v2985_v62  ;;  %685 = vmatpush1.msra.mxu0 %v2834_v15 }
  0x64   :  { %564 = vmatprep.subr.mxu1 %v2989_v63  ;;  %686 = vmatprep.subr.mxu0 %v2840_v17 }
  0x65   :  { %565 = vmatpush1.msra.mxu1 %v2993_v1  ;;  %687 = vmatpush1.msra.mxu0 %v2843_v18 }
  0x66   :  { %566 = vmatprep.subr.mxu1 %v2996_v2  ;;  %237 = vmatprep.mubr.f32.mxu0 %v3974_v0 }
  0x67   :  { %567 = vmatpush1.msra.mxu1 %v3000_v3  ;;  %688 = vmatprep.subr.mxu0 %v2846_v19 }
  0x68   :  { %568 = vmatprep.subr.mxu1 %v3004_v4  ;;  %2246 = vmatmul.mubr.msk.f32.gmra.mxu0 %vm130_vm0, %v2855_v23  ;;  %v3046_v23 = vld [vmem:[#allocation11 + $0x98] sm:$0xff] }
  0x69   :  { %569 = vmatpush1.msra.mxu1 %v3009_v5  ;;  %689 = vmatpush1.msra.mxu0 %v2851_v21  ;;  %4099 = vst [vmem:[#allocation41_spill] sm:$0xff] %v3046_v23 }
  0x6a   :  { %570 = vmatprep.subr.mxu1 %v3013_v6  ;;  %690 = vmatprep.subr.mxu0 %v2857_v24 }
  0x6b   :  { %571 = vmatpush1.msra.mxu1 %v3017_v11  ;;  %691 = vmatpush1.msra.mxu0 %v2860_v25 }
  0x6c   :  { %572 = vmatprep.subr.mxu1 %v3021_v16  ;;  %243 = vmatprep.mubr.f32.mxu0 %v3974_v0  ;;  %v3063_v0 = vld [vmem:[#allocation11 + $0x58] sm:$0xff] }
  0x6d   :  { %573 = vmatpush1.msra.mxu1 %v3025_v20  ;;  %692 = vmatprep.subr.mxu0 %v2863_v26  ;;  %4103 = vst [vmem:[#allocation45_spill] sm:$0xff] %v3063_v0  ;;  %v4106_v26 = vmov 0.0  }
  0x6e   :  { %574 = vmatprep.subr.mxu1 %v3029_v22  ;;  %2247 = vmatmul.mubr.msk.f32.gmra.mxu0 %vm130_vm0, %v2872_v30  ;;  %v3071_v30 = vld [vmem:[#allocation11 + $0x38] sm:$0xff] }
  0x6f   :  { %575 = vmatpush1.msra.mxu1 %v3034_v27  ;;  %693 = vmatpush1.msra.mxu0 %v2868_v28  ;;  %4105 = vst [vmem:[#allocation47_spill] sm:$0xff] %v3071_v30  ;;  %v3075_v28 = vld [vmem:[#allocation11 + $0x30] sm:$0xff] }
  0x70   :  { %576 = vmatprep.subr.mxu1 %v3038_v29  ;;  %694 = vmatprep.subr.mxu0 %v2874_v31  ;;  %4107 = vst [vmem:[#allocation48_spill] sm:$0xff] %v3075_v28  ;;  %v3079_v31 = vld [vmem:[#allocation11 + $0x18] sm:$0xff] }
  0x71   :  { %577 = vmatpush1.msra.mxu1 %v3042_v45  ;;  %695 = vmatpush1.msra.mxu0 %v2877_v32  ;;  %4108 = vst [vmem:[#allocation49_spill] sm:$0xff] %v3079_v31  ;;  %v3084_v32 = vld [vmem:[#allocation11 + $0x10] sm:$0xff] }
  0x72   :  { %578 = vmatprep.subr.mxu1 %v3046_v23  ;;  %249 = vmatprep.mubr.f32.mxu0 %v4106_v26  ;;  %4109 = vst [vmem:[#allocation50_spill] sm:$0xff] %v3084_v32 }
  0x73   :  { %579 = vmatpush1.msra.mxu1 %v3050_v51  ;;  %696 = vmatprep.subr.mxu0 %v2880_v33 }
  0x74   :  { %580 = vmatprep.subr.mxu1 %v3054_v56  ;;  %2248 = vmatmul.mubr.msk.f32.gmra.mxu0 %vm130_vm0, %v2889_v35  ;;  %v110_v35 = vlaneseq }
  0x75   :  { %581 = vmatpush1.msra.mxu1 %v3059_v61  ;;  %697 = vmatpush1.msra.mxu0 %v2885_v34 }
  0x76   :  { %582 = vmatprep.subr.mxu1 %v3063_v0  ;;  %698 = vmatprep.subr.mxu0 %v2891_v36 }
  0x77   :  { %583 = vmatpush1.msra.mxu1 %v3067_v42  ;;  %699 = vmatpush1.msra.mxu0 %v2894_v37 }
  0x78   :  { %584 = vmatprep.subr.mxu1 %v3071_v30  ;;  %255 = vmatprep.mubr.f32.mxu0 %v4106_v26 }
  0x79   :  { %585 = vmatpush1.msra.mxu1 %v3075_v28  ;;  %700 = vmatprep.subr.mxu0 %v2899_v38 }
  0x7a   :  { %586 = vmatprep.subr.mxu1 %v3079_v31  ;;  %2249 = vmatmul.mubr.msk.f32.gmra.mxu0 %vm130_vm0, %v2909_v40  ;;  %v111_v40 = vshrl.u32 %v110_v35, 7 }
  0x7b   :  { %587 = vmatpush1.msra.mxu1 %v3084_v32  ;;  %701 = vmatpush1.msra.mxu0 %v2905_v39 }
  0x7c   :  { %621 = vmatmul.mubr.f32.vlgmr.msra.gmra.mxu1 %v4106_v26  ;;  %749 = vmatprep.subr.mxu1 %v2956_v53 }
  0x7d   :  { %750 = vmatpush1.msra.mxu1 %v2959_v54  ;;  %702 = vmatprep.subr.mxu0 %v2911_v41 }
  0x7e   :  { %751 = vmatprep.subr.mxu1 %v2962_v55  ;;  %703 = vmatpush1.msra.mxu0 %v2919_v43 }
  0x7f   :  { %752 = vmatpush1.msra.mxu1 %v2969_v57  ;;  %261 = vmatprep.mubr.f32.mxu0 %v4106_v26 }
  0x80   :  { %753 = vmatprep.subr.mxu1 %v2973_v58  ;;  %704 = vmatprep.subr.mxu0 %v2924_v44 }
  0x81   :  { %754 = vmatpush1.msra.mxu1 %v2977_v59  ;;  %2250 = vmatmul.mubr.msk.f32.gmra.mxu0 %vm130_vm0, %v2936_v47  ;;  %v120_v47 = vsub.s32 2, %v111_v40 }
  0x82   :  { %755 = vmatprep.subr.mxu1 %v2980_v60  ;;  %705 = vmatpush1.msra.mxu0 %v2931_v46 }
  0x83   :  { %756 = vmatpush1.msra.mxu1 %v2985_v62  ;;  %706 = vmatprep.subr.mxu0 %v2938_v48 }
  0x84   :  { %757 = vmatprep.subr.mxu1 %v2989_v63  ;;  %707 = vmatpush1.msra.mxu0 %v2941_v49 }
  0x85   :  { %758 = vmatpush1.msra.mxu1 %v2993_v1  ;;  %708 = vmatprep.subr.mxu0 %v2944_v50 }
  0x86   :  { %759 = vmatprep.subr.mxu1 %v2996_v2  ;;  %709 = vmatpush1.msra.mxu0 %v2951_v52  ;;  %v124_v52 = vsub.s32 3, %v111_v40 }
  0x87   :  { %760 = vmatpush1.msra.mxu1 %v3000_v3  ;;  %742 = vmatprep.mubr.f32.mxu0 %v4106_v26 }
  0x88   :  { %761 = vmatprep.subr.mxu1 %v3004_v4  ;;  %813 = vmatprep.mubr.f32.mxu1 %v4106_v26 }
  0x89   :  { %762 = vmatpush1.msra.mxu1 %v3009_v5  ;;  %873 = vmatprep.subr.mxu0 %v2808_v7  ;;  %v108_v7 = vld [vmem:[%s3967_s3] sm:$0xf] }
  0x8a   :  { %763 = vmatprep.subr.mxu1 %v3013_v6  ;;  %v3152_v49 = vrot.slane %v108_v7, %v120_v47 }
  0x8b   :  { %764 = vmatpush1.msra.mxu1 %v3017_v11 }
  0x8c   :  { %765 = vmatprep.subr.mxu1 %v3021_v16 }
  0x8d   :  { %766 = vmatpush1.msra.mxu1 %v3025_v20 }
  0x8e   :  { %767 = vmatprep.subr.mxu1 %v3029_v22 }
  0x8f   :  { %768 = vmatpush1.msra.mxu1 %v3034_v27 }
  0x90   :  { %769 = vmatprep.subr.mxu1 %v3038_v29 }
  0x91   :  { %770 = vmatpush1.msra.mxu1 %v3042_v45 }
  0x92   :  { %771 = vmatprep.subr.mxu1 %v3046_v23 }
  0x93   :  { %772 = vmatpush1.msra.mxu1 %v3050_v51 }
  0x94   :  { %773 = vmatprep.subr.mxu1 %v3054_v56 }
  0x95   :  { %774 = vmatpush1.msra.mxu1 %v3059_v61 }
  0x96   :  { %775 = vmatprep.subr.mxu1 %v3063_v0 }
  0x97   :  { %776 = vmatpush1.msra.mxu1 %v3067_v42 }
  0x98   :  { %777 = vmatprep.subr.mxu1 %v3071_v30 }
  0x99   :  { %778 = vmatpush1.msra.mxu1 %v3075_v28 }
  0x9a   :  { %779 = vmatprep.subr.mxu1 %v3079_v31  ;;  %v3154_v31 = vrot.slane %v108_v7, %v124_v52 }
  0x9b   :  { %780 = vmatpush1.msra.mxu1 %v3084_v32 }
  0x9c   :  { %944 = vmatprep.subr.mxu1 %v2956_v53 }
  0xfc   :  { %v3148_v26 = vpop.f32.mrf.mxu1 }
  0xfe   :  { %v3150_v50 = vpop.f32.mrf.mxu1 }
 0x100   :  { %v340_v28 = vpop.f32.mrf.mxu1 }
 0x101   :  { %v3157_v32 = vadd.f32 %v340_v28, %v3152_v49 }
 0x102   :  { %v342_v53 = vpop.f32.mrf.mxu1 }
 0x103   :  { %4110 = vst [vmem:[#allocation51_spill] sm:$0xff] %v3157_v32  ;;  %v3160_v35 = vadd.f32 %v342_v53, %v3154_v31 }
 0x104   :  { %v346_v30 = vpop.f32.mrf.mxu1 }
 0x105   :  { %4111 = vst [vmem:[#allocation52_spill] sm:$0xff] %v3160_v35  ;;  %v3163_v48 = vadd.f32 %v346_v30, %v3152_v49 }
 0x106   :  { %v348_v42 = vpop.f32.mrf.mxu1 }
 0x107   :  { %4112 = vst [vmem:[#allocation53_spill] sm:$0xff] %v3163_v48  ;;  %v3166_v46 = vadd.f32 %v348_v42, %v3154_v31 }
 0x108   :  { %v352_v47 = vpop.f32.mrf.mxu1 }
 0x109   :  { %4113 = vst [vmem:[#allocation54_spill] sm:$0xff] %v3166_v46  ;;  %v3169_v0 = vadd.f32 %v352_v47, %v3152_v49 }
 0x10a   :  { %v354_v52 = vpop.f32.mrf.mxu1 }
 0x10b   :  { %4114 = vst [vmem:[#allocation55_spill] sm:$0xff] %v3169_v0  ;;  %v3172_v28 = vadd.f32 %v354_v52, %v3154_v31 }
 0x10c   :  { %v358_v32 = vpop.f32.mrf.mxu1 }
 0x10d   :  { %4115 = vst [vmem:[#allocation56_spill] sm:$0xff] %v3172_v28  ;;  %v3175_v53 = vadd.f32 %v358_v32, %v3152_v49  ;;  %v116_v28 = vsub.s32 1, %v111_v40  ;;  %v112_v32 = vsub.s32 0, %v111_v40 }
 0x10e   :  { %v360_v35 = vpop.f32.mrf.mxu1 }
 0x10f   :  { %4116 = vst [vmem:[#allocation57_spill] sm:$0xff] %v3175_v53  ;;  %v3178_v30 = vadd.f32 %v360_v35, %v3154_v31  ;;  %v221_v53 = vpop.f32.mrf.mxu0 }
 0x110   :  { %v364_v48 = vpop.f32.mrf.mxu1 }
 0x111   :  { %4117 = vst [vmem:[#allocation58_spill] sm:$0xff] %v3178_v30  ;;  %v3181_v42 = vadd.f32 %v364_v48, %v3152_v49  ;;  %v3195_v48 = vrot.slane %v108_v7, %v116_v28 }
 0x112   :  { %v366_v46 = vpop.f32.mrf.mxu1 }
 0x113   :  { %4118 = vst [vmem:[#allocation59_spill] sm:$0xff] %v3181_v42  ;;  %v3184_v47 = vadd.f32 %v366_v46, %v3154_v31  ;;  %4123 = vst [vmem:[#allocation64_spill] sm:$0xff] %v3195_v48  ;;  %v3197_v42 = vrot.slane %v108_v7, %v112_v32 }
 0x114   :  { %v370_v0 = vpop.f32.mrf.mxu1 }
 0x115   :  { %4119 = vst [vmem:[#allocation60_spill] sm:$0xff] %v3184_v47  ;;  %v3187_v52 = vadd.f32 %v370_v0, %v3152_v49  ;;  %v223_v47 = vpop.f32.mrf.mxu0 }
 0x116   :  { %v372_v44 = vpop.f32.mrf.mxu1  ;;  %v224_v40 = vadd.f32 %v223_v47, %v3195_v48 }
 0x117   :  { %4120 = vst [vmem:[#allocation61_spill] sm:$0xff] %v3187_v52  ;;  %v3190_v61 = vadd.f32 %v372_v44, %v3154_v31  ;;  %v3203_v43 = vpop.f32.mrf.mxu0  ;;  %v222_v44 = vadd.f32 %v221_v53, %v3197_v42 }
 0x118   :  { %v376_v35 = vpop.f32.mrf.mxu1 }
 0x119   :  { %4121 = vst [vmem:[#allocation62_spill] sm:$0xff] %v3190_v61  ;;  %v3193_v30 = vadd.f32 %v376_v35, %v3152_v49  ;;  %v3206_v35 = vpop.f32.mrf.mxu0 }
 0x11a   :  { %v378_v46 = vpop.f32.mrf.mxu1 }
 0x11b   :  { %4122 = vst [vmem:[#allocation63_spill] sm:$0xff] %v3193_v30  ;;  %v3200_v0 = vadd.f32 %v378_v46, %v3154_v31 }
 0x11c   :  { %v551_v52 = vpop.f32.mrf.mxu1 }
 0x11d   :  { %4124 = vst [vmem:[#allocation65_spill] sm:$0xff] %v3200_v0  ;;  %v627_v28 = vadd.f32 %v551_v52, %v222_v44 }
 0x11e   :  { %v553_v61 = vpop.f32.mrf.mxu1 }
 0x11f   :  { %v628_v56 = vadd.f32 %v553_v61, %v224_v40  ;;  %v2259_v32 = vmul.f32 -1.442695, %v627_v28 }
 0x121   :  { %v2260_v30 = vmul.f32 -1.442695, %v628_v56 }
 0x122   :  { %v233_v7 = vpop.f32.mrf.mxu0 }
 0x123   :  { %v3209_v41 = vadd.f32 %v233_v7, %v3197_v42  ;;  %2375 = vpow2.f32 %v2260_v30 }
 0x124   :  { %v235_v46 = vpop.f32.mrf.mxu0  ;;  %2377 = vpow2.f32 %v2259_v32 }
 0x125   :  { %4125 = vst [vmem:[#allocation66_spill] sm:$0xff] %v3209_v41  ;;  %v3212_v0 = vadd.f32 %v235_v46, %v3195_v48 }
 0x127   :  { %4126 = vst [vmem:[#allocation67_spill] sm:$0xff] %v3212_v0 }
 0x128   :  { %v239_v47 = vpop.f32.mrf.mxu0 }
 0x129   :  { %v3215_v53 = vadd.f32 %v239_v47, %v3197_v42 }
 0x12a   :  { %v241_v61 = vpop.f32.mrf.mxu0 }
 0x12b   :  { %4127 = vst [vmem:[#allocation68_spill] sm:$0xff] %v3215_v53  ;;  %v3218_v40 = vadd.f32 %v241_v61, %v3195_v48 }
 0x12d   :  { %4128 = vst [vmem:[#allocation69_spill] sm:$0xff] %v3218_v40 }
 0x12e   :  { %v245_v56 = vpop.f32.mrf.mxu0 }
 0x12f   :  { %v3221_v52 = vadd.f32 %v245_v56, %v3197_v42  ;;  %v335_v56 = vadd.f32 %v3148_v26, %v3152_v49 }
 0x130   :  { %v247_v44 = vpop.f32.mrf.mxu0  ;;  %v2376_v7 = vpop.eup %2375 }
 0x131   :  { %4129 = vst [vmem:[#allocation70_spill] sm:$0xff] %v3221_v52  ;;  %v3224_v28 = vadd.f32 %v247_v44, %v3195_v48  ;;  %v2378_v46 = vpop.eup %2377  ;;  %v640_v47 = vadd.f32 1.0, %v2376_v7  ;;  %v337_v44 = vadd.f32 %v3150_v50, %v3154_v31 }
 0x132   :  { %v634_v0 = vadd.f32 1.0, %v2378_v46 }
 0x133   :  { %4130 = vst [vmem:[#allocation71_spill] sm:$0xff] %v3224_v28  ;;  %2379 = vrcp.f32 %v640_v47 }
 0x134   :  { %v251_v30 = vpop.f32.mrf.mxu0  ;;  %2381 = vrcp.f32 %v634_v0 }
 0x135   :  { %v3227_v32 = vadd.f32 %v251_v30, %v3197_v42 }
 0x136   :  { %v253_v53 = vpop.f32.mrf.mxu0 }
 0x137   :  { %4131 = vst [vmem:[#allocation72_spill] sm:$0xff] %v3227_v32  ;;  %v3230_v61 = vadd.f32 %v253_v53, %v3195_v48  ;;  %v4151_v32 = vld [vmem:[#allocation36_spill] sm:$0xff] }
 0x139   :  { %4132 = vst [vmem:[#allocation73_spill] sm:$0xff] %v3230_v61 }
 0x13a   :  { %v257_v41 = vpop.f32.mrf.mxu0 }
 0x13b   :  { %v3237_v7 = vadd.f32 %v257_v41, %v3197_v42 }
 0x13c   :  { %v622_v52 = vpop.f32.mrf.mxu1  ;;  %v259_v46 = vpop.f32.mrf.mxu0 }
 0x13d   :  { %v629_v28 = vadd.f32 %v622_v52, %v335_v56  ;;  %4133 = vst [vmem:[#allocation74_spill] sm:$0xff] %v3237_v7  ;;  %v3240_v61 = vadd.f32 %v259_v46, %v3195_v48  ;;  %v3248_v46 = vpop.permute.xlu0 %662  ;;  %v4150_v7 = vld [vmem:[#allocation47_spill] sm:$0xff] }
 0x13e   :  { %v624_v40 = vpop.f32.mrf.mxu1 }
 0x13f   :  { %2383 = vtanh.f32 %v629_v28  ;;  %v630_v30 = vadd.f32 %v624_v40, %v337_v44  ;;  %4134 = vst [vmem:[#allocation75_spill] sm:$0xff] %v3240_v61  ;;  %v4149_v61 = vld [vmem:[#allocation35_spill] sm:$0xff] }
 0x140   :  { %v2380_v31 = vpop.eup %2379 }
 0x141   :  { %v2261_v53 = vmul.f32 -1.442695, %v630_v30  ;;  %v263_v26 = vpop.f32.mrf.mxu0  ;;  %v2382_v50 = vpop.eup %2381  ;;  %v650_v52 = vmul.f32 0.0, %v2380_v31  ;;  %v4138_v31 = vld [vmem:[#allocation25_spill] sm:$0xff] }
 0x142   :  { %v3243_v49 = vadd.f32 %v263_v26, %v3197_v42  ;;  %v4137_v26 = vld [vmem:[#allocation24_spill] sm:$0xff] }
 0x143   :  { %2385 = vpow2.f32 %v2261_v53 }
 0x144   :  { %4135 = vst [vmem:[#allocation76_spill] sm:$0xff] %v3243_v49  ;;  %v4148_v49 = vld [vmem:[#allocation46_spill] sm:$0xff] }
 0x14c   :  { %v2384_v0 = vpop.eup %2383 }
 0x14d   :  { %v651_v47 = vmul.f32 %v2384_v0, %v2382_v50  ;;  %v4139_v50 = vld [vmem:[#allocation26_spill] sm:$0xff]  ;;  %v4140_v0 = vld [vmem:[#allocation27_spill] sm:$0xff] }
 0x14f   :  { %v3245_v28 = vadd.f32 %v651_v47, %v650_v52  ;;  %v4141_v52 = vld [vmem:[#allocation30_spill] sm:$0xff]  ;;  %v4142_v47 = vld [vmem:[#allocation43_spill] sm:$0xff] }
 0x150   :  { %v2386_v40 = vpop.eup %2385 }
 0x151   :  { %v647_v41 = vadd.f32 1.0, %v2386_v40  ;;  %2387 = vtanh.f32 %v3245_v28  ;;  %v4143_v40 = vld [vmem:[#allocation32_spill] sm:$0xff] }
 0x153   :  { %2389 = vrcp.f32 %v647_v41  ;;  %v4144_v41 = vld [vmem:[#allocation44_spill] sm:$0xff] }
 0x15e   :  { %v2388_v56 = vpop.eup %2387 }
 0x160   :  { %v2390_v44 = vpop.eup %2389 }
 0x161   :  { %v654_v30 = vmul.f32 %v2390_v44, %v2388_v56  ;;  %v4145_v56 = vld [vmem:[#allocation33_spill] sm:$0xff] }
 0x162   :  { %v4146_v44 = vld [vmem:[#allocation45_spill] sm:$0xff] }
 0x163   :  { %v3251_v53 = vmul.f32 %v3248_v46, %v654_v30  ;;  %v4147_v30 = vld [vmem:[#allocation34_spill] sm:$0xff] }
 0x165   :  { %4136 = vst [vmem:[#allocation77_spill] sm:$0xff] %v3251_v53  ;;  %743 = vmatmul.mubr.f32.vlgmr.msra.gmra.mxu0 %v3251_v53  ;;  %814 = vmatmul.mubr.f32.vlgmr.msra.gmra.mxu1 %v3251_v53 }
 0x166   :  { %874 = vmatpush1.msra.mxu0 %v2810_v8  ;;  %945 = vmatpush1.msra.mxu1 %v2959_v54 }
 0x167   :  { %875 = vmatprep.subr.mxu0 %v2812_v9  ;;  %946 = vmatprep.subr.mxu1 %v2962_v55 }
 0x168   :  { %876 = vmatpush1.msra.mxu0 %v2817_v10  ;;  %947 = vmatpush1.msra.mxu1 %v2969_v57 }
 0x169   :  { %877 = vmatprep.subr.mxu0 %v2823_v12  ;;  %948 = vmatprep.subr.mxu1 %v2973_v58 }
 0x16a   :  { %878 = vmatpush1.msra.mxu0 %v2826_v13  ;;  %949 = vmatpush1.msra.mxu1 %v2977_v59 }
 0x16b   :  { %879 = vmatprep.subr.mxu0 %v2829_v14  ;;  %950 = vmatprep.subr.mxu1 %v2980_v60 }
 0x16c   :  { %880 = vmatpush1.msra.mxu0 %v2834_v15  ;;  %951 = vmatpush1.msra.mxu1 %v2985_v62 }
 0x16d   :  { %881 = vmatprep.subr.mxu0 %v2840_v17  ;;  %952 = vmatprep.subr.mxu1 %v2989_v63 }
 0x16e   :  { %882 = vmatpush1.msra.mxu0 %v2843_v18  ;;  %953 = vmatpush1.msra.mxu1 %v2993_v1 }
 0x16f   :  { %883 = vmatprep.subr.mxu0 %v2846_v19  ;;  %954 = vmatprep.subr.mxu1 %v2996_v2 }
 0x170   :  { %884 = vmatpush1.msra.mxu0 %v2851_v21  ;;  %955 = vmatpush1.msra.mxu1 %v3000_v3 }
 0x171   :  { %885 = vmatprep.subr.mxu0 %v2857_v24  ;;  %956 = vmatprep.subr.mxu1 %v3004_v4 }
 0x172   :  { %886 = vmatpush1.msra.mxu0 %v2860_v25  ;;  %957 = vmatpush1.msra.mxu1 %v3009_v5 }
 0x173   :  { %887 = vmatprep.subr.mxu0 %v4137_v26  ;;  %958 = vmatprep.subr.mxu1 %v3013_v6 }
 0x174   :  { %888 = vmatpush1.msra.mxu0 %v4138_v31  ;;  %959 = vmatpush1.msra.mxu1 %v3017_v11 }
 0x175   :  { %889 = vmatprep.subr.mxu0 %v4139_v50  ;;  %960 = vmatprep.subr.mxu1 %v3021_v16 }
 0x176   :  { %890 = vmatpush1.msra.mxu0 %v4140_v0  ;;  %961 = vmatpush1.msra.mxu1 %v3025_v20 }
 0x177   :  { %891 = vmatprep.subr.mxu0 %v2880_v33  ;;  %962 = vmatprep.subr.mxu1 %v3029_v22 }
 0x178   :  { %892 = vmatpush1.msra.mxu0 %v2885_v34  ;;  %963 = vmatpush1.msra.mxu1 %v3034_v27 }
 0x179   :  { %893 = vmatprep.subr.mxu0 %v2891_v36  ;;  %964 = vmatprep.subr.mxu1 %v3038_v29 }
 0x17a   :  { %894 = vmatpush1.msra.mxu0 %v2894_v37  ;;  %965 = vmatpush1.msra.mxu1 %v3042_v45 }
 0x17b   :  { %895 = vmatprep.subr.mxu0 %v2899_v38  ;;  %966 = vmatprep.subr.mxu1 %v3046_v23  ;;  %v4163_v23 = vld [vmem:[#allocation51_spill] sm:$0xff] }
 0x17c   :  { %896 = vmatpush1.msra.mxu0 %v2905_v39  ;;  %967 = vmatpush1.msra.mxu1 %v3050_v51 }
 0x17d   :  { %897 = vmatprep.subr.mxu0 %v4141_v52  ;;  %968 = vmatprep.subr.mxu1 %v4142_v47  ;;  %v4152_v52 = vld [vmem:[#allocation48_spill] sm:$0xff]  ;;  %v4153_v47 = vld [vmem:[#allocation37_spill] sm:$0xff] }
 0x17e   :  { %898 = vmatpush1.msra.mxu0 %v4143_v40  ;;  %969 = vmatpush1.msra.mxu1 %v4144_v41  ;;  %v4154_v40 = vld [vmem:[#allocation49_spill] sm:$0xff]  ;;  %v4155_v41 = vld [vmem:[#allocation38_spill] sm:$0xff] }
 0x17f   :  { %899 = vmatprep.subr.mxu0 %v4145_v56  ;;  %970 = vmatprep.subr.mxu1 %v4146_v44  ;;  %v4156_v56 = vmov 0.0   ;;  %v4157_v44 = vld [vmem:[#allocation50_spill] sm:$0xff] }
 0x180   :  { %900 = vmatpush1.msra.mxu0 %v4147_v30  ;;  %971 = vmatpush1.msra.mxu1 %v4148_v49  ;;  %v4158_v49 = vld [vmem:[#allocation23_spill] sm:$0xff] }
 0x181   :  { %901 = vmatprep.subr.mxu0 %v4149_v61  ;;  %972 = vmatprep.subr.mxu1 %v4150_v7  ;;  %v4159_v61 = vld [vmem:[#allocation39_spill] sm:$0xff] }
 0x182   :  { %902 = vmatpush1.msra.mxu0 %v4151_v32  ;;  %973 = vmatpush1.msra.mxu1 %v4152_v52  ;;  %v4160_v7 = vld [vmem:[#allocation31_spill] sm:$0xff] }
 0x183   :  { %903 = vmatprep.subr.mxu0 %v4153_v47  ;;  %974 = vmatprep.subr.mxu1 %v4154_v40  ;;  %vm1046_vm5 = vcmp.gt.f32.partialorder %v4160_v7, 2.0  ;;  %vm1241_vm6 = vcmp.gt.f32.partialorder %v4160_v7, 3.0  ;;  %vm1631_vm7 = vcmp.gt.f32.partialorder %v4160_v7, 5.0  ;;  %vm2021_vm8 = vcmp.gt.f32.partialorder %v4160_v7, 7.0 }
 0x184   :  { %904 = vmatpush1.msra.mxu0 %v4155_v41  ;;  %937 = vmatprep.mubr.f32.mxu0 %v4156_v56  ;;  %v2270_v47 = vsel %vm1046_vm5, 1.0, %v4156_v56  ;;  %v2274_v40 = vsel %vm1241_vm6, 1.0, %v4156_v56  ;;  %v228_v41 = vadd.f32 %v3203_v43, %v3197_v42 }
 0x185   :  { %975 = vmatpush1.msra.mxu1 %v4157_v44  ;;  %1008 = vmatprep.mubr.f32.mxu1 %v4156_v56  ;;  %v2282_v44 = vsel %vm1631_vm7, 1.0, %v4156_v56 }
 0x186   :  { %1068 = vmatprep.subr.mxu0 %v4158_v49  ;;  %1139 = vmatprep.subr.mxu1 %v4159_v61  ;;  %v2290_v49 = vsel %vm2021_vm8, 1.0, %v4156_v56  ;;  %v3329_v61 = vpop.f32.mrf.mxu0  ;;  %v4162_v56 = vld [vmem:[#allocation52_spill] sm:$0xff] }
 0x187   :  { %1051 = vperm.xlu1 %2374, %v2270_v47   ;;  %4161 = vst [vmem:[#allocation24_spill] sm:$0xff] %v3329_v61  ;;  %v230_v47 = vadd.f32 %v3206_v35, %v3195_v48  ;;  %v3677_v48 = vld [vmem:[#allocation11 + $0xb0] sm:$0xff] }
 0x18b   :  { %1246 = vperm.xlu1 %2374, %v2274_v40  }
 0x18f   :  { %1636 = vperm.xlu1 %2374, %v2282_v44  }
 0x193   :  { %2026 = vperm.xlu1 %2374, %v2290_v49  }
 0x225   :  { %v744_v52 = vpop.f32.mrf.mxu0  ;;  %v815_v39 = vpop.f32.mrf.mxu1 }
 0x226   :  { %v820_v32 = vadd.f32 %v744_v52, %v228_v41  ;;  %v822_v61 = vadd.f32 %v815_v39, %v4163_v23  ;;  %v3339_v23 = vpop.permute.xlu0 %856 }
 0x227   :  { %v746_v30 = vpop.f32.mrf.mxu0  ;;  %v817_v44 = vpop.f32.mrf.mxu1  ;;  %4164 = vst [vmem:[#allocation25_spill] sm:$0xff] %v3339_v23 }
 0x228   :  { %v2263_v40 = vmul.f32 -1.442695, %v820_v32  ;;  %v821_v51 = vadd.f32 %v746_v30, %v230_v47  ;;  %v823_v49 = vadd.f32 %v817_v44, %v4162_v56 }
 0x22a   :  { %2391 = vpow2.f32 %v2263_v40  ;;  %v2264_v7 = vmul.f32 -1.442695, %v821_v51  ;;  %v2265_v38 = vmul.f32 -1.442695, %v823_v49  ;;  %v671_v51 = vmul.f32 %v3248_v46, %v3245_v28 }
 0x22c   :  { %2393 = vpow2.f32 %v2264_v7 }
 0x22d   :  { %2395 = vtanh.f32 %v822_v61 }
 0x22e   :  { %2397 = vpow2.f32 %v2265_v38 }
 0x237   :  { %v2392_v45 = vpop.eup %2391 }
 0x238   :  { %v827_v43 = vadd.f32 1.0, %v2392_v45 }
 0x239   :  { %v2394_v42 = vpop.eup %2393 }
 0x23a   :  { %2399 = vrcp.f32 %v827_v43  ;;  %v833_v35 = vadd.f32 1.0, %v2394_v42  ;;  %v2396_v32 = vpop.eup %2395  ;;  %v4187_v42 = vld [vmem:[#allocation50_spill] sm:$0xff] }
 0x23b   :  { %v2398_v52 = vpop.eup %2397 }
 0x23c   :  { %2401 = vrcp.f32 %v833_v35  ;;  %v840_v56 = vadd.f32 1.0, %v2398_v52  ;;  %v3418_v35 = vld [vmem:[#allocation11 + $0x1e8] sm:$0xff] }
 0x23d   :  { %4188 = vst [vmem:[#allocation27_spill] sm:$0xff] %v3418_v35 }
 0x23e   :  { %2403 = vrcp.f32 %v840_v56  ;;  %v4191_v56 = vld [vmem:[#allocation67_spill] sm:$0xff] }
 0x247   :  { %v2400_v41 = vpop.eup %2399 }
 0x248   :  { %v844_v30 = vmul.f32 %v2400_v41, %v2396_v32  ;;  %v4189_v32 = vld [vmem:[#allocation39_spill] sm:$0xff]  ;;  %v4190_v41 = vld [vmem:[#allocation66_spill] sm:$0xff] }
 0x249   :  { %v2402_v47 = vpop.eup %2401 }
 0x24a   :  { %v843_v40 = vmul.f32 %v2402_v47, %v671_v51 }
 0x24b   :  { %v2404_v7 = vpop.eup %2403 }
 0x24c   :  { %v845_v39 = vadd.f32 %v844_v30, %v843_v40 }
 0x24e   :  { %2405 = vtanh.f32 %v845_v39  ;;  %v865_v45 = vsub.f32 %v845_v39, %v671_v51 }
 0x250   :  { %v866_v38 = vmul.f32 %v865_v45, %v3339_v23 }
 0x252   :  { %v3342_v61 = vadd.f32 %v866_v38, %v671_v51 }
 0x25b   :  { %v2406_v44 = vpop.eup %2405 }
 0x25c   :  { %v3344_v49 = vmul.f32 %v2406_v44, %v2404_v7  ;;  %v4192_v7 = vld [vmem:[#allocation54_spill] sm:$0xff] }
 0x25e   :  { %4165 = vst [vmem:[#allocation26_spill] sm:$0xff] %v3344_v49  ;;  %v862_v28 = vsub.f32 %v3344_v49, %v3251_v53  ;;  %v3701_v49 = vld [vmem:[#allocation11 + $0x50] sm:$0xff] }
 0x260   :  { %v863_v46 = vmul.f32 %v862_v28, %v3339_v23  ;;  %v4193_v28 = vld [vmem:[#allocation53_spill] sm:$0xff]  ;;  %v3697_v23 = vld [vmem:[#allocation11 + $0x58] sm:$0xff] }
 0x262   :  { %v3350_v43 = vadd.f32 %v863_v46, %v3251_v53  ;;  %v3705_v53 = vld [vmem:[#allocation11 + $0x38] sm:$0xff] }
 0x264   :  { %938 = vmatmul.mubr.f32.vlgmr.msra.gmra.mxu0 %v3350_v43  ;;  %1009 = vmatmul.mubr.f32.vlgmr.msra.gmra.mxu1 %v3350_v43 }
 0x265   :  { %1069 = vmatpush1.msra.mxu0 %v2810_v8  ;;  %1140 = vmatpush1.msra.mxu1 %v2959_v54  ;;  %v4166_v8 = vld [vmem:[#allocation40_spill] sm:$0xff] }
 0x266   :  { %1070 = vmatprep.subr.mxu0 %v2812_v9  ;;  %1141 = vmatprep.subr.mxu1 %v2962_v55  ;;  %v4167_v9 = vld [vmem:[#allocation28_spill] sm:$0xff] }
 0x267   :  { %1071 = vmatpush1.msra.mxu0 %v2817_v10  ;;  %1142 = vmatpush1.msra.mxu1 %v2969_v57  ;;  %v4168_v10 = vld [vmem:[#allocation41_spill] sm:$0xff] }
 0x268   :  { %1072 = vmatprep.subr.mxu0 %v2823_v12  ;;  %1143 = vmatprep.subr.mxu1 %v2973_v58  ;;  %v4169_v12 = vld [vmem:[#allocation29_spill] sm:$0xff] }
 0x269   :  { %1073 = vmatpush1.msra.mxu0 %v2826_v13  ;;  %1144 = vmatpush1.msra.mxu1 %v2977_v59  ;;  %v4170_v13 = vld [vmem:[#allocation42_spill] sm:$0xff] }
 0x26a   :  { %1074 = vmatprep.subr.mxu0 %v2829_v14  ;;  %1145 = vmatprep.subr.mxu1 %v2980_v60  ;;  %v4171_v14 = vld [vmem:[#allocation30_spill] sm:$0xff] }
 0x26b   :  { %1075 = vmatpush1.msra.mxu0 %v2834_v15  ;;  %1146 = vmatpush1.msra.mxu1 %v2985_v62  ;;  %v4172_v15 = vld [vmem:[#allocation43_spill] sm:$0xff] }
 0x26c   :  { %1076 = vmatprep.subr.mxu0 %v2840_v17  ;;  %1147 = vmatprep.subr.mxu1 %v2989_v63  ;;  %v4173_v17 = vld [vmem:[#allocation32_spill] sm:$0xff] }
 0x26d   :  { %1077 = vmatpush1.msra.mxu0 %v2843_v18  ;;  %1148 = vmatpush1.msra.mxu1 %v2993_v1  ;;  %v4174_v18 = vld [vmem:[#allocation44_spill] sm:$0xff] }
 0x26e   :  { %1078 = vmatprep.subr.mxu0 %v2846_v19  ;;  %1149 = vmatprep.subr.mxu1 %v2996_v2  ;;  %v4175_v19 = vld [vmem:[#allocation33_spill] sm:$0xff] }
 0x26f   :  { %1079 = vmatpush1.msra.mxu0 %v2851_v21  ;;  %1150 = vmatpush1.msra.mxu1 %v3000_v3  ;;  %v4176_v21 = vld [vmem:[#allocation45_spill] sm:$0xff] }
 0x270   :  { %1080 = vmatprep.subr.mxu0 %v2857_v24  ;;  %1151 = vmatprep.subr.mxu1 %v3004_v4  ;;  %v4177_v24 = vld [vmem:[#allocation34_spill] sm:$0xff] }
 0x271   :  { %1081 = vmatpush1.msra.mxu0 %v2860_v25  ;;  %1152 = vmatpush1.msra.mxu1 %v3009_v5  ;;  %v4178_v25 = vld [vmem:[#allocation46_spill] sm:$0xff] }
 0x272   :  { %1082 = vmatprep.subr.mxu0 %v4137_v26  ;;  %1153 = vmatprep.subr.mxu1 %v3013_v6  ;;  %v4183_v26 = vld [vmem:[#allocation37_spill] sm:$0xff] }
 0x273   :  { %1083 = vmatpush1.msra.mxu0 %v4138_v31  ;;  %1154 = vmatpush1.msra.mxu1 %v3017_v11  ;;  %v4184_v31 = vld [vmem:[#allocation49_spill] sm:$0xff] }
 0x274   :  { %1084 = vmatprep.subr.mxu0 %v4139_v50  ;;  %1155 = vmatprep.subr.mxu1 %v3021_v16  ;;  %v4185_v50 = vld [vmem:[#allocation38_spill] sm:$0xff] }
 0x275   :  { %1085 = vmatpush1.msra.mxu0 %v4140_v0  ;;  %1156 = vmatpush1.msra.mxu1 %v3025_v20  ;;  %v4186_v0 = vmov 0.0  }
 0x276   :  { %1086 = vmatprep.subr.mxu0 %v2880_v33  ;;  %1157 = vmatprep.subr.mxu1 %v3029_v22  ;;  %v4179_v33 = vld [vmem:[#allocation35_spill] sm:$0xff] }
 0x277   :  { %1087 = vmatpush1.msra.mxu0 %v2885_v34  ;;  %1158 = vmatpush1.msra.mxu1 %v3034_v27  ;;  %v4180_v34 = vld [vmem:[#allocation47_spill] sm:$0xff]  ;;  %4215 = vst [vmem:[#allocation35_spill] sm:$0xff] %v3697_v23 }
 0x278   :  { %1088 = vmatprep.subr.mxu0 %v2891_v36  ;;  %1159 = vmatprep.subr.mxu1 %v3038_v29  ;;  %v4181_v36 = vld [vmem:[#allocation36_spill] sm:$0xff]  ;;  %4216 = vst [vmem:[#allocation47_spill] sm:$0xff] %v3701_v49 }
 0x279   :  { %1089 = vmatpush1.msra.mxu0 %v2894_v37  ;;  %1160 = vmatpush1.msra.mxu1 %v4166_v8  ;;  %v4182_v37 = vld [vmem:[#allocation48_spill] sm:$0xff]  ;;  %4217 = vst [vmem:[#allocation36_spill] sm:$0xff] %v3705_v53 }
 0x27a   :  { %1090 = vmatprep.subr.mxu0 %v4167_v9  ;;  %1161 = vmatprep.subr.mxu1 %v4168_v10 }
 0x27b   :  { %1091 = vmatpush1.msra.mxu0 %v4169_v12  ;;  %1162 = vmatpush1.msra.mxu1 %v4170_v13 }
 0x27c   :  { %1092 = vmatprep.subr.mxu0 %v4171_v14  ;;  %1163 = vmatprep.subr.mxu1 %v4172_v15 }
 0x27d   :  { %1093 = vmatpush1.msra.mxu0 %v4173_v17  ;;  %1164 = vmatpush1.msra.mxu1 %v4174_v18 }
 0x27e   :  { %1094 = vmatprep.subr.mxu0 %v4175_v19  ;;  %1165 = vmatprep.subr.mxu1 %v4176_v21 }
 0x27f   :  { %1095 = vmatpush1.msra.mxu0 %v4177_v24  ;;  %1166 = vmatpush1.msra.mxu1 %v4178_v25 }
 0x280   :  { %1096 = vmatprep.subr.mxu0 %v4179_v33  ;;  %1167 = vmatprep.subr.mxu1 %v4180_v34 }
 0x281   :  { %1097 = vmatpush1.msra.mxu0 %v4181_v36  ;;  %1168 = vmatpush1.msra.mxu1 %v4182_v37 }
 0x282   :  { %1098 = vmatprep.subr.mxu0 %v4183_v26  ;;  %1169 = vmatprep.subr.mxu1 %v4184_v31 }
 0x283   :  { %1099 = vmatpush1.msra.mxu0 %v4185_v50  ;;  %1132 = vmatprep.mubr.f32.mxu0 %v4186_v0 }
 0x284   :  { %1170 = vmatpush1.msra.mxu1 %v4187_v42  ;;  %1203 = vmatprep.mubr.f32.mxu1 %v4186_v0 }
 0x285   :  { %1263 = vmatprep.subr.mxu0 %v3418_v35  ;;  %1334 = vmatprep.subr.mxu1 %v4189_v32 }
 0x324   :  { %v939_v52 = vpop.f32.mrf.mxu0  ;;  %v1010_v39 = vpop.f32.mrf.mxu1 }
 0x325   :  { %v1015_v51 = vadd.f32 %v939_v52, %v4190_v41  ;;  %v1017_v46 = vadd.f32 %v1010_v39, %v4193_v28  ;;  %v3444_v28 = vld [vmem:[#allocation11 + $0x1e0] sm:$0xff] }
 0x326   :  { %v941_v30 = vpop.f32.mrf.mxu0  ;;  %v1012_v38 = vpop.f32.mrf.mxu1 }
 0x327   :  { %v2267_v47 = vmul.f32 -1.442695, %v1015_v51  ;;  %v1016_v40 = vadd.f32 %v941_v30, %v4191_v56  ;;  %v1018_v44 = vadd.f32 %v1012_v38, %v4192_v7  ;;  %v3427_v51 = vpop.permute.xlu1 %1051 }
 0x328   :  { %4194 = vst [vmem:[#allocation23_spill] sm:$0xff] %v3427_v51 }
 0x329   :  { %2407 = vpow2.f32 %v2267_v47  ;;  %v2268_v45 = vmul.f32 -1.442695, %v1016_v40  ;;  %v2269_v9 = vmul.f32 -1.442695, %v1018_v44 }
 0x32b   :  { %2409 = vpow2.f32 %v2268_v45 }
 0x32c   :  { %2411 = vtanh.f32 %v1017_v46  ;;  %v3452_v46 = vld [vmem:[#allocation11 + $0x1c0] sm:$0xff] }
 0x32d   :  { %2413 = vpow2.f32 %v2269_v9  ;;  %v3460_v9 = vld [vmem:[#allocation11 + $0x1a0] sm:$0xff] }
 0x336   :  { %v2408_v12 = vpop.eup %2407 }
 0x337   :  { %v1022_v14 = vadd.f32 1.0, %v2408_v12 }
 0x338   :  { %v2410_v17 = vpop.eup %2409 }
 0x339   :  { %2415 = vrcp.f32 %v1022_v14  ;;  %v1028_v19 = vadd.f32 1.0, %v2410_v17  ;;  %v2412_v24 = vpop.eup %2411  ;;  %v4207_v17 = vld [vmem:[#allocation69_spill] sm:$0xff] }
 0x33a   :  { %v2414_v33 = vpop.eup %2413 }
 0x33b   :  { %2417 = vrcp.f32 %v1028_v19  ;;  %v1035_v32 = vadd.f32 1.0, %v2414_v33 }
 0x33d   :  { %2419 = vrcp.f32 %v1035_v32 }
 0x346   :  { %v2416_v36 = vpop.eup %2415 }
 0x347   :  { %v1039_v26 = vmul.f32 %v2416_v36, %v2412_v24  ;;  %v4208_v36 = vld [vmem:[#allocation56_spill] sm:$0xff] }
 0x348   :  { %v2418_v50 = vpop.eup %2417 }
 0x349   :  { %v1038_v52 = vmul.f32 %v2418_v50, %v3342_v61  ;;  %v4209_v50 = vld [vmem:[#allocation55_spill] sm:$0xff] }
 0x34a   :  { %v2420_v40 = vpop.eup %2419 }
 0x34b   :  { %v1040_v41 = vadd.f32 %v1039_v26, %v1038_v52 }
 0x34d   :  { %2421 = vtanh.f32 %v1040_v41  ;;  %v1060_v30 = vsub.f32 %v1040_v41, %v3342_v61 }
 0x34f   :  { %v1061_v47 = vmul.f32 %v1060_v30, %v3427_v51 }
 0x351   :  { %v3432_v56 = vadd.f32 %v1061_v47, %v3342_v61  ;;  %v3448_v61 = vld [vmem:[#allocation11 + $0x1c8] sm:$0xff] }
 0x35a   :  { %v2422_v39 = vpop.eup %2421 }
 0x35b   :  { %v3434_v45 = vmul.f32 %v2422_v39, %v2420_v40 }
 0x35d   :  { %4195 = vst [vmem:[#allocation31_spill] sm:$0xff] %v3434_v45  ;;  %v1057_v38 = vsub.f32 %v3434_v45, %v3350_v43  ;;  %v3693_v45 = vld [vmem:[#allocation11 + $0x70] sm:$0xff] }
 0x35e   :  { %4214 = vst [vmem:[#allocation46_spill] sm:$0xff] %v3693_v45 }
 0x35f   :  { %v1058_v7 = vmul.f32 %v1057_v38, %v3427_v51  ;;  %v3689_v51 = vld [vmem:[#allocation11 + $0x78] sm:$0xff] }
 0x360   :  { %4213 = vst [vmem:[#allocation34_spill] sm:$0xff] %v3689_v51 }
 0x361   :  { %v3440_v44 = vadd.f32 %v1058_v7, %v3350_v43  ;;  %v3456_v43 = vld [vmem:[#allocation11 + $0x1a8] sm:$0xff] }
 0x363   :  { %1133 = vmatmul.mubr.f32.vlgmr.msra.gmra.mxu0 %v3440_v44  ;;  %1204 = vmatmul.mubr.f32.vlgmr.msra.gmra.mxu1 %v3440_v44 }
 0x364   :  { %1264 = vmatpush1.msra.mxu0 %v3444_v28  ;;  %1335 = vmatpush1.msra.mxu1 %v2959_v54  ;;  %v3464_v54 = vld [vmem:[#allocation11 + $0x188] sm:$0xff] }
 0x365   :  { %1265 = vmatprep.subr.mxu0 %v3448_v61  ;;  %1336 = vmatprep.subr.mxu1 %v2962_v55  ;;  %v3468_v55 = vld [vmem:[#allocation11 + $0x180] sm:$0xff] }
 0x366   :  { %1266 = vmatpush1.msra.mxu0 %v3452_v46  ;;  %1337 = vmatpush1.msra.mxu1 %v2969_v57  ;;  %v3472_v57 = vld [vmem:[#allocation11 + $0x168] sm:$0xff] }
 0x367   :  { %1267 = vmatprep.subr.mxu0 %v3456_v43  ;;  %1338 = vmatprep.subr.mxu1 %v2973_v58  ;;  %v3476_v58 = vld [vmem:[#allocation11 + $0x160] sm:$0xff] }
 0x368   :  { %1268 = vmatpush1.msra.mxu0 %v3460_v9  ;;  %1339 = vmatpush1.msra.mxu1 %v2977_v59  ;;  %v3480_v59 = vld [vmem:[#allocation11 + $0x148] sm:$0xff] }
 0x369   :  { %1269 = vmatprep.subr.mxu0 %v3464_v54  ;;  %1340 = vmatprep.subr.mxu1 %v2980_v60  ;;  %v3484_v60 = vld [vmem:[#allocation11 + $0x140] sm:$0xff] }
 0x36a   :  { %1270 = vmatpush1.msra.mxu0 %v3468_v55  ;;  %1341 = vmatpush1.msra.mxu1 %v2985_v62  ;;  %v3488_v62 = vld [vmem:[#allocation11 + $0x128] sm:$0xff] }
 0x36b   :  { %1271 = vmatprep.subr.mxu0 %v3472_v57  ;;  %1342 = vmatprep.subr.mxu1 %v2989_v63  ;;  %v3492_v63 = vld [vmem:[#allocation11 + $0x120] sm:$0xff] }
 0x36c   :  { %1272 = vmatpush1.msra.mxu0 %v3476_v58  ;;  %1343 = vmatpush1.msra.mxu1 %v2993_v1  ;;  %v3496_v1 = vld [vmem:[#allocation11 + $0x108] sm:$0xff] }
 0x36d   :  { %1273 = vmatprep.subr.mxu0 %v3480_v59  ;;  %1344 = vmatprep.subr.mxu1 %v2996_v2  ;;  %v3500_v2 = vld [vmem:[#allocation11 + $0x100] sm:$0xff] }
 0x36e   :  { %1274 = vmatpush1.msra.mxu0 %v3484_v60  ;;  %1345 = vmatpush1.msra.mxu1 %v3000_v3  ;;  %v3504_v3 = vld [vmem:[#allocation11 + $0xe8] sm:$0xff] }
 0x36f   :  { %1275 = vmatprep.subr.mxu0 %v3488_v62  ;;  %1346 = vmatprep.subr.mxu1 %v3004_v4  ;;  %v3508_v4 = vld [vmem:[#allocation11 + $0xe0] sm:$0xff] }
 0x370   :  { %1276 = vmatpush1.msra.mxu0 %v3492_v63  ;;  %1347 = vmatpush1.msra.mxu1 %v3009_v5  ;;  %v3512_v5 = vld [vmem:[#allocation11 + $0xc8] sm:$0xff] }
 0x371   :  { %1277 = vmatprep.subr.mxu0 %v3496_v1  ;;  %1348 = vmatprep.subr.mxu1 %v3013_v6  ;;  %v3516_v6 = vld [vmem:[#allocation11 + $0xc0] sm:$0xff] }
 0x372   :  { %1278 = vmatpush1.msra.mxu0 %v3500_v2  ;;  %1349 = vmatpush1.msra.mxu1 %v3017_v11  ;;  %v3520_v11 = vld [vmem:[#allocation11 + $0xa8] sm:$0xff] }
 0x373   :  { %1279 = vmatprep.subr.mxu0 %v3504_v3  ;;  %1350 = vmatprep.subr.mxu1 %v3021_v16  ;;  %v3524_v16 = vld [vmem:[#allocation11 + $0xa0] sm:$0xff] }
 0x374   :  { %1280 = vmatpush1.msra.mxu0 %v3508_v4  ;;  %1351 = vmatpush1.msra.mxu1 %v3025_v20  ;;  %v3528_v20 = vld [vmem:[#allocation11 + $0x88] sm:$0xff] }
 0x375   :  { %1281 = vmatprep.subr.mxu0 %v3512_v5  ;;  %1352 = vmatprep.subr.mxu1 %v3029_v22  ;;  %v3532_v22 = vld [vmem:[#allocation11 + $0x80] sm:$0xff] }
 0x376   :  { %1282 = vmatpush1.msra.mxu0 %v3516_v6  ;;  %1353 = vmatpush1.msra.mxu1 %v3034_v27  ;;  %4196 = vst [vmem:[#allocation52_spill] sm:$0xff] %v3532_v22  ;;  %v3536_v27 = vld [vmem:[#allocation11 + $0x68] sm:$0xff] }
 0x377   :  { %1283 = vmatprep.subr.mxu0 %v3520_v11  ;;  %1354 = vmatprep.subr.mxu1 %v3038_v29  ;;  %4197 = vst [vmem:[#allocation51_spill] sm:$0xff] %v3536_v27  ;;  %v3540_v29 = vld [vmem:[#allocation11 + $0x60] sm:$0xff] }
 0x378   :  { %1284 = vmatpush1.msra.mxu0 %v3524_v16  ;;  %1355 = vmatpush1.msra.mxu1 %v4166_v8  ;;  %4198 = vst [vmem:[#allocation40_spill] sm:$0xff] %v3540_v29  ;;  %v3544_v8 = vld [vmem:[#allocation11 + $0x48] sm:$0xff] }
 0x379   :  { %1285 = vmatprep.subr.mxu0 %v3528_v20  ;;  %1356 = vmatprep.subr.mxu1 %v4168_v10  ;;  %4199 = vst [vmem:[#allocation28_spill] sm:$0xff] %v3544_v8  ;;  %v3548_v10 = vld [vmem:[#allocation11 + $0x40] sm:$0xff] }
 0x37a   :  { %1286 = vmatpush1.msra.mxu0 %v3532_v22  ;;  %1357 = vmatpush1.msra.mxu1 %v4170_v13  ;;  %4200 = vst [vmem:[#allocation41_spill] sm:$0xff] %v3548_v10  ;;  %v3552_v13 = vld [vmem:[#allocation11 + $0x28] sm:$0xff] }
 0x37b   :  { %1287 = vmatprep.subr.mxu0 %v3536_v27  ;;  %1358 = vmatprep.subr.mxu1 %v4172_v15  ;;  %4201 = vst [vmem:[#allocation29_spill] sm:$0xff] %v3552_v13  ;;  %v3556_v15 = vld [vmem:[#allocation11 + $0x20] sm:$0xff] }
 0x37c   :  { %1288 = vmatpush1.msra.mxu0 %v3540_v29  ;;  %1359 = vmatpush1.msra.mxu1 %v4174_v18  ;;  %4202 = vst [vmem:[#allocation42_spill] sm:$0xff] %v3556_v15  ;;  %v3560_v18 = vld [vmem:[#allocation11 + $0x8] sm:$0xff] }
 0x37d   :  { %1289 = vmatprep.subr.mxu0 %v3544_v8  ;;  %1360 = vmatprep.subr.mxu1 %v4176_v21  ;;  %4203 = vst [vmem:[#allocation30_spill] sm:$0xff] %v3560_v18  ;;  %v3564_v21 = vld [vmem:[#allocation11] sm:$0xff] }
 0x37e   :  { %1290 = vmatpush1.msra.mxu0 %v3548_v10  ;;  %1361 = vmatpush1.msra.mxu1 %v4178_v25  ;;  %4204 = vst [vmem:[#allocation43_spill] sm:$0xff] %v3564_v21  ;;  %v3571_v25 = vld [vmem:[#allocation11 + $0x1f8] sm:$0xff] }
 0x37f   :  { %1291 = vmatprep.subr.mxu0 %v3552_v13  ;;  %1362 = vmatprep.subr.mxu1 %v4180_v34  ;;  %4205 = vst [vmem:[#allocation32_spill] sm:$0xff] %v3571_v25 }
 0x380   :  { %1292 = vmatpush1.msra.mxu0 %v3556_v15  ;;  %1363 = vmatpush1.msra.mxu1 %v4182_v37  ;;  %v4206_v37 = vld [vmem:[#allocation68_spill] sm:$0xff] }
 0x381   :  { %1293 = vmatprep.subr.mxu0 %v3560_v18  ;;  %1364 = vmatprep.subr.mxu1 %v4184_v31 }
 0x382   :  { %1294 = vmatpush1.msra.mxu0 %v3564_v21  ;;  %1327 = vmatprep.mubr.f32.mxu0 %v4186_v0 }
 0x383   :  { %1365 = vmatpush1.msra.mxu1 %v4187_v42  ;;  %1398 = vmatprep.mubr.f32.mxu1 %v4186_v0 }
 0x384   :  { %1458 = vmatprep.subr.mxu0 %v3418_v35  ;;  %1529 = vmatprep.subr.mxu1 %v3571_v25 }
 0x423   :  { %v1134_v34 = vpop.f32.mrf.mxu0  ;;  %v1205_v24 = vpop.f32.mrf.mxu1 }
 0x424   :  { %v1210_v12 = vadd.f32 %v1134_v34, %v4206_v37  ;;  %v1212_v32 = vadd.f32 %v1205_v24, %v4209_v50 }
 0x425   :  { %v1136_v31 = vpop.f32.mrf.mxu0  ;;  %v1207_v42 = vpop.f32.mrf.mxu1 }
 0x426   :  { %v2271_v14 = vmul.f32 -1.442695, %v1210_v12  ;;  %v1211_v19 = vadd.f32 %v1136_v31, %v4207_v17  ;;  %v1213_v26 = vadd.f32 %v1207_v42, %v4208_v36 }
 0x428   :  { %2423 = vpow2.f32 %v2271_v14  ;;  %v2272_v33 = vmul.f32 -1.442695, %v1211_v19  ;;  %v2273_v52 = vmul.f32 -1.442695, %v1213_v26  ;;  %v3580_v19 = vpop.permute.xlu1 %1246 }
 0x429   :  { %4210 = vst [vmem:[#allocation44_spill] sm:$0xff] %v3580_v19 }
 0x42a   :  { %2425 = vpow2.f32 %v2272_v33 }
 0x42b   :  { %2427 = vtanh.f32 %v1212_v32 }
 0x42c   :  { %2429 = vpow2.f32 %v2273_v52 }
 0x435   :  { %v2424_v41 = vpop.eup %2423 }
 0x436   :  { %v1217_v30 = vadd.f32 1.0, %v2424_v41  ;;  %v3601_v41 = vld [vmem:[#allocation11 + $0x1d8] sm:$0xff] }
 0x437   :  { %v2426_v47 = vpop.eup %2425 }
 0x438   :  { %2431 = vrcp.f32 %v1217_v30  ;;  %v1223_v40 = vadd.f32 1.0, %v2426_v47  ;;  %v2428_v39 = vpop.eup %2427  ;;  %v3609_v30 = vld [vmem:[#allocation11 + $0x1b8] sm:$0xff]  ;;  %v3613_v47 = vld [vmem:[#allocation11 + $0x1b0] sm:$0xff] }
 0x439   :  { %v2430_v38 = vpop.eup %2429 }
 0x43a   :  { %2433 = vrcp.f32 %v1223_v40  ;;  %v1230_v12 = vadd.f32 1.0, %v2430_v38  ;;  %v3617_v40 = vld [vmem:[#allocation11 + $0x198] sm:$0xff] }
 0x43b   :  { %v3625_v38 = vld [vmem:[#allocation11 + $0x178] sm:$0xff] }
 0x43c   :  { %2435 = vrcp.f32 %v1230_v12  ;;  %v3641_v12 = vld [vmem:[#allocation11 + $0x138] sm:$0xff] }
 0x445   :  { %v2432_v7 = vpop.eup %2431 }
 0x446   :  { %v1234_v34 = vmul.f32 %v2432_v7, %v2428_v39  ;;  %v3621_v39 = vld [vmem:[#allocation11 + $0x190] sm:$0xff] }
 0x447   :  { %v2434_v37 = vpop.eup %2433  ;;  %v3629_v7 = vld [vmem:[#allocation11 + $0x170] sm:$0xff] }
 0x448   :  { %v1233_v31 = vmul.f32 %v2434_v37, %v3432_v56  ;;  %v3637_v37 = vld [vmem:[#allocation11 + $0x150] sm:$0xff] }
 0x449   :  { %v2436_v42 = vpop.eup %2435 }
 0x44a   :  { %v1235_v14 = vadd.f32 %v1234_v34, %v1233_v31  ;;  %v3633_v34 = vld [vmem:[#allocation11 + $0x158] sm:$0xff]  ;;  %v3645_v31 = vld [vmem:[#allocation11 + $0x130] sm:$0xff] }
 0x44c   :  { %2437 = vtanh.f32 %v1235_v14  ;;  %v1255_v17 = vsub.f32 %v1235_v14, %v3432_v56  ;;  %v3649_v14 = vld [vmem:[#allocation11 + $0x118] sm:$0xff] }
 0x44e   :  { %v1256_v24 = vmul.f32 %v1255_v17, %v3580_v19  ;;  %v3653_v17 = vld [vmem:[#allocation11 + $0x110] sm:$0xff] }
 0x450   :  { %v3584_v33 = vadd.f32 %v1256_v24, %v3432_v56  ;;  %v3597_v56 = vld [vmem:[#allocation11 + $0x1f0] sm:$0xff]  ;;  %v3657_v24 = vld [vmem:[#allocation11 + $0xf8] sm:$0xff] }
 0x459   :  { %v2438_v36 = vpop.eup %2437 }
 0x45a   :  { %v3586_v26 = vmul.f32 %v2438_v36, %v2436_v42  ;;  %v3661_v42 = vld [vmem:[#allocation11 + $0xf0] sm:$0xff]  ;;  %v3665_v36 = vld [vmem:[#allocation11 + $0xd8] sm:$0xff] }
 0x45c   :  { %4211 = vst [vmem:[#allocation33_spill] sm:$0xff] %v3586_v26  ;;  %v1252_v50 = vsub.f32 %v3586_v26, %v3440_v44  ;;  %v3685_v26 = vld [vmem:[#allocation11 + $0x90] sm:$0xff] }
 0x45d   :  { %4212 = vst [vmem:[#allocation45_spill] sm:$0xff] %v3685_v26 }
 0x45e   :  { %v1253_v32 = vmul.f32 %v1252_v50, %v3580_v19  ;;  %v3669_v50 = vld [vmem:[#allocation11 + $0xd0] sm:$0xff]  ;;  %v3681_v19 = vld [vmem:[#allocation11 + $0x98] sm:$0xff] }
 0x460   :  { %v3592_v52 = vadd.f32 %v1253_v32, %v3440_v44  ;;  %v3605_v44 = vld [vmem:[#allocation11 + $0x1d0] sm:$0xff]  ;;  %v3673_v32 = vld [vmem:[#allocation11 + $0xb8] sm:$0xff] }
 0x462   :  { %1328 = vmatmul.mubr.f32.vlgmr.msra.gmra.mxu0 %v3592_v52  ;;  %1399 = vmatmul.mubr.f32.vlgmr.msra.gmra.mxu1 %v3592_v52 }
 0x463   :  { %1459 = vmatpush1.msra.mxu0 %v3444_v28  ;;  %1530 = vmatpush1.msra.mxu1 %v3597_v56 }
 0x464   :  { %1460 = vmatprep.subr.mxu0 %v3448_v61  ;;  %1531 = vmatprep.subr.mxu1 %v3601_v41 }
 0x465   :  { %1461 = vmatpush1.msra.mxu0 %v3452_v46  ;;  %1532 = vmatpush1.msra.mxu1 %v3605_v44 }
 0x466   :  { %1462 = vmatprep.subr.mxu0 %v3456_v43  ;;  %1533 = vmatprep.subr.mxu1 %v3609_v30 }
 0x467   :  { %1463 = vmatpush1.msra.mxu0 %v3460_v9  ;;  %1534 = vmatpush1.msra.mxu1 %v3613_v47 }
 0x468   :  { %1464 = vmatprep.subr.mxu0 %v3464_v54  ;;  %1535 = vmatprep.subr.mxu1 %v3617_v40 }
 0x469   :  { %1465 = vmatpush1.msra.mxu0 %v3468_v55  ;;  %1536 = vmatpush1.msra.mxu1 %v3621_v39 }
 0x46a   :  { %1466 = vmatprep.subr.mxu0 %v3472_v57  ;;  %1537 = vmatprep.subr.mxu1 %v3625_v38 }
 0x46b   :  { %1467 = vmatpush1.msra.mxu0 %v3476_v58  ;;  %1538 = vmatpush1.msra.mxu1 %v3629_v7 }
 0x46c   :  { %1468 = vmatprep.subr.mxu0 %v3480_v59  ;;  %1539 = vmatprep.subr.mxu1 %v3633_v34 }
 0x46d   :  { %1469 = vmatpush1.msra.mxu0 %v3484_v60  ;;  %1540 = vmatpush1.msra.mxu1 %v3637_v37 }
 0x46e   :  { %1470 = vmatprep.subr.mxu0 %v3488_v62  ;;  %1541 = vmatprep.subr.mxu1 %v3641_v12 }
 0x46f   :  { %1471 = vmatpush1.msra.mxu0 %v3492_v63  ;;  %1542 = vmatpush1.msra.mxu1 %v3645_v31 }
 0x470   :  { %1472 = vmatprep.subr.mxu0 %v3496_v1  ;;  %1543 = vmatprep.subr.mxu1 %v3649_v14 }
 0x471   :  { %1473 = vmatpush1.msra.mxu0 %v3500_v2  ;;  %1544 = vmatpush1.msra.mxu1 %v3653_v17 }
 0x472   :  { %1474 = vmatprep.subr.mxu0 %v3504_v3  ;;  %1545 = vmatprep.subr.mxu1 %v3657_v24 }
 0x473   :  { %1475 = vmatpush1.msra.mxu0 %v3508_v4  ;;  %1546 = vmatpush1.msra.mxu1 %v3661_v42 }
 0x474   :  { %1476 = vmatprep.subr.mxu0 %v3512_v5  ;;  %1547 = vmatprep.subr.mxu1 %v3665_v36 }
 0x475   :  { %1477 = vmatpush1.msra.mxu0 %v3516_v6  ;;  %1548 = vmatpush1.msra.mxu1 %v3669_v50 }
 0x476   :  { %1478 = vmatprep.subr.mxu0 %v3520_v11  ;;  %1549 = vmatprep.subr.mxu1 %v3673_v32 }
 0x477   :  { %1479 = vmatpush1.msra.mxu0 %v3524_v16  ;;  %1550 = vmatpush1.msra.mxu1 %v3677_v48 }
 0x478   :  { %1480 = vmatprep.subr.mxu0 %v3528_v20  ;;  %1551 = vmatprep.subr.mxu1 %v3681_v19 }
 0x479   :  { %1481 = vmatpush1.msra.mxu0 %v3532_v22  ;;  %1552 = vmatpush1.msra.mxu1 %v3685_v26 }
 0x47a   :  { %1482 = vmatprep.subr.mxu0 %v3536_v27  ;;  %1553 = vmatprep.subr.mxu1 %v3689_v51  ;;  %v4223_v51 = vld [vmem:[#allocation58_spill] sm:$0xff]  ;;  %v4224_v27 = vld [vmem:[#allocation57_spill] sm:$0xff] }
 0x47b   :  { %1483 = vmatpush1.msra.mxu0 %v3540_v29  ;;  %1554 = vmatpush1.msra.mxu1 %v3693_v45  ;;  %v3709_v45 = vld [vmem:[#allocation11 + $0x30] sm:$0xff] }
 0x47c   :  { %1484 = vmatprep.subr.mxu0 %v3544_v8  ;;  %1555 = vmatprep.subr.mxu1 %v3697_v23  ;;  %4218 = vst [vmem:[#allocation48_spill] sm:$0xff] %v3709_v45  ;;  %v3713_v23 = vld [vmem:[#allocation11 + $0x18] sm:$0xff] }
 0x47d   :  { %1485 = vmatpush1.msra.mxu0 %v3548_v10  ;;  %1556 = vmatpush1.msra.mxu1 %v3701_v49  ;;  %4219 = vst [vmem:[#allocation37_spill] sm:$0xff] %v3713_v23 }
 0x47e   :  { %1486 = vmatprep.subr.mxu0 %v3552_v13  ;;  %1557 = vmatprep.subr.mxu1 %v3705_v53  ;;  %v3718_v13 = vld [vmem:[#allocation11 + $0x10] sm:$0xff] }
 0x47f   :  { %1487 = vmatpush1.msra.mxu0 %v3556_v15  ;;  %1558 = vmatpush1.msra.mxu1 %v3709_v45  ;;  %4220 = vst [vmem:[#allocation49_spill] sm:$0xff] %v3718_v13 }
 0x480   :  { %1488 = vmatprep.subr.mxu0 %v3560_v18  ;;  %1559 = vmatprep.subr.mxu1 %v3713_v23  ;;  %v4221_v18 = vld [vmem:[#allocation70_spill] sm:$0xff]  ;;  %v4222_v23 = vld [vmem:[#allocation71_spill] sm:$0xff] }
 0x481   :  { %1489 = vmatpush1.msra.mxu0 %v3564_v21  ;;  %1522 = vmatprep.mubr.f32.mxu0 %v4186_v0 }
 0x482   :  { %1560 = vmatpush1.msra.mxu1 %v3718_v13  ;;  %1593 = vmatprep.mubr.f32.mxu1 %v4186_v0 }
 0x483   :  { %1653 = vmatprep.subr.mxu0 %v3418_v35  ;;  %1724 = vmatprep.subr.mxu1 %v3571_v25 }
 0x522   :  { %v1329_v45 = vpop.f32.mrf.mxu0  ;;  %v1400_v21 = vpop.f32.mrf.mxu1 }
 0x523   :  { %v1405_v15 = vadd.f32 %v1329_v45, %v4221_v18  ;;  %v1407_v0 = vadd.f32 %v1400_v21, %v4224_v27 }
 0x524   :  { %v1331_v53 = vpop.f32.mrf.mxu0  ;;  %v1402_v29 = vpop.f32.mrf.mxu1 }
 0x525   :  { %v2275_v49 = vmul.f32 -1.442695, %v1405_v15  ;;  %v1406_v10 = vadd.f32 %v1331_v53, %v4222_v23  ;;  %v1408_v13 = vadd.f32 %v1402_v29, %v4223_v51 }
 0x527   :  { %2439 = vpow2.f32 %v2275_v49  ;;  %v2276_v8 = vmul.f32 -1.442695, %v1406_v10  ;;  %v2277_v26 = vmul.f32 -1.442695, %v1408_v13 }
 0x529   :  { %2441 = vpow2.f32 %v2276_v8 }
 0x52a   :  { %2443 = vtanh.f32 %v1407_v0 }
 0x52b   :  { %2445 = vpow2.f32 %v2277_v26 }
 0x534   :  { %v2440_v35 = vpop.eup %2439 }
 0x535   :  { %v1412_v22 = vadd.f32 1.0, %v2440_v35  ;;  %v3730_v35 = vpop.permute.xlu0 %1441 }
 0x536   :  { %v2442_v25 = vpop.eup %2441  ;;  %4225 = vst [vmem:[#allocation38_spill] sm:$0xff] %v3730_v35 }
 0x537   :  { %2447 = vrcp.f32 %v1412_v22  ;;  %v1418_v45 = vadd.f32 1.0, %v2442_v25  ;;  %v2444_v15 = vpop.eup %2443 }
 0x538   :  { %v2446_v53 = vpop.eup %2445 }
 0x539   :  { %2449 = vrcp.f32 %v1418_v45  ;;  %v1425_v8 = vadd.f32 1.0, %v2446_v53  ;;  %v4230_v53 = vld [vmem:[#allocation34_spill] sm:$0xff] }
 0x53b   :  { %2451 = vrcp.f32 %v1425_v8  ;;  %v4234_v8 = vld [vmem:[#allocation35_spill] sm:$0xff] }
 0x544   :  { %v2448_v23 = vpop.eup %2447 }
 0x545   :  { %v1429_v49 = vmul.f32 %v2448_v23, %v2444_v15  ;;  %v4229_v15 = vld [vmem:[#allocation51_spill] sm:$0xff]  ;;  %v4231_v23 = vld [vmem:[#allocation40_spill] sm:$0xff] }
 0x546   :  { %v2450_v10 = vpop.eup %2449 }
 0x547   :  { %v1428_v18 = vmul.f32 %v2450_v10, %v3584_v33  ;;  %v4233_v10 = vld [vmem:[#allocation28_spill] sm:$0xff] }
 0x548   :  { %v2452_v29 = vpop.eup %2451 }
 0x549   :  { %v1430_v51 = vadd.f32 %v1429_v49, %v1428_v18  ;;  %v4232_v49 = vld [vmem:[#allocation46_spill] sm:$0xff]  ;;  %v4235_v18 = vld [vmem:[#allocation41_spill] sm:$0xff] }
 0x54b   :  { %2453 = vtanh.f32 %v1430_v51  ;;  %v1450_v27 = vsub.f32 %v1430_v51, %v3584_v33  ;;  %v4236_v51 = vld [vmem:[#allocation47_spill] sm:$0xff] }
 0x54d   :  { %v1451_v0 = vmul.f32 %v1450_v27, %v3730_v35  ;;  %v4237_v27 = vld [vmem:[#allocation29_spill] sm:$0xff] }
 0x54f   :  { %v3734_v22 = vadd.f32 %v1451_v0, %v3584_v33  ;;  %v4227_v33 = vld [vmem:[#allocation52_spill] sm:$0xff] }
 0x550   :  { %v4238_v0 = vld [vmem:[#allocation36_spill] sm:$0xff] }
 0x558   :  { %v2454_v13 = vpop.eup %2453 }
 0x559   :  { %v3736_v21 = vmul.f32 %v2454_v13, %v2452_v29  ;;  %v4239_v29 = vld [vmem:[#allocation42_spill] sm:$0xff]  ;;  %v4240_v13 = vld [vmem:[#allocation48_spill] sm:$0xff] }
 0x55b   :  { %4226 = vst [vmem:[#allocation50_spill] sm:$0xff] %v3736_v21  ;;  %v1447_v25 = vsub.f32 %v3736_v21, %v3592_v52  ;;  %v4244_v21 = vmov 0.0  }
 0x55d   :  { %v1448_v26 = vmul.f32 %v1447_v25, %v3730_v35  ;;  %v4241_v25 = vld [vmem:[#allocation30_spill] sm:$0xff]  ;;  %v4243_v35 = vld [vmem:[#allocation43_spill] sm:$0xff] }
 0x55f   :  { %v3742_v45 = vadd.f32 %v1448_v26, %v3592_v52  ;;  %v4228_v52 = vld [vmem:[#allocation45_spill] sm:$0xff] }
 0x560   :  { %v4242_v26 = vld [vmem:[#allocation37_spill] sm:$0xff] }
 0x561   :  { %1523 = vmatmul.mubr.f32.vlgmr.msra.gmra.mxu0 %v3742_v45  ;;  %1594 = vmatmul.mubr.f32.vlgmr.msra.gmra.mxu1 %v3742_v45 }
 0x562   :  { %1654 = vmatpush1.msra.mxu0 %v3444_v28  ;;  %1725 = vmatpush1.msra.mxu1 %v3597_v56 }
 0x563   :  { %1655 = vmatprep.subr.mxu0 %v3448_v61  ;;  %1726 = vmatprep.subr.mxu1 %v3601_v41 }
 0x564   :  { %1656 = vmatpush1.msra.mxu0 %v3452_v46  ;;  %1727 = vmatpush1.msra.mxu1 %v3605_v44 }
 0x565   :  { %1657 = vmatprep.subr.mxu0 %v3456_v43  ;;  %1728 = vmatprep.subr.mxu1 %v3609_v30 }
 0x566   :  { %1658 = vmatpush1.msra.mxu0 %v3460_v9  ;;  %1729 = vmatpush1.msra.mxu1 %v3613_v47 }
 0x567   :  { %1659 = vmatprep.subr.mxu0 %v3464_v54  ;;  %1730 = vmatprep.subr.mxu1 %v3617_v40 }
 0x568   :  { %1660 = vmatpush1.msra.mxu0 %v3468_v55  ;;  %1731 = vmatpush1.msra.mxu1 %v3621_v39 }
 0x569   :  { %1661 = vmatprep.subr.mxu0 %v3472_v57  ;;  %1732 = vmatprep.subr.mxu1 %v3625_v38 }
 0x56a   :  { %1662 = vmatpush1.msra.mxu0 %v3476_v58  ;;  %1733 = vmatpush1.msra.mxu1 %v3629_v7 }
 0x56b   :  { %1663 = vmatprep.subr.mxu0 %v3480_v59  ;;  %1734 = vmatprep.subr.mxu1 %v3633_v34 }
 0x56c   :  { %1664 = vmatpush1.msra.mxu0 %v3484_v60  ;;  %1735 = vmatpush1.msra.mxu1 %v3637_v37 }
 0x56d   :  { %1665 = vmatprep.subr.mxu0 %v3488_v62  ;;  %1736 = vmatprep.subr.mxu1 %v3641_v12 }
 0x56e   :  { %1666 = vmatpush1.msra.mxu0 %v3492_v63  ;;  %1737 = vmatpush1.msra.mxu1 %v3645_v31 }
 0x56f   :  { %1667 = vmatprep.subr.mxu0 %v3496_v1  ;;  %1738 = vmatprep.subr.mxu1 %v3649_v14 }
 0x570   :  { %1668 = vmatpush1.msra.mxu0 %v3500_v2  ;;  %1739 = vmatpush1.msra.mxu1 %v3653_v17 }
 0x571   :  { %1669 = vmatprep.subr.mxu0 %v3504_v3  ;;  %1740 = vmatprep.subr.mxu1 %v3657_v24 }
 0x572   :  { %1670 = vmatpush1.msra.mxu0 %v3508_v4  ;;  %1741 = vmatpush1.msra.mxu1 %v3661_v42 }
 0x573   :  { %1671 = vmatprep.subr.mxu0 %v3512_v5  ;;  %1742 = vmatprep.subr.mxu1 %v3665_v36 }
 0x574   :  { %1672 = vmatpush1.msra.mxu0 %v3516_v6  ;;  %1743 = vmatpush1.msra.mxu1 %v3669_v50 }
 0x575   :  { %1673 = vmatprep.subr.mxu0 %v3520_v11  ;;  %1744 = vmatprep.subr.mxu1 %v3673_v32 }
 0x576   :  { %1674 = vmatpush1.msra.mxu0 %v3524_v16  ;;  %1745 = vmatpush1.msra.mxu1 %v3677_v48 }
 0x577   :  { %1675 = vmatprep.subr.mxu0 %v3528_v20  ;;  %1746 = vmatprep.subr.mxu1 %v3681_v19 }
 0x578   :  { %1676 = vmatpush1.msra.mxu0 %v4227_v33  ;;  %1747 = vmatpush1.msra.mxu1 %v4228_v52 }
 0x579   :  { %1677 = vmatprep.subr.mxu0 %v4229_v15  ;;  %1748 = vmatprep.subr.mxu1 %v4230_v53  ;;  %v4250_v53 = vld [vmem:[#allocation60_spill] sm:$0xff]  ;;  %v4251_v15 = vld [vmem:[#allocation59_spill] sm:$0xff] }
 0x57a   :  { %1678 = vmatpush1.msra.mxu0 %v4231_v23  ;;  %1749 = vmatpush1.msra.mxu1 %v4232_v49 }
 0x57b   :  { %1679 = vmatprep.subr.mxu0 %v4233_v10  ;;  %1750 = vmatprep.subr.mxu1 %v4234_v8  ;;  %v4245_v8 = vld [vmem:[#allocation49_spill] sm:$0xff] }
 0x57c   :  { %1680 = vmatpush1.msra.mxu0 %v4235_v18  ;;  %1751 = vmatpush1.msra.mxu1 %v4236_v51  ;;  %v4246_v51 = vld [vmem:[#allocation27_spill] sm:$0xff] }
 0x57d   :  { %1681 = vmatprep.subr.mxu0 %v4237_v27  ;;  %1752 = vmatprep.subr.mxu1 %v4238_v0  ;;  %v4247_v27 = vld [vmem:[#allocation32_spill] sm:$0xff] }
 0x57e   :  { %1682 = vmatpush1.msra.mxu0 %v4239_v29  ;;  %1753 = vmatpush1.msra.mxu1 %v4240_v13  ;;  %v4248_v29 = vld [vmem:[#allocation72_spill] sm:$0xff] }
 0x57f   :  { %1683 = vmatprep.subr.mxu0 %v4241_v25  ;;  %1754 = vmatprep.subr.mxu1 %v4242_v26  ;;  %v4249_v25 = vld [vmem:[#allocation73_spill] sm:$0xff] }
 0x580   :  { %1684 = vmatpush1.msra.mxu0 %v4243_v35  ;;  %1717 = vmatprep.mubr.f32.mxu0 %v4244_v21 }
 0x581   :  { %1755 = vmatpush1.msra.mxu1 %v4245_v8  ;;  %1788 = vmatprep.mubr.f32.mxu1 %v4244_v21 }
 0x582   :  { %1848 = vmatprep.subr.mxu0 %v4246_v51  ;;  %1919 = vmatprep.subr.mxu1 %v4247_v27 }
 0x621   :  { %v1524_v0 = vpop.f32.mrf.mxu0  ;;  %v1595_v26 = vpop.f32.mrf.mxu1 }
 0x622   :  { %v1600_v18 = vadd.f32 %v1524_v0, %v4248_v29  ;;  %v1602_v21 = vadd.f32 %v1595_v26, %v4251_v15 }
 0x623   :  { %v1526_v13 = vpop.f32.mrf.mxu0  ;;  %v1597_v23 = vpop.f32.mrf.mxu1 }
 0x624   :  { %v2279_v10 = vmul.f32 -1.442695, %v1600_v18  ;;  %v1601_v49 = vadd.f32 %v1526_v13, %v4249_v25  ;;  %v1603_v8 = vadd.f32 %v1597_v23, %v4250_v53  ;;  %v3818_v23 = vpop.permute.xlu1 %1636 }
 0x626   :  { %2455 = vpow2.f32 %v2279_v10  ;;  %v2280_v35 = vmul.f32 -1.442695, %v1601_v49  ;;  %v2281_v52 = vmul.f32 -1.442695, %v1603_v8 }
 0x628   :  { %2457 = vpow2.f32 %v2280_v35 }
 0x629   :  { %2459 = vtanh.f32 %v1602_v21 }
 0x62a   :  { %2461 = vpow2.f32 %v2281_v52 }
 0x633   :  { %v2456_v51 = vpop.eup %2455 }
 0x634   :  { %v1607_v33 = vadd.f32 1.0, %v2456_v51 }
 0x635   :  { %v2458_v27 = vpop.eup %2457 }
 0x636   :  { %2463 = vrcp.f32 %v1607_v33  ;;  %v1613_v0 = vadd.f32 1.0, %v2458_v27  ;;  %v2460_v18 = vpop.eup %2459 }
 0x637   :  { %v2462_v29 = vpop.eup %2461 }
 0x638   :  { %2465 = vrcp.f32 %v1613_v0  ;;  %v1620_v35 = vadd.f32 1.0, %v2462_v29 }
 0x63a   :  { %2467 = vrcp.f32 %v1620_v35 }
 0x643   :  { %v2464_v10 = vpop.eup %2463 }
 0x644   :  { %v1624_v13 = vmul.f32 %v2464_v10, %v2460_v18  ;;  %v3904_v10 = vpop.permute.xlu0 %1831 }
 0x645   :  { %v2466_v49 = vpop.eup %2465 }
 0x646   :  { %v1623_v25 = vmul.f32 %v2466_v49, %v3734_v22 }
 0x647   :  { %v2468_v52 = vpop.eup %2467 }
 0x648   :  { %v1625_v53 = vadd.f32 %v1624_v13, %v1623_v25 }
 0x64a   :  { %2469 = vtanh.f32 %v1625_v53  ;;  %v1645_v15 = vsub.f32 %v1625_v53, %v3734_v22 }
 0x64c   :  { %v1646_v21 = vmul.f32 %v1645_v15, %v3818_v23 }
 0x64e   :  { %v3822_v33 = vadd.f32 %v1646_v21, %v3734_v22 }
 0x657   :  { %v2470_v8 = vpop.eup %2469 }
 0x658   :  { %v3824_v26 = vmul.f32 %v2470_v8, %v2468_v52  ;;  %v2062_v8 = vld [vmem:[#allocation12 + $0x70] sm:$0xff] }
 0x65a   :  { %v1642_v51 = vsub.f32 %v3824_v26, %v3742_v45 }
 0x65c   :  { %v1643_v27 = vmul.f32 %v1642_v51, %v3818_v23  ;;  %v4275_v51 = vld [vmem:[#allocation77_spill] sm:$0xff] }
 0x65e   :  { %v3830_v0 = vadd.f32 %v1643_v27, %v3742_v45  ;;  %v2060_v27 = vld [vmem:[#allocation12 + $0x60] sm:$0xff] }
 0x660   :  { %1718 = vmatmul.mubr.f32.vlgmr.msra.gmra.mxu0 %v3830_v0  ;;  %1789 = vmatmul.mubr.f32.vlgmr.msra.gmra.mxu1 %v3830_v0 }
 0x661   :  { %1849 = vmatpush1.msra.mxu0 %v3444_v28  ;;  %1920 = vmatpush1.msra.mxu1 %v3597_v56  ;;  %v4252_v28 = vld [vmem:[#allocation52_spill] sm:$0xff] }
 0x662   :  { %1850 = vmatprep.subr.mxu0 %v3448_v61  ;;  %1921 = vmatprep.subr.mxu1 %v3601_v41  ;;  %v4253_v61 = vld [vmem:[#allocation45_spill] sm:$0xff]  ;;  %v4272_v41 = vld [vmem:[#allocation75_spill] sm:$0xff] }
 0x663   :  { %1851 = vmatpush1.msra.mxu0 %v3452_v46  ;;  %1922 = vmatpush1.msra.mxu1 %v3605_v44  ;;  %v4254_v46 = vld [vmem:[#allocation51_spill] sm:$0xff] }
 0x664   :  { %1852 = vmatprep.subr.mxu0 %v3456_v43  ;;  %1923 = vmatprep.subr.mxu1 %v3609_v30  ;;  %v4255_v43 = vld [vmem:[#allocation34_spill] sm:$0xff] }
 0x665   :  { %1853 = vmatpush1.msra.mxu0 %v3460_v9  ;;  %1924 = vmatpush1.msra.mxu1 %v3613_v47  ;;  %v4256_v9 = vld [vmem:[#allocation40_spill] sm:$0xff] }
 0x666   :  { %1854 = vmatprep.subr.mxu0 %v3464_v54  ;;  %1925 = vmatprep.subr.mxu1 %v3617_v40  ;;  %v4257_v54 = vld [vmem:[#allocation46_spill] sm:$0xff] }
 0x667   :  { %1855 = vmatpush1.msra.mxu0 %v3468_v55  ;;  %1926 = vmatpush1.msra.mxu1 %v3621_v39  ;;  %v4258_v55 = vld [vmem:[#allocation28_spill] sm:$0xff]  ;;  %v4273_v39 = vld [vmem:[#allocation62_spill] sm:$0xff] }
 0x668   :  { %1856 = vmatprep.subr.mxu0 %v3472_v57  ;;  %1927 = vmatprep.subr.mxu1 %v3625_v38  ;;  %v4259_v57 = vld [vmem:[#allocation35_spill] sm:$0xff] }
 0x669   :  { %1857 = vmatpush1.msra.mxu0 %v3476_v58  ;;  %1928 = vmatpush1.msra.mxu1 %v3629_v7  ;;  %v4261_v58 = vld [vmem:[#allocation47_spill] sm:$0xff]  ;;  %v4274_v7 = vld [vmem:[#allocation61_spill] sm:$0xff] }
 0x66a   :  { %1858 = vmatprep.subr.mxu0 %v3480_v59  ;;  %1929 = vmatprep.subr.mxu1 %v3633_v34  ;;  %v4262_v59 = vld [vmem:[#allocation29_spill] sm:$0xff] }
 0x66b   :  { %1859 = vmatpush1.msra.mxu0 %v3484_v60  ;;  %1930 = vmatpush1.msra.mxu1 %v3637_v37  ;;  %v4263_v60 = vld [vmem:[#allocation36_spill] sm:$0xff] }
 0x66c   :  { %1860 = vmatprep.subr.mxu0 %v3488_v62  ;;  %1931 = vmatprep.subr.mxu1 %v3641_v12  ;;  %v4264_v62 = vld [vmem:[#allocation42_spill] sm:$0xff] }
 0x66d   :  { %1861 = vmatpush1.msra.mxu0 %v3492_v63  ;;  %1932 = vmatpush1.msra.mxu1 %v3645_v31  ;;  %v4265_v63 = vld [vmem:[#allocation48_spill] sm:$0xff] }
 0x66e   :  { %1862 = vmatprep.subr.mxu0 %v3496_v1  ;;  %1933 = vmatprep.subr.mxu1 %v3649_v14  ;;  %v4266_v1 = vld [vmem:[#allocation30_spill] sm:$0xff] }
 0x66f   :  { %1863 = vmatpush1.msra.mxu0 %v3500_v2  ;;  %1934 = vmatpush1.msra.mxu1 %v3653_v17  ;;  %v4267_v2 = vld [vmem:[#allocation37_spill] sm:$0xff] }
 0x670   :  { %1864 = vmatprep.subr.mxu0 %v3504_v3  ;;  %1935 = vmatprep.subr.mxu1 %v3657_v24  ;;  %v4268_v3 = vld [vmem:[#allocation43_spill] sm:$0xff] }
 0x671   :  { %1865 = vmatpush1.msra.mxu0 %v3508_v4  ;;  %1936 = vmatpush1.msra.mxu1 %v3661_v42  ;;  %v4269_v4 = vmov 0.0  }
 0x672   :  { %1866 = vmatprep.subr.mxu0 %v3512_v5  ;;  %1937 = vmatprep.subr.mxu1 %v3665_v36  ;;  %v4270_v5 = vld [vmem:[#allocation49_spill] sm:$0xff] }
 0x673   :  { %1867 = vmatpush1.msra.mxu0 %v3516_v6  ;;  %1938 = vmatpush1.msra.mxu1 %v3669_v50  ;;  %v2063_v6 = vld [vmem:[#allocation12 + $0x78] sm:$0xff] }
 0x674   :  { %1868 = vmatprep.subr.mxu0 %v3520_v11  ;;  %1939 = vmatprep.subr.mxu1 %v3673_v32 }
 0x675   :  { %1869 = vmatpush1.msra.mxu0 %v3524_v16  ;;  %1940 = vmatpush1.msra.mxu1 %v3677_v48  ;;  %v4260_v48 = vld [vmem:[#allocation41_spill] sm:$0xff]  ;;  %v4271_v16 = vld [vmem:[#allocation74_spill] sm:$0xff] }
 0x676   :  { %1870 = vmatprep.subr.mxu0 %v3528_v20  ;;  %1941 = vmatprep.subr.mxu1 %v3681_v19 }
 0x677   :  { %1871 = vmatpush1.msra.mxu0 %v4252_v28  ;;  %1942 = vmatpush1.msra.mxu1 %v4253_v61  ;;  %v2059_v28 = vld [vmem:[#allocation12 + $0x58] sm:$0xff]  ;;  %v2058_v61 = vld [vmem:[#allocation12 + $0x50] sm:$0xff] }
 0x678   :  { %1872 = vmatprep.subr.mxu0 %v4254_v46  ;;  %1943 = vmatprep.subr.mxu1 %v4255_v43  ;;  %v2056_v46 = vld [vmem:[#allocation12 + $0x40] sm:$0xff]  ;;  %v2055_v43 = vld [vmem:[#allocation12 + $0x38] sm:$0xff] }
 0x679   :  { %1873 = vmatpush1.msra.mxu0 %v4256_v9  ;;  %1944 = vmatpush1.msra.mxu1 %v4257_v54  ;;  %v2054_v9 = vld [vmem:[#allocation12 + $0x30] sm:$0xff]  ;;  %v2053_v54 = vld [vmem:[#allocation12 + $0x28] sm:$0xff] }
 0x67a   :  { %1874 = vmatprep.subr.mxu0 %v4258_v55  ;;  %1945 = vmatprep.subr.mxu1 %v4259_v57  ;;  %v2052_v55 = vld [vmem:[#allocation12 + $0x20] sm:$0xff]  ;;  %v2051_v57 = vld [vmem:[#allocation12 + $0x18] sm:$0xff] }
 0x67b   :  { %1875 = vmatpush1.msra.mxu0 %v4260_v48  ;;  %1946 = vmatpush1.msra.mxu1 %v4261_v58  ;;  %v2050_v48 = vld [vmem:[#allocation12 + $0x10] sm:$0xff]  ;;  %v2049_v58 = vld [vmem:[#allocation12 + $0x8] sm:$0xff] }
 0x67c   :  { %1876 = vmatprep.subr.mxu0 %v4262_v59  ;;  %1947 = vmatprep.subr.mxu1 %v4263_v60  ;;  %v2048_v59 = vld [vmem:[#allocation12] sm:$0xff]  ;;  %v4276_v60 = vld [vmem:[#allocation26_spill] sm:$0xff] }
 0x67d   :  { %1877 = vmatpush1.msra.mxu0 %v4264_v62  ;;  %1948 = vmatpush1.msra.mxu1 %v4265_v63  ;;  %v4277_v62 = vld [vmem:[#allocation25_spill] sm:$0xff] }
 0x67e   :  { %1878 = vmatprep.subr.mxu0 %v4266_v1  ;;  %1949 = vmatprep.subr.mxu1 %v4267_v2  ;;  %v859_v63 = vmul.f32 %v4277_v62, %v4276_v60  ;;  %v4278_v1 = vld [vmem:[#allocation31_spill] sm:$0xff] }
 0x67f   :  { %1879 = vmatpush1.msra.mxu0 %v4268_v3  ;;  %1912 = vmatprep.mubr.f32.mxu0 %v4269_v4  ;;  %v4279_v2 = vld [vmem:[#allocation23_spill] sm:$0xff] }
 0x680   :  { %1950 = vmatpush1.msra.mxu1 %v4270_v5  ;;  %1983 = vmatprep.mubr.f32.mxu1 %v4269_v4  ;;  %v1054_v3 = vmul.f32 %v4279_v2, %v4278_v1  ;;  %v4280_v4 = vld [vmem:[#allocation33_spill] sm:$0xff]  ;;  %v4281_v5 = vld [vmem:[#allocation44_spill] sm:$0xff] }
 0x681   :  { %2316 = vmatprep.subr.mxu0 %v2063_v6 }
 0x720   :  { %v1719_v11 = vpop.f32.mrf.mxu0  ;;  %v1790_v30 = vpop.f32.mrf.mxu1 }
 0x721   :  { %v1795_v20 = vadd.f32 %v1719_v11, %v4271_v16  ;;  %v1797_v34 = vadd.f32 %v1790_v30, %v4274_v7  ;;  %v4282_v11 = vld [vmem:[#allocation50_spill] sm:$0xff]  ;;  %v4285_v30 = vld [vmem:[#allocation24_spill] sm:$0xff] }
 0x722   :  { %v1721_v19 = vpop.f32.mrf.mxu0  ;;  %v1792_v40 = vpop.f32.mrf.mxu1  ;;  %v4283_v16 = vld [vmem:[#allocation38_spill] sm:$0xff] }
 0x723   :  { %v2283_v56 = vmul.f32 -1.442695, %v1795_v20  ;;  %v1796_v44 = vadd.f32 %v1721_v19, %v4272_v41  ;;  %v1798_v38 = vadd.f32 %v1792_v40, %v4273_v39  ;;  %v1444_v20 = vmul.f32 %v4283_v16, %v4282_v11  ;;  %v4286_v40 = vld [vmem:[#allocation76_spill] sm:$0xff] }
 0x724   :  { %v1639_v19 = vmul.f32 %v3818_v23, %v3824_v26  ;;  %v4288_v26 = vld [vmem:[#allocation63_spill] sm:$0xff] }
 0x725   :  { %2471 = vpow2.f32 %v2283_v56  ;;  %v2284_v47 = vmul.f32 -1.442695, %v1796_v44  ;;  %v2285_v37 = vmul.f32 -1.442695, %v1798_v38  ;;  %v4284_v44 = vld [vmem:[#allocation64_spill] sm:$0xff] }
 0x727   :  { %2473 = vpow2.f32 %v2284_v47  ;;  %v266_v47 = vadd.f32 %v4285_v30, %v4284_v44 }
 0x728   :  { %2475 = vtanh.f32 %v1797_v34 }
 0x729   :  { %2477 = vpow2.f32 %v2285_v37 }
 0x732   :  { %v2472_v12 = vpop.eup %2471 }
 0x733   :  { %v1802_v31 = vadd.f32 1.0, %v2472_v12 }
 0x734   :  { %v2474_v14 = vpop.eup %2473 }
 0x735   :  { %2479 = vrcp.f32 %v1802_v31  ;;  %v1808_v17 = vadd.f32 1.0, %v2474_v14  ;;  %v2476_v24 = vpop.eup %2475  ;;  %v4287_v14 = vld [vmem:[#allocation65_spill] sm:$0xff] }
 0x736   :  { %v2478_v42 = vpop.eup %2477 }
 0x737   :  { %2481 = vrcp.f32 %v1808_v17  ;;  %v1815_v22 = vadd.f32 1.0, %v2478_v42 }
 0x739   :  { %2483 = vrcp.f32 %v1815_v22  ;;  %v3937_v22 = vld [vmem:[%s3970_s6] ss:$0 sm:$0xff]  ;;  %s2727_s6 = smov [#allocation15]  }
 0x73a   :  { %s2215_s12 = sshll.u32 %s2727_s6, 4  ;;  %s2216_s12 = int_to_ptr.vmem [resolvable:$true] %s2215_s12 }
 0x73b   :  { %s2647_s13 = scalar_lea.vmem %s2216_s12, 128  ;;  %p2652_p7 = scmp.lt.s32.totalorder %s2216_s12, %s2216_s12 }
 0x73c   :  { %p2648_p6 = scmp.ne.s32.totalorder %s2216_s12, %s2647_s13  ;;  %p2653_p8 = scmp.lt.s32.totalorder %s2647_s13, %s2647_s13 }
 0x73e   :  { %p2654_p9 = por %p2653_p8, %p2652_p7 }
 0x740   :  { %p2655_p10 = pnand %p2654_p9, %p2648_p6 }
 0x742   :  { %v2480_v36 = vpop.eup %2479 }
 0x743   :  { %v1819_v50 = vmul.f32 %v2480_v36, %v2476_v24 }
 0x744   :  { %v2482_v32 = vpop.eup %2481 }
 0x745   :  { %v1818_v45 = vmul.f32 %v2482_v32, %v3822_v33 }
 0x746   :  { %v2484_v35 = vpop.eup %2483 }
 0x747   :  { %v1820_v18 = vadd.f32 %v1819_v50, %v1818_v45 }
 0x749   :  { %2485 = vtanh.f32 %v1820_v18  ;;  %v1840_v29 = vsub.f32 %v1820_v18, %v3822_v33 }
 0x74b   :  { %v1841_v13 = vmul.f32 %v1840_v29, %v3904_v10 }
 0x74d   :  { %v3908_v49 = vadd.f32 %v1841_v13, %v3822_v33  ;;  %v2061_v33 = vld [vmem:[#allocation12 + $0x68] sm:$0xff] }
 0x756   :  { %v2486_v25 = vpop.eup %2485 }
 0x757   :  { %v1822_v53 = vmul.f32 %v2486_v25, %v2484_v35 }
 0x759   :  { %v1837_v15 = vsub.f32 %v1822_v53, %v3830_v0  ;;  %v1834_v56 = vmul.f32 %v3904_v10, %v1822_v53 }
 0x75b   :  { %v1838_v21 = vmul.f32 %v1837_v15, %v3904_v10 }
 0x75d   :  { %v3913_v52 = vadd.f32 %v1838_v21, %v3830_v0  ;;  %v2057_v0 = vld [vmem:[#allocation12 + $0x48] sm:$0xff] }
 0x75f   :  { %1913 = vmatmul.mubr.f32.vlgmr.msra.gmra.mxu0 %v3913_v52  ;;  %1984 = vmatmul.mubr.f32.vlgmr.msra.gmra.mxu1 %v3913_v52 }
 0x760   :  { %2317 = vmatpush3.msra.mxu0 %v2063_v6  ;;  %2348 = vmatprep.mubr.f32.mxu0 %v4275_v51  ;;  %v1249_v6 = vmul.f32 %v4281_v5, %v4280_v4 }
 0x761   :  { %2318 = vmatprep.subr.mxu0 %v2062_v8 }
 0x762   :  { %2319 = vmatpush3.msra.mxu0 %v2062_v8 }
 0x763   :  { %2320 = vmatprep.subr.mxu0 %v2061_v33 }
 0x764   :  { %2321 = vmatpush3.msra.mxu0 %v2061_v33 }
 0x765   :  { %2322 = vmatprep.subr.mxu0 %v2060_v27 }
 0x766   :  { %2323 = vmatpush3.msra.mxu0 %v2060_v27 }
 0x767   :  { %2324 = vmatprep.subr.mxu0 %v2059_v28 }
 0x768   :  { %2325 = vmatpush3.msra.mxu0 %v2059_v28 }
 0x769   :  { %2326 = vmatprep.subr.mxu0 %v2058_v61 }
 0x76a   :  { %2327 = vmatpush3.msra.mxu0 %v2058_v61 }
 0x76b   :  { %2328 = vmatprep.subr.mxu0 %v2057_v0 }
 0x76c   :  { %2329 = vmatpush3.msra.mxu0 %v2057_v0 }
 0x76d   :  { %2330 = vmatprep.subr.mxu0 %v2056_v46 }
 0x76e   :  { %2331 = vmatpush3.msra.mxu0 %v2056_v46 }
 0x76f   :  { %2332 = vmatprep.subr.mxu0 %v2055_v43 }
 0x770   :  { %2333 = vmatpush3.msra.mxu0 %v2055_v43 }
 0x771   :  { %2334 = vmatprep.subr.mxu0 %v2054_v9 }
 0x772   :  { %2335 = vmatpush3.msra.mxu0 %v2054_v9 }
 0x773   :  { %2336 = vmatprep.subr.mxu0 %v2053_v54 }
 0x774   :  { %2337 = vmatpush3.msra.mxu0 %v2053_v54 }
 0x775   :  { %2338 = vmatprep.subr.mxu0 %v2052_v55 }
 0x776   :  { %2339 = vmatpush3.msra.mxu0 %v2052_v55 }
 0x777   :  { %2340 = vmatprep.subr.mxu0 %v2051_v57 }
 0x778   :  { %2341 = vmatpush3.msra.mxu0 %v2051_v57 }
 0x779   :  { %2342 = vmatprep.subr.mxu0 %v2050_v48 }
 0x77a   :  { %2343 = vmatpush3.msra.mxu0 %v2050_v48  ;;  %v2027_v48 = vpop.permute.xlu1 %2026 }
 0x77b   :  { %2344 = vmatprep.subr.mxu0 %v2049_v58 }
 0x77c   :  { %2345 = vmatpush3.msra.mxu0 %v2049_v58 }
 0x77d   :  { %2346 = vmatprep.subr.mxu0 %v2048_v59 }
 0x77e   :  { %2347 = vmatpush3.msra.mxu0 %v2048_v59 }
 0x77f   :  { %2349 = vmatmul.mubr.f32.vlgmr.msra.gmra.mxu0 %v859_v63 }
 0x780   :  { %2351 = vmatprep.mubr.f32.mxu0 %v1054_v3 }
 0x783   :  { %2352 = vmatmul.mubr.f32.gmra.mxu0 %v1249_v6 }
 0x784   :  { %2354 = vmatprep.mubr.f32.mxu0 %v1444_v20 }
 0x787   :  { %2355 = vmatmul.mubr.f32.gmra.mxu0 %v1639_v19 }
 0x788   :  { %2357 = vmatprep.mubr.f32.mxu0 %v1834_v56 }
 0x81f   :  { %v1914_v41 = vpop.f32.mrf.mxu0  ;;  %v1985_v37 = vpop.f32.mrf.mxu1 }
 0x820   :  { %v1990_v39 = vadd.f32 %v1914_v41, %v4286_v40  ;;  %v1992_v17 = vadd.f32 %v1985_v37, %v4288_v26 }
 0x821   :  { %v1916_v38 = vpop.f32.mrf.mxu0  ;;  %v1987_v31 = vpop.f32.mrf.mxu1 }
 0x822   :  { %v2287_v7 = vmul.f32 -1.442695, %v1990_v39  ;;  %v1991_v34 = vadd.f32 %v1916_v38, %v266_v47  ;;  %v1993_v23 = vadd.f32 %v1987_v31, %v4287_v14 }
 0x824   :  { %2487 = vpow2.f32 %v2287_v7  ;;  %v2288_v12 = vmul.f32 -1.442695, %v1991_v34  ;;  %v2289_v24 = vmul.f32 -1.442695, %v1993_v23 }
 0x826   :  { %2489 = vpow2.f32 %v2288_v12 }
 0x827   :  { %2491 = vtanh.f32 %v1992_v17 }
 0x828   :  { %2493 = vpow2.f32 %v2289_v24 }
 0x831   :  { %v2488_v42 = vpop.eup %2487 }
 0x832   :  { %v1997_v36 = vadd.f32 1.0, %v2488_v42 }
 0x833   :  { %v2490_v50 = vpop.eup %2489 }
 0x834   :  { %2495 = vrcp.f32 %v1997_v36  ;;  %v2003_v32 = vadd.f32 1.0, %v2490_v50  ;;  %v2492_v45 = vpop.eup %2491 }
 0x835   :  { %v2494_v29 = vpop.eup %2493 }
 0x836   :  { %2497 = vrcp.f32 %v2003_v32  ;;  %v2010_v8 = vadd.f32 1.0, %v2494_v29 }
 0x838   :  { %2499 = vrcp.f32 %v2010_v8 }
 0x83f   :  { %v2350_v18 = vpop.f32.mrf.mxu0 }
 0x840   :  { %v2143_v10 = vadd.f32 %v2350_v18, %v3937_v22 }
 0x841   :  { %v2496_v13 = vpop.eup %2495  ;;  %v2137_v35 = vpop.f32.mrf.mxu0 }
 0x842   :  { %v2014_v25 = vmul.f32 %v2496_v13, %v2492_v45  ;;  %v2177_v53 = vmax.f32 %v2143_v10, 0.0  ;;  %v2138_v15 = vadd.f32 %v3937_v22, %v2137_v35 }
 0x843   :  { %v2498_v21 = vpop.eup %2497  ;;  %v2353_v51 = vpop.f32.mrf.mxu0 }
 0x844   :  { %v2013_v33 = vmul.f32 %v2498_v21, %v3908_v49  ;;  %2185 = vst [vmem:[#allocation14 + $0x8] sm:$0xff] %v2177_v53  ;;  %v2176_v27 = vmax.f32 %v2138_v15, 0.0  ;;  %v2153_v28 = vadd.f32 %v2353_v51, %v3937_v22 }
 0x845   :  { %v2147_v61 = vpop.f32.mrf.mxu0  ;;  %v2500_v2 = vpop.eup %2499 }
 0x846   :  { %v2015_v0 = vadd.f32 %v2014_v25, %v2013_v33  ;;  %2184 = vst [vmem:[#allocation14] sm:$0xff] %v2176_v27  ;;  %v2179_v46 = vmax.f32 %v2153_v28, 0.0  ;;  %v2148_v43 = vadd.f32 %v3937_v22, %v2147_v61 }
 0x847   :  { %v2356_v9 = vpop.f32.mrf.mxu0 }
 0x848   :  { %2187 = vst [vmem:[#allocation14 + $0x18] sm:$0xff] %v2179_v46  ;;  %v2178_v54 = vmax.f32 %v2148_v43, 0.0  ;;  %v2163_v55 = vadd.f32 %v2356_v9, %v3937_v22  ;;  %2501 = vtanh.f32 %v2015_v0  ;;  %v2035_v57 = vsub.f32 %v2015_v0, %v3908_v49 }
 0x849   :  { %v2157_v58 = vpop.f32.mrf.mxu0 }
 0x84a   :  { %2186 = vst [vmem:[#allocation14 + $0x10] sm:$0xff] %v2178_v54  ;;  %v2181_v59 = vmax.f32 %v2163_v55, 0.0  ;;  %v2158_v60 = vadd.f32 %v3937_v22, %v2157_v58  ;;  %v2036_v62 = vmul.f32 %v2035_v57, %v2027_v48 }
 0x84c   :  { %2189 = vst [vmem:[#allocation14 + $0x28] sm:$0xff] %v2181_v59  ;;  %v2180_v63 = vmax.f32 %v2158_v60, 0.0  ;;  %v2037_v1 = vadd.f32 %v2036_v62, %v3908_v49 }
 0x84e   :  { %2188 = vst [vmem:[#allocation14 + $0x20] sm:$0xff] %v2180_v63  ;;  %2196 = vst [vmem:[#allocation17] sm:$0xff] %v2037_v1 }
 0x855   :  { %v2502_v3 = vpop.eup %2501 }
 0x856   :  { %v2017_v4 = vmul.f32 %v2502_v3, %v2500_v2 }
 0x858   :  { %v2029_v5 = vmul.f32 %v2027_v48, %v2017_v4  ;;  %v2032_v6 = vsub.f32 %v2017_v4, %v3913_v52 }
 0x85a   :  { %2358 = vmatmul.mubr.f32.gmra.mxu0 %v2029_v5  ;;  %v2033_v11 = vmul.f32 %v2032_v6, %v2027_v48 }
 0x85c   :  { %v2034_v16 = vadd.f32 %v2033_v11, %v3913_v52 }
 0x85e   :  { %2195 = vst [vmem:[#allocation15] sm:$0xff] %v2034_v16 }
 0x85f   :  { %2658 = shalt.err (!%p2655_p10)
}
 0x860   :  { %2218 = dma.vmem_to_hbm [thread:$0]  %s2216_s12, 128, %s3972_s8, [#allocation16]  }
 0x861   :  { %s2728_s16 = smov [#allocation17]  }
 0x862   :  { %s2225_s17 = sshll.u32 %s2728_s16, 4  ;;  %s2226_s17 = int_to_ptr.vmem [resolvable:$true] %s2225_s17 }
 0x863   :  { %s2667_s18 = scalar_lea.vmem %s2226_s17, 128  ;;  %p2672_p12 = scmp.lt.s32.totalorder %s2226_s17, %s2226_s17 }
 0x864   :  { %p2668_p11 = scmp.ne.s32.totalorder %s2226_s17, %s2667_s18  ;;  %p2673_p13 = scmp.lt.s32.totalorder %s2667_s18, %s2667_s18 }
 0x866   :  { %p2674_p0 = por %p2673_p13, %p2672_p12 }
 0x868   :  { %p2675_p1 = pnand %p2674_p0, %p2668_p11 }
 0x86a   :  { %2678 = shalt.err (!%p2675_p1)
}
 0x86b   :  { %2228 = dma.vmem_to_hbm [thread:$0]  %s2226_s17, 128, %s3973_s9, [#allocation16]  }
 0x86c   :  { %s2729_s2 = smov [#allocation14]  }
 0x86d   :  { %s2202_s8 = sshll.u32 %s2729_s2, 4  ;;  %s2203_s8 = int_to_ptr.vmem [resolvable:$true] %s2202_s8 }
 0x86e   :  { %s2687_s23 = scalar_lea.vmem %s2203_s8, 1024  ;;  %p2692_p3 = scmp.lt.s32.totalorder %s2203_s8, %s2203_s8 }
 0x86f   :  { %p2688_p2 = scmp.ne.s32.totalorder %s2203_s8, %s2687_s23  ;;  %p2693_p4 = scmp.lt.s32.totalorder %s2687_s23, %s2687_s23 }
 0x871   :  { %p2694_p5 = por %p2693_p4, %p2692_p3 }
 0x873   :  { %p2695_p6 = pnand %p2694_p5, %p2688_p2 }
 0x91a   :  { %v2359_v49 = vpop.f32.mrf.mxu0 }
 0x91b   :  { %v2173_v52 = vadd.f32 %v2359_v49, %v3937_v22 }
 0x91c   :  { %v2167_v20 = vpop.f32.mrf.mxu0 }
 0x91d   :  { %v2183_v19 = vmax.f32 %v2173_v52, 0.0  ;;  %v2168_v56 = vadd.f32 %v3937_v22, %v2167_v20 }
 0x91f   :  { %2191 = vst [vmem:[#allocation14 + $0x38] sm:$0xff] %v2183_v19  ;;  %v2182_v41 = vmax.f32 %v2168_v56, 0.0 }
 0x921   :  { %2190 = vst [vmem:[#allocation14 + $0x30] sm:$0xff] %v2182_v41 }
 0x922   :  { %2698 = shalt.err (!%p2695_p6)
}
 0x923   :  { %2208 = dma.vmem_to_hbm [thread:$0]  %s2203_s8, 1024, %s3971_s7, [#allocation8], %s2721_s19, %s2721_s19, %s2722_s20  }
 0x924   :  { %2713 = dma.done.wait [#allocation8], 1024  }
 0x925   :  { %2714 = vsyncadd [#allocation8], 4294966272 }
 0x926   :  { %2715 = dma.done.wait [#allocation16], 256  }
 0x927   :  { %2716 = vsyncadd [#allocation16], 4294967040 }
 0x928   :  { %2238 = vsyncpa [#allocation7], 1 }
 0x929   :  { %2239 = vsyncpa [#allocation10], 1 }
 0x92a   :  { %2240 = vsyncpa [#allocation13], 1 }
 0x92b   :  { %2241 = vsyncpa [#allocation8], 1 }
 0x92c   :  { %2242 = vsyncpa [#allocation16], 1 }

</bundles_post_ra>
